<compile_context>
chip_gen: v7x
topology: tpu7x:2x2x1
jax: 0.10.0
libtpu: 0.0.40
codegen_flags: <defaults>
</compile_context>

<pallas_src>
import jax
import jax.numpy as jnp
from jax.experimental import pallas as pl
from jax.experimental.pallas import tpu as pltpu

# --- module hyper-parameters (from the PyTorch source) -----------------------
ACTION_SIZE = (2,)
FEATURE_DIMENSIONS = (20, 20, 10, 10)
MEMORY_SIZE = 5
ENCODING_DIMENSIONS = 32            # model.params['encoding_dimensions'] (synthetic)
ACTION_DIMENSIONS = 2               # np.product(action_size)
IN_DIM = MEMORY_SIZE * ENCODING_DIMENSIONS          # 160

LAYER_DIMS = (IN_DIM,) + FEATURE_DIMENSIONS + (ACTION_DIMENSIONS,)   # 160,20,20,10,10,2
NUM_LAYERS = len(LAYER_DIMS) - 1                                     # 5

LANE = 128
OUT_LANES = 8                 # stored output lanes (>= ACTION_DIMENSIONS)
SMALL_BATCH_FALLBACK = 64     # below this, plain jnp beats custom-call overhead

# --- packed-parameter slab layout --------------------------------------------
# Single (PACK_ROWS, 128) bf16 array:
#   rows [W_OFFS[i] : W_OFFS[i] + W_ROWS[i])  : layer-i weights, zero padded to
#                                               128 output lanes (and, for i>0,
#                                               to 128 input rows)
#   row  [BIAS_OFF + i]                       : layer-i bias in lanes 0:out_dim
# All offsets are multiples of 16 -> bf16 sublane-tile aligned static slices.
W_ROWS = (IN_DIM,) + (LANE,) * (NUM_LAYERS - 1)      # (160, 128, 128, 128, 128)
_offs, _o = [], 0
for _r in W_ROWS:
    _offs.append(_o)
    _o += _r
W_OFFS = tuple(_offs)                                # (0, 160, 288, 416, 544)
BIAS_OFF = _o                                        # 672
PACK_ROWS = BIAS_OFF + 16                            # 688 (multiple of 16)


def pack_params(params):
    """Pack [(w_i (in,out), b_i (out,))]*5 into one (PACK_ROWS, 128) bf16 slab."""
    slab = jnp.zeros((PACK_ROWS, LANE), jnp.bfloat16)
    for i, (w, b) in enumerate(params):
        fan_in, fan_out = w.shape
        slab = slab.at[W_OFFS[i]:W_OFFS[i] + fan_in, :fan_out].set(
            w.astype(jnp.bfloat16))
        slab = slab.at[BIAS_OFF + i, :fan_out].set(
            b.reshape(-1).astype(jnp.bfloat16))
    return slab


# --- Pallas kernel: full policy MLP, lane-dense at width 128 ------------------
def policy_kernel(x_ref, p_ref, o_ref):
    # x_ref: (TB, 160) bf16, p_ref: (688, 128) bf16, o_ref: (TB, 8) f32
    biases = p_ref[BIAS_OFF:BIAS_OFF + 16, :].astype(jnp.float32)  # aligned (16,128)

    # layer 0: bf16 x bf16 -> f32 accumulate on the MXU
    h = jnp.dot(x_ref[...], p_ref[W_OFFS[0]:W_OFFS[0] + W_ROWS[0], :],
                preferred_element_type=jnp.float32) + biases[0:1, :]
    h = jnp.maximum(h, 0.0)

    for i in range(1, NUM_LAYERS):
        w = p_ref[W_OFFS[i]:W_OFFS[i] + W_ROWS[i], :]              # (128,128) bf16
        h = jnp.dot(h.astype(jnp.bfloat16), w,
                    preferred_element_type=jnp.float32) + biases[i:i + 1, :]
        if i < NUM_LAYERS - 1:
            h = jnp.maximum(h, 0.0)                                # padding lanes stay 0

    # narrow store: only 8 lanes (real outputs in lanes 0:2, zeros elsewhere)
    o_ref[...] = jnp.tanh(h[:, :OUT_LANES])


# --- wrappers -----------------------------------------------------------------
def _round_up(n, m):
    return ((n + m - 1) // m) * m


def _pick_block_b(B):
    """Batch tile: pad B to a multiple of 256 (fills MXU rows on v6e/v7x,
    multiple of v5e's 128), then aim for ~4 grid steps of <=1024 rows so the
    x/out pipeline double-buffers and both v7x TensorCores get work."""
    bp = _round_up(max(B, 1), 256)
    return max(256, min(1024, _round_up(bp // 4, 256)))


def _policy_forward_jax(x, packed):
    """Plain-jnp fallback for small batches (same quantized weights)."""
    h = x.astype(jnp.float32)
    slab = packed.astype(jnp.float32)
    for i in range(NUM_LAYERS):
        w = slab[W_OFFS[i]:W_OFFS[i] + LAYER_DIMS[i], :LAYER_DIMS[i + 1]]
        b = slab[BIAS_OFF + i, :LAYER_DIMS[i + 1]]
        h = h @ w + b[None, :]
        if i < NUM_LAYERS - 1:
            h = jnp.maximum(h, 0.0)
    return jnp.tanh(h)


def _run_pallas(xp, packed, block_b, grid_b, bp, *, single_buffer_weights):
    w_spec_kwargs = (
        {"pipeline_mode": pl.Buffered(1)} if single_buffer_weights else {})
    flops = int(2 * sum(LAYER_DIMS[i] * LAYER_DIMS[i + 1]
                        for i in range(NUM_LAYERS)) * bp)
    bytes_accessed = int(2 * bp * IN_DIM + 2 * PACK_ROWS * LANE
                         + 4 * bp * OUT_LANES)
    return pl.pallas_call(
        policy_kernel,
        out_shape=jax.ShapeDtypeStruct((bp, OUT_LANES), jnp.float32),
        grid_spec=pltpu.PrefetchScalarGridSpec(
            num_scalar_prefetch=0,
            grid=(grid_b,),
            in_specs=[
                pl.BlockSpec((block_b, IN_DIM), lambda i: (i, 0)),
                # constant index_map -> slab fetched once, VMEM-resident
                pl.BlockSpec((PACK_ROWS, LANE), lambda i: (0, 0),
                             **w_spec_kwargs),
            ],
            out_specs=pl.BlockSpec((block_b, OUT_LANES), lambda i: (i, 0)),
        ),
        compiler_params=pltpu.CompilerParams(
            dimension_semantics=("parallel",)),
        cost_estimate=pl.CostEstimate(
            flops=flops,
            transcendentals=int(bp * OUT_LANES),
            bytes_accessed=bytes_accessed),
    )(xp, packed)


def policy_forward_batched(x, packed, *, block_b=None, force_pallas=False):
    """x: (B, IN_DIM), packed: (PACK_ROWS, 128) bf16 -> (B, ACTION_DIMENSIONS)."""
    B = x.shape[0]
    if B < SMALL_BATCH_FALLBACK and not force_pallas:
        return _policy_forward_jax(x, packed)

    if block_b is None:
        block_b = _pick_block_b(B)
    block_b = _round_up(int(max(16, min(int(block_b), 2048))), 16)

    bp = _round_up(B, block_b)
    grid_b = bp // block_b

    xp = x.astype(jnp.bfloat16)
    if bp != B:
        xp = jnp.pad(xp, ((0, bp - B), (0, 0)))

    try:
        out = _run_pallas(xp, packed, block_b, grid_b, bp,
                          single_buffer_weights=True)
    except Exception:
        # pipeline_mode=pl.Buffered(1) not supported on this jax build;
        # default double-buffered slab spec (only costs ~0.35 MB extra VMEM).
        out = _run_pallas(xp, packed, block_b, grid_b, bp,
                          single_buffer_weights=False)
    return out[:B, :ACTION_DIMENSIONS]


def memory_ltd_forward(recall, packed):
    """Single-sample forward, matching the nn.Module semantics.

    recall: (memory_size, encoding_dims) float32 -> (2,) float32.
    (Goes through the small-batch jnp path; the Pallas kernel is for rollouts.)
    """
    x = recall.reshape(1, -1)
    out = policy_forward_batched(x, packed)
    return out[0].reshape(*ACTION_SIZE)


# --- deterministic parameter init (synthetic, matches nn.Linear shapes) -------
def init_params(key):
    params = []
    for i in range(NUM_LAYERS):
        key, wk, bk = jax.random.split(key, 3)
        fan_in, fan_out = LAYER_DIMS[i], LAYER_DIMS[i + 1]
        bound = 1.0 / jnp.sqrt(fan_in)
        w = jax.random.uniform(wk, (fan_in, fan_out), jnp.float32, -bound, bound)
        b = jax.random.uniform(bk, (fan_out,), jnp.float32, -bound, bound)
        params.append((w, b))
    return params


def reference_forward(x2d, params):
    h = x2d.astype(jnp.float32)
    for i, (w, b) in enumerate(params):
        h = h @ w + b.reshape(1, -1)
        if i < len(params) - 1:
            h = jnp.maximum(h, 0.0)
    return jnp.tanh(h)


if __name__ == "__main__":
    key = jax.random.PRNGKey(0)
    key, pkey, rkey, bkey = jax.random.split(key, 4)

    params = init_params(pkey)
    packed = pack_params(params)

    # single-sample path (module's forward(recall) semantics; jnp fallback)
    recall = jax.random.normal(rkey, (MEMORY_SIZE, ENCODING_DIMENSIONS), jnp.float32)
    out1 = jax.block_until_ready(memory_ltd_forward(recall, packed))
    ref1 = reference_forward(recall.reshape(1, -1), params)[0]
    assert out1.shape == ACTION_SIZE, out1.shape
    assert jnp.allclose(out1, ref1, atol=5e-2, rtol=5e-2), (out1, ref1)

    # batched Pallas path (rollout-sized); B=600 exercises batch padding and a
    # multi-step grid (block_b=256, grid=3) so the pipeline actually runs.
    B = 600
    recalls = jax.random.normal(
        bkey, (B, MEMORY_SIZE, ENCODING_DIMENSIONS), jnp.float32)
    xb = recalls.reshape(B, -1)
    outb = jax.block_until_ready(
        policy_forward_batched(xb, packed, force_pallas=True))
    refb = reference_forward(xb, params)
    assert outb.shape == (B, ACTION_DIMENSIONS), outb.shape
    assert jnp.allclose(outb, refb, atol=5e-2, rtol=5e-2), (
        jnp.max(jnp.abs(outb - refb)))

    print("KERNEL_OK")
</pallas_src>

<mosaic_0001>
module attributes {stable_mosaic.version = 11 : i64} {
  func.func @policy_kernel(%arg0: i32, %arg1: memref<256x160xbf16, #tpu.memory_space<vmem>>, %arg2: memref<688x128xbf16, #tpu.memory_space<vmem>>, %arg3: memref<256x8xf32, #tpu.memory_space<vmem>>) attributes {dimension_semantics = [#tpu.dimension_semantics<parallel>], iteration_bounds = array<i64: 3>, scalar_prefetch = 0 : i64, scratch_operands = 0 : i64, tpu.core_type = #tpu.core_type<tc>, window_params = [{transform_indices = @transform_0, window_bounds = array<i64: 256, 160>}, {pipeline_mode = #tpu.pipeline_mode<synchronous>, transform_indices = @transform_1, window_bounds = array<i64: 688, 128>}, {transform_indices = @transform_2, window_bounds = array<i64: 256, 8>}]} {
    %c672 = arith.constant 672 : index
    %c0 = arith.constant 0 : index
    %0 = vector.load %arg2[%c672, %c0] : memref<688x128xbf16, #tpu.memory_space<vmem>>, vector<16x128xbf16>
    %1 = arith.extf %0 : vector<16x128xbf16> to vector<16x128xf32>
    %c0_0 = arith.constant 0 : index
    %c0_1 = arith.constant 0 : index
    %2 = vector.load %arg1[%c0_0, %c0_1] : memref<256x160xbf16, #tpu.memory_space<vmem>>, vector<256x160xbf16>
    %c0_2 = arith.constant 0 : index
    %c0_3 = arith.constant 0 : index
    %3 = vector.load %arg2[%c0_2, %c0_3] : memref<688x128xbf16, #tpu.memory_space<vmem>>, vector<160x128xbf16>
    %cst = arith.constant dense<0.000000e+00> : vector<256x128xf32>
    %4 = tpu.matmul %2, %3, %cst {dimension_numbers = #tpu.dot_dimension_numbers<[1], [0], [0], [1], [0, 0, 1, 1], [], []>} : vector<256x160xbf16>, vector<160x128xbf16>, vector<256x128xf32> -> vector<256x128xf32>
    %5 = vector.extract_strided_slice %1 {offsets = [0, 0], sizes = [1, 128], strides = [1, 1]} : vector<16x128xf32> to vector<1x128xf32>
    %6 = vector.broadcast %5 : vector<1x128xf32> to vector<256x128xf32>
    %7 = arith.addf %4, %6 : vector<256x128xf32>
    %cst_4 = arith.constant 0.000000e+00 : f32
    %8 = vector.broadcast %cst_4 : f32 to vector<256x128xf32>
    %9 = arith.maximumf %7, %8 : vector<256x128xf32>
    %c160 = arith.constant 160 : index
    %c0_5 = arith.constant 0 : index
    %10 = vector.load %arg2[%c160, %c0_5] : memref<688x128xbf16, #tpu.memory_space<vmem>>, vector<128x128xbf16>
    %11 = arith.truncf %9 : vector<256x128xf32> to vector<256x128xbf16>
    %cst_6 = arith.constant dense<0.000000e+00> : vector<256x128xf32>
    %12 = tpu.matmul %11, %10, %cst_6 {dimension_numbers = #tpu.dot_dimension_numbers<[1], [0], [0], [1], [0, 0, 1, 1], [], []>} : vector<256x128xbf16>, vector<128x128xbf16>, vector<256x128xf32> -> vector<256x128xf32>
    %13 = vector.extract_strided_slice %1 {offsets = [1, 0], sizes = [1, 128], strides = [1, 1]} : vector<16x128xf32> to vector<1x128xf32>
    %14 = vector.broadcast %13 : vector<1x128xf32> to vector<256x128xf32>
    %15 = arith.addf %12, %14 : vector<256x128xf32>
    %cst_7 = arith.constant 0.000000e+00 : f32
    %16 = vector.broadcast %cst_7 : f32 to vector<256x128xf32>
    %17 = arith.maximumf %15, %16 : vector<256x128xf32>
    %c288 = arith.constant 288 : index
    %c0_8 = arith.constant 0 : index
    %18 = vector.load %arg2[%c288, %c0_8] : memref<688x128xbf16, #tpu.memory_space<vmem>>, vector<128x128xbf16>
    %19 = arith.truncf %17 : vector<256x128xf32> to vector<256x128xbf16>
    %cst_9 = arith.constant dense<0.000000e+00> : vector<256x128xf32>
    %20 = tpu.matmul %19, %18, %cst_9 {dimension_numbers = #tpu.dot_dimension_numbers<[1], [0], [0], [1], [0, 0, 1, 1], [], []>} : vector<256x128xbf16>, vector<128x128xbf16>, vector<256x128xf32> -> vector<256x128xf32>
    %21 = vector.extract_strided_slice %1 {offsets = [2, 0], sizes = [1, 128], strides = [1, 1]} : vector<16x128xf32> to vector<1x128xf32>
    %22 = vector.broadcast %21 : vector<1x128xf32> to vector<256x128xf32>
    %23 = arith.addf %20, %22 : vector<256x128xf32>
    %cst_10 = arith.constant 0.000000e+00 : f32
    %24 = vector.broadcast %cst_10 : f32 to vector<256x128xf32>
    %25 = arith.maximumf %23, %24 : vector<256x128xf32>
    %c416 = arith.constant 416 : index
    %c0_11 = arith.constant 0 : index
    %26 = vector.load %arg2[%c416, %c0_11] : memref<688x128xbf16, #tpu.memory_space<vmem>>, vector<128x128xbf16>
    %27 = arith.truncf %25 : vector<256x128xf32> to vector<256x128xbf16>
    %cst_12 = arith.constant dense<0.000000e+00> : vector<256x128xf32>
    %28 = tpu.matmul %27, %26, %cst_12 {dimension_numbers = #tpu.dot_dimension_numbers<[1], [0], [0], [1], [0, 0, 1, 1], [], []>} : vector<256x128xbf16>, vector<128x128xbf16>, vector<256x128xf32> -> vector<256x128xf32>
    %29 = vector.extract_strided_slice %1 {offsets = [3, 0], sizes = [1, 128], strides = [1, 1]} : vector<16x128xf32> to vector<1x128xf32>
    %30 = vector.broadcast %29 : vector<1x128xf32> to vector<256x128xf32>
    %31 = arith.addf %28, %30 : vector<256x128xf32>
    %cst_13 = arith.constant 0.000000e+00 : f32
    %32 = vector.broadcast %cst_13 : f32 to vector<256x128xf32>
    %33 = arith.maximumf %31, %32 : vector<256x128xf32>
    %c544 = arith.constant 544 : index
    %c0_14 = arith.constant 0 : index
    %34 = vector.load %arg2[%c544, %c0_14] : memref<688x128xbf16, #tpu.memory_space<vmem>>, vector<128x128xbf16>
    %35 = arith.truncf %33 : vector<256x128xf32> to vector<256x128xbf16>
    %cst_15 = arith.constant dense<0.000000e+00> : vector<256x128xf32>
    %36 = tpu.matmul %35, %34, %cst_15 {dimension_numbers = #tpu.dot_dimension_numbers<[1], [0], [0], [1], [0, 0, 1, 1], [], []>} : vector<256x128xbf16>, vector<128x128xbf16>, vector<256x128xf32> -> vector<256x128xf32>
    %37 = vector.extract_strided_slice %1 {offsets = [4, 0], sizes = [1, 128], strides = [1, 1]} : vector<16x128xf32> to vector<1x128xf32>
    %38 = vector.broadcast %37 : vector<1x128xf32> to vector<256x128xf32>
    %39 = arith.addf %36, %38 : vector<256x128xf32>
    %40 = vector.extract_strided_slice %39 {offsets = [0, 0], sizes = [256, 8], strides = [1, 1]} : vector<256x128xf32> to vector<256x8xf32>
    %41 = math.tanh %40 : vector<256x8xf32>
    %c0_16 = arith.constant 0 : index
    %c0_17 = arith.constant 0 : index
    %42 = vector.load %arg3[%c0_16, %c0_17] : memref<256x8xf32, #tpu.memory_space<vmem>>, vector<256x8xf32>
    tpu.vector_store %arg3[%c0_16, %c0_17], %41 {strides = array<i32>} : memref<256x8xf32, #tpu.memory_space<vmem>>, vector<256x8xf32>,
    return
  }
  func.func @transform_0(%arg0: i32) -> (i32, i32) {
    %c0_i32 = arith.constant 0 : i32
    %c0_i32_0 = arith.constant 0 : i32
    return %arg0, %c0_i32 : i32, i32
  }
  func.func @transform_1(%arg0: i32) -> (i32, i32) {
    %c0_i32 = arith.constant 0 : i32
    %c0_i32_0 = arith.constant 0 : i32
    %c0_i32_1 = arith.constant 0 : i32
    return %c0_i32, %c0_i32_0 : i32, i32
  }
  func.func @transform_2(%arg0: i32) -> (i32, i32) {
    %c0_i32 = arith.constant 0 : i32
    %c0_i32_0 = arith.constant 0 : i32
    return %arg0, %c0_i32 : i32, i32
  }
}

module attributes {stable_mosaic.version = 11 : i64} {
  func.func @policy_kernel(%arg0: i32, %arg1: memref<256x160xbf16, #tpu.memory_space<vmem>>, %arg2: memref<688x128xbf16, #tpu.memory_space<vmem>>, %arg3: memref<256x8xf32, #tpu.memory_space<vmem>>) attributes {dimension_semantics = [#tpu.dimension_semantics<parallel>], iteration_bounds = array<i64: 3>, scalar_prefetch = 0 : i64, scratch_operands = 0 : i64, tpu.core_type = #tpu.core_type<tc>, window_params = [{transform_indices = @transform_0, window_bounds = array<i64: 256, 160>}, {pipeline_mode = #tpu.pipeline_mode<synchronous>, transform_indices = @transform_1, window_bounds = array<i64: 688, 128>}, {transform_indices = @transform_2, window_bounds = array<i64: 256, 8>}]} {
    %c672 = arith.constant 672 : index
    %c0 = arith.constant 0 : index
    %0 = vector.load %arg2[%c672, %c0] : memref<688x128xbf16, #tpu.memory_space<vmem>>, vector<16x128xbf16>
    %1 = arith.extf %0 : vector<16x128xbf16> to vector<16x128xf32>
    %c0_0 = arith.constant 0 : index
    %c0_1 = arith.constant 0 : index
    %2 = vector.load %arg1[%c0_0, %c0_1] : memref<256x160xbf16, #tpu.memory_space<vmem>>, vector<256x160xbf16>
    %c0_2 = arith.constant 0 : index
    %c0_3 = arith.constant 0 : index
    %3 = vector.load %arg2[%c0_2, %c0_3] : memref<688x128xbf16, #tpu.memory_space<vmem>>, vector<160x128xbf16>
    %cst = arith.constant dense<0.000000e+00> : vector<256x128xf32>
    %4 = tpu.matmul %2, %3, %cst {dimension_numbers = #tpu.dot_dimension_numbers<[1], [0], [0], [1], [0, 0, 1, 1], [], []>} : vector<256x160xbf16>, vector<160x128xbf16>, vector<256x128xf32> -> vector<256x128xf32>
    %5 = vector.extract_strided_slice %1 {offsets = [0, 0], sizes = [1, 128], strides = [1, 1]} : vector<16x128xf32> to vector<1x128xf32>
    %6 = vector.broadcast %5 : vector<1x128xf32> to vector<256x128xf32>
    %7 = arith.addf %4, %6 : vector<256x128xf32>
    %cst_4 = arith.constant 0.000000e+00 : f32
    %8 = vector.broadcast %cst_4 : f32 to vector<256x128xf32>
    %9 = arith.maximumf %7, %8 : vector<256x128xf32>
    %c160 = arith.constant 160 : index
    %c0_5 = arith.constant 0 : index
    %10 = vector.load %arg2[%c160, %c0_5] : memref<688x128xbf16, #tpu.memory_space<vmem>>, vector<128x128xbf16>
    %11 = arith.truncf %9 : vector<256x128xf32> to vector<256x128xbf16>
    %cst_6 = arith.constant dense<0.000000e+00> : vector<256x128xf32>
    %12 = tpu.matmul %11, %10, %cst_6 {dimension_numbers = #tpu.dot_dimension_numbers<[1], [0], [0], [1], [0, 0, 1, 1], [], []>} : vector<256x128xbf16>, vector<128x128xbf16>, vector<256x128xf32> -> vector<256x128xf32>
    %13 = vector.extract_strided_slice %1 {offsets = [1, 0], sizes = [1, 128], strides = [1, 1]} : vector<16x128xf32> to vector<1x128xf32>
    %14 = vector.broadcast %13 : vector<1x128xf32> to vector<256x128xf32>
    %15 = arith.addf %12, %14 : vector<256x128xf32>
    %cst_7 = arith.constant 0.000000e+00 : f32
    %16 = vector.broadcast %cst_7 : f32 to vector<256x128xf32>
    %17 = arith.maximumf %15, %16 : vector<256x128xf32>
    %c288 = arith.constant 288 : index
    %c0_8 = arith.constant 0 : index
    %18 = vector.load %arg2[%c288, %c0_8] : memref<688x128xbf16, #tpu.memory_space<vmem>>, vector<128x128xbf16>
    %19 = arith.truncf %17 : vector<256x128xf32> to vector<256x128xbf16>
    %cst_9 = arith.constant dense<0.000000e+00> : vector<256x128xf32>
    %20 = tpu.matmul %19, %18, %cst_9 {dimension_numbers = #tpu.dot_dimension_numbers<[1], [0], [0], [1], [0, 0, 1, 1], [], []>} : vector<256x128xbf16>, vector<128x128xbf16>, vector<256x128xf32> -> vector<256x128xf32>
    %21 = vector.extract_strided_slice %1 {offsets = [2, 0], sizes = [1, 128], strides = [1, 1]} : vector<16x128xf32> to vector<1x128xf32>
    %22 = vector.broadcast %21 : vector<1x128xf32> to vector<256x128xf32>
    %23 = arith.addf %20, %22 : vector<256x128xf32>
    %cst_10 = arith.constant 0.000000e+00 : f32
    %24 = vector.broadcast %cst_10 : f32 to vector<256x128xf32>
    %25 = arith.maximumf %23, %24 : vector<256x128xf32>
    %c416 = arith.constant 416 : index
    %c0_11 = arith.constant 0 : index
    %26 = vector.load %arg2[%c416, %c0_11] : memref<688x128xbf16, #tpu.memory_space<vmem>>, vector<128x128xbf16>
    %27 = arith.truncf %25 : vector<256x128xf32> to vector<256x128xbf16>
    %cst_12 = arith.constant dense<0.000000e+00> : vector<256x128xf32>
    %28 = tpu.matmul %27, %26, %cst_12 {dimension_numbers = #tpu.dot_dimension_numbers<[1], [0], [0], [1], [0, 0, 1, 1], [], []>} : vector<256x128xbf16>, vector<128x128xbf16>, vector<256x128xf32> -> vector<256x128xf32>
    %29 = vector.extract_strided_slice %1 {offsets = [3, 0], sizes = [1, 128], strides = [1, 1]} : vector<16x128xf32> to vector<1x128xf32>
    %30 = vector.broadcast %29 : vector<1x128xf32> to vector<256x128xf32>
    %31 = arith.addf %28, %30 : vector<256x128xf32>
    %cst_13 = arith.constant 0.000000e+00 : f32
    %32 = vector.broadcast %cst_13 : f32 to vector<256x128xf32>
    %33 = arith.maximumf %31, %32 : vector<256x128xf32>
    %c544 = arith.constant 544 : index
    %c0_14 = arith.constant 0 : index
    %34 = vector.load %arg2[%c544, %c0_14] : memref<688x128xbf16, #tpu.memory_space<vmem>>, vector<128x128xbf16>
    %35 = arith.truncf %33 : vector<256x128xf32> to vector<256x128xbf16>
    %cst_15 = arith.constant dense<0.000000e+00> : vector<256x128xf32>
    %36 = tpu.matmul %35, %34, %cst_15 {dimension_numbers = #tpu.dot_dimension_numbers<[1], [0], [0], [1], [0, 0, 1, 1], [], []>} : vector<256x128xbf16>, vector<128x128xbf16>, vector<256x128xf32> -> vector<256x128xf32>
    %37 = vector.extract_strided_slice %1 {offsets = [4, 0], sizes = [1, 128], strides = [1, 1]} : vector<16x128xf32> to vector<1x128xf32>
    %38 = vector.broadcast %37 : vector<1x128xf32> to vector<256x128xf32>
    %39 = arith.addf %36, %38 : vector<256x128xf32>
    %40 = vector.extract_strided_slice %39 {offsets = [0, 0], sizes = [256, 8], strides = [1, 1]} : vector<256x128xf32> to vector<256x8xf32>
    %41 = math.tanh %40 : vector<256x8xf32>
    %c0_16 = arith.constant 0 : index
    %c0_17 = arith.constant 0 : index
    %42 = vector.load %arg3[%c0_16, %c0_17] : memref<256x8xf32, #tpu.memory_space<vmem>>, vector<256x8xf32>
    tpu.vector_store %arg3[%c0_16, %c0_17], %41 {strides = array<i32>} : memref<256x8xf32, #tpu.memory_space<vmem>>, vector<256x8xf32>,
    return
  }
  func.func @transform_0(%arg0: i32) -> (i32, i32) {
    %c0_i32 = arith.constant 0 : i32
    %c0_i32_0 = arith.constant 0 : i32
    return %arg0, %c0_i32 : i32, i32
  }
  func.func @transform_1(%arg0: i32) -> (i32, i32) {
    %c0_i32 = arith.constant 0 : i32
    %c0_i32_0 = arith.constant 0 : i32
    %c0_i32_1 = arith.constant 0 : i32
    return %c0_i32, %c0_i32_0 : i32, i32
  }
  func.func @transform_2(%arg0: i32) -> (i32, i32) {
    %c0_i32 = arith.constant 0 : i32
    %c0_i32_0 = arith.constant 0 : i32
    return %arg0, %c0_i32 : i32, i32
  }
}

</mosaic_0001>

<bundles_post_ra>
// kernel: tpu_custom_call.1
= control target key start
LH: loop header
LB: loop body
LE: loop exit
PB: predicated region body
PF: predicated region fallthrough
CT: control target
= control target key end

     0   :  { %s2430_s9 = smov 0   ;;  %s2883_s0 = inlined_call_operand.vmem [shape: bf16[768,160], index: 0, kind: input, shape index: {}]   ;;  %s2884_s1 = inlined_call_operand.vmem [shape: bf16[688,128], index: 1, kind: input, shape index: {}]   ;;  %s2885_s2 = inlined_call_operand.vmem [shape: f32[768,8], index: 2, kind: output, shape index: {}]  }
   0x1 LB: > { %s1852_s10 = sadd.s32 4294967295, %s2412_s9   ;;  %p1856_p0 = scmp.ge.s32.totalorder %s2412_s9, 1  ;;  %s2412_s9 = sphi %s2430_s9, %s12_s9  }
   0x2   : > { %p114_p1 = scmp.lt.s32.totalorder %s2412_s9, 4 }
   0x4   : > { %p115_p2 = pnand %p1856_p0, %p114_p1 }
   0x5   : > { %v2252_v0 = vld [vmem:[%s2884_s1] sm:$0xff] (!%p115_p2)   ;;  %v2414_v1 = vmov (!%p115_p2), 0   ;;  %s1857_s13 = sshll.u32 (!%p115_p2), %s1852_s10, 5  ;;  %v2253_v2 = vld [vmem:[%s2884_s1 + $0x8] sm:$0xff] (!%p115_p2)   ;;  %v2254_v3 = vld [vmem:[%s2884_s1 + $0x10] sm:$0xff] (!%p115_p2)   ;;  %vm413_vm0 = vcmask (!%p115_p2), 261120   ;;  %v205_v51 = vlaneseq (!%p115_p2) }
   0x6   : > { %118 = sbr.rel (%p115_p2) target bundleno = 1281 (0x501), region = 28  ;;  %462 = vmatprep.subr.bf16.mxu0 (!%p115_p2), %v2414_v1  ;;  %p138_p3 = scmp.lt.s32.totalorder (!%p115_p2), %s1857_s13, 95  ;;  %v2255_v4 = vld [vmem:[%s2884_s1 + $0x18] sm:$0xff] (!%p115_p2)   ;;  %v2256_v6 = vld [vmem:[%s2884_s1 + $0x20] sm:$0xff] (!%p115_p2)   ;;  %v2257_v7 = vld [vmem:[%s2884_s1 + $0x28] sm:$0xff] (!%p115_p2)   ;;  %vm1763_vm1 = vcmask (!%p115_p2), 64512  }
   0x7   : > { %463 = vmatpush1.bf16.msra.mxu0 (!%p115_p2), %v2252_v0  ;;  %v2258_v8 = vld [vmem:[%s2884_s1 + $0x30] sm:$0xff] (!%p115_p2)   ;;  %v2259_v9 = vld [vmem:[%s2884_s1 + $0x38] sm:$0xff] (!%p115_p2)   ;;  %v2260_v10 = vld [vmem:[%s2884_s1 + $0x40] sm:$0xff] (!%p115_p2)   ;;  %v2550_v52 = vshrl.u32 (!%p115_p2), %v205_v51, 7 }
   0x8   : > { %464 = vmatprep.subr.bf16.mxu0 (!%p115_p2), %v2414_v1  ;;  %v2310_v11 = vld [vmem:[%s2884_s1 + $0x50] sm:$0xff] (!%p115_p2)   ;;  %v2311_v12 = vld [vmem:[%s2884_s1 + $0x58] sm:$0xff] (!%p115_p2)   ;;  %v2261_v13 = vld [vmem:[%s2884_s1 + $0x48] sm:$0xff] (!%p115_p2)  }
   0x9   : > { %2051 = vmatprep.subr.bf16.mxu1 (!%p115_p2), %v2310_v11  ;;  %v2312_v16 = vld [vmem:[%s2884_s1 + $0x60] sm:$0xff] (!%p115_p2)   ;;  %v2313_v17 = vld [vmem:[%s2884_s1 + $0x68] sm:$0xff] (!%p115_p2)   ;;  %v2314_v38 = vld [vmem:[%s2884_s1 + $0x70] sm:$0xff] (!%p115_p2)   ;;  %v207_v55 = vsub.s32 (!%p115_p2), 0, %v2550_v52 }
   0xa   : > { %2052 = vmatpush3.bf16.msra.mxu1 (!%p115_p2), %v2310_v11  ;;  %v2315_v41 = vld [vmem:[%s2884_s1 + $0x78] sm:$0xff] (!%p115_p2)   ;;  %v2316_v42 = vld [vmem:[%s2884_s1 + $0x80] sm:$0xff] (!%p115_p2)   ;;  %v2317_v45 = vld [vmem:[%s2884_s1 + $0x88] sm:$0xff] (!%p115_p2)  }
   0xb   : > { %465 = vmatpush1.bf16.msra.mxu0 (!%p115_p2), %v2253_v2  ;;  %2053 = vmatprep.subr.bf16.mxu1 (!%p115_p2), %v2311_v12  ;;  %v151_v53 = vld [vmem:[%s2884_s1 + $0x150] sm:$0xf] (!%p115_p2) }
   0xc   : > { %466 = vmatprep.subr.bf16.mxu0 (!%p115_p2), %v2414_v1  ;;  %v2555_v54 = vunpack.c.l.bf16 (!%p115_p2), %v151_v53  ;;  %v2318_v60 = vld [vmem:[%s2884_s1 + $0x90] sm:$0xff] (!%p115_p2)  }
   0xd   : > { %s2887_s13 = smov (!%p138_p3, %s1857_s13), 95 }
   0xe   : > { %s1954_s18 = sshll.u32 %s2887_s13, 3  ;;  %2054 = vmatpush3.bf16.msra.mxu1 %v2311_v12  ;;  %v2559_v56 = vrot.slane %v2555_v54, %v207_v55  ;;  %v2319_v12 = vld [vmem:[%s2884_s1 + $0x98] sm:$0xff]  }
   0xf   : > { %s2455_s21 = scalar_lea.vmem %s2883_s0, %s1954_s18  ;;  %467 = vmatpush1.bf16.msra.mxu0 %v2254_v3  ;;  %2055 = vmatprep.subr.bf16.mxu1 %v2312_v16 }
  0x10   : > { %468 = vmatprep.subr.bf16.mxu0 %v2414_v1  ;;  %v2264_v5 = vld [vmem:[%s2455_s21 + $0x4] ss:$8 sps:$4 sm:$0xff]   ;;  %v2262_v14 = vld [vmem:[%s2455_s21] ss:$8 sps:$4 sm:$0xff]   ;;  %v2265_v15 = vld [vmem:[%s2455_s21 + $0x14] ss:$8 sps:$4 sm:$0xff]  }
  0x11   : > { %1904 = vmatprep.mubr.msk.bf16.mxu0 %vm413_vm0, %v2264_v5  ;;  %v2267_v18 = vld [vmem:[%s2455_s21 + $0x10] ss:$8 sps:$4 sm:$0xff]   ;;  %v2268_v19 = vld [vmem:[%s2455_s21 + $0x24] ss:$8 sps:$4 sm:$0xff]   ;;  %v2270_v20 = vld [vmem:[%s2455_s21 + $0x20] ss:$8 sps:$4 sm:$0xff]  }
  0x12   : > { %2056 = vmatpush3.bf16.msra.mxu1 %v2312_v16  ;;  %v2271_v21 = vld [vmem:[%s2455_s21 + $0x34] ss:$8 sps:$4 sm:$0xff]   ;;  %v2273_v22 = vld [vmem:[%s2455_s21 + $0x30] ss:$8 sps:$4 sm:$0xff]   ;;  %v2274_v23 = vld [vmem:[%s2455_s21 + $0x44] ss:$8 sps:$4 sm:$0xff]  }
  0x13   : > { %469 = vmatpush1.bf16.msra.mxu0 %v2255_v4  ;;  %2057 = vmatprep.subr.bf16.mxu1 %v2313_v17  ;;  %v2276_v24 = vld [vmem:[%s2455_s21 + $0x40] ss:$8 sps:$4 sm:$0xff]   ;;  %v2277_v25 = vld [vmem:[%s2455_s21 + $0x54] ss:$8 sps:$4 sm:$0xff]   ;;  %v2279_v26 = vld [vmem:[%s2455_s21 + $0x50] ss:$8 sps:$4 sm:$0xff]  }
  0x14   : > { %470 = vmatprep.subr.bf16.mxu0 %v2414_v1  ;;  %v2280_v27 = vld [vmem:[%s2455_s21 + $0x64] ss:$8 sps:$4 sm:$0xff]   ;;  %v2282_v28 = vld [vmem:[%s2455_s21 + $0x60] ss:$8 sps:$4 sm:$0xff]   ;;  %v2283_v29 = vld [vmem:[%s2455_s21 + $0x74] ss:$8 sps:$4 sm:$0xff]  }
  0x15   : > { %v2285_v30 = vld [vmem:[%s2455_s21 + $0x70] ss:$8 sps:$4 sm:$0xff]   ;;  %v2286_v31 = vld [vmem:[%s2455_s21 + $0x84] ss:$8 sps:$4 sm:$0xff]   ;;  %v2288_v32 = vld [vmem:[%s2455_s21 + $0x80] ss:$8 sps:$4 sm:$0xff]  }
  0x16   : > { %2058 = vmatpush3.bf16.msra.mxu1 %v2313_v17  ;;  %v2289_v33 = vld [vmem:[%s2455_s21 + $0x94] ss:$8 sps:$4 sm:$0xff]   ;;  %v2291_v34 = vld [vmem:[%s2455_s21 + $0x90] ss:$8 sps:$4 sm:$0xff]   ;;  %v2292_v35 = vld [vmem:[%s2455_s21 + $0xa4] ss:$8 sps:$4 sm:$0xff]  }
  0x17   : > { %471 = vmatpush1.bf16.msra.mxu0 %v2256_v6  ;;  %v2294_v36 = vld [vmem:[%s2455_s21 + $0xa0] ss:$8 sps:$4 sm:$0xff]   ;;  %v2295_v37 = vld [vmem:[%s2455_s21 + $0xb4] ss:$8 sps:$4 sm:$0xff]   ;;  %v2297_v39 = vld [vmem:[%s2455_s21 + $0xb0] ss:$8 sps:$4 sm:$0xff]   ;;  %2059 = vmatprep.subr.bf16.mxu1 %v2314_v38 }
  0x18   : > { %472 = vmatprep.subr.bf16.mxu0 %v2414_v1  ;;  %v2298_v40 = vld [vmem:[%s2455_s21 + $0xc4] ss:$8 sps:$4 sm:$0xff]   ;;  %v2300_v43 = vld [vmem:[%s2455_s21 + $0xc0] ss:$8 sps:$4 sm:$0xff]   ;;  %v2301_v44 = vld [vmem:[%s2455_s21 + $0xd4] ss:$8 sps:$4 sm:$0xff]  }
  0x19   : > { %v2303_v46 = vld [vmem:[%s2455_s21 + $0xd0] ss:$8 sps:$4 sm:$0xff]   ;;  %v2304_v47 = vld [vmem:[%s2455_s21 + $0xe4] ss:$8 sps:$4 sm:$0xff]   ;;  %v2306_v48 = vld [vmem:[%s2455_s21 + $0xe0] ss:$8 sps:$4 sm:$0xff]  }
  0x1a   : > { %2060 = vmatpush3.bf16.msra.mxu1 %v2314_v38  ;;  %v2307_v49 = vld [vmem:[%s2455_s21 + $0xf4] ss:$8 sps:$4 sm:$0xff]   ;;  %v2309_v50 = vld [vmem:[%s2455_s21 + $0xf0] ss:$8 sps:$4 sm:$0xff]   ;;  %s2786_s21 = scalar_lea.vmem %s2885_s2, %s1954_s18 }
  0x1b   : > { %473 = vmatpush1.bf16.msra.mxu0 %v2257_v7  ;;  %2061 = vmatprep.subr.bf16.mxu1 %v2315_v41 }
  0x1c   : > { %474 = vmatprep.subr.bf16.mxu0 %v2414_v1 }
  0x1e   : > { %2062 = vmatpush3.bf16.msra.mxu1 %v2315_v41 }
  0x1f   : > { %475 = vmatpush1.bf16.msra.mxu0 %v2258_v8  ;;  %2063 = vmatprep.subr.bf16.mxu1 %v2316_v42 }
  0x20   : > { %476 = vmatprep.subr.bf16.mxu0 %v2414_v1 }
  0x22   : > { %2064 = vmatpush3.bf16.msra.mxu1 %v2316_v42 }
  0x23   : > { %477 = vmatpush1.bf16.msra.mxu0 %v2259_v9  ;;  %2065 = vmatprep.subr.bf16.mxu1 %v2317_v45 }
  0x24   : > { %478 = vmatprep.subr.bf16.mxu0 %v2414_v1 }
  0x26   : > { %2066 = vmatpush3.bf16.msra.mxu1 %v2317_v45 }
  0x27   : > { %479 = vmatpush1.bf16.msra.mxu0 %v2260_v10  ;;  %2099 = vmatprep.subr.bf16.mxu1 %v2318_v60 }
  0x28   : > { %480 = vmatprep.subr.bf16.mxu0 %v2414_v1 }
  0x2b   : > { %481 = vmatpush1.bf16.msra.mxu0 %v2261_v13 }
  0x2e   : > { %495 = vmatmul.mubr.bf16.vlgmr.msra.gmra.mrb[0].mxu0 %v2262_v14 }
  0x2f   : > { %1905 = vmatprep.mubr.msk.bf16.mxu0 %vm413_vm0, %v2265_v15 }
  0x36   : > { %503 = vmatmul.mubr.bf16.gmra.mrb[4].mxu0 %v2267_v18 }
  0x37   : > { %1906 = vmatprep.mubr.msk.bf16.mxu0 %vm413_vm0, %v2268_v19  ;;  %v2320_v19 = vld [vmem:[%s2884_s1 + $0xa0] sm:$0xff]  }
  0x3e   : > { %511 = vmatmul.mubr.bf16.gmra.mrb[8].mxu0 %v2270_v20 }
  0x3f   : > { %1907 = vmatprep.mubr.msk.bf16.mxu0 %vm413_vm0, %v2271_v21 }
  0x46   : > { %519 = vmatmul.mubr.bf16.gmra.mrb[12].mxu0 %v2273_v22 }
  0x47   : > { %1908 = vmatprep.mubr.msk.bf16.mxu0 %vm413_vm0, %v2274_v23  ;;  %v2321_v23 = vld [vmem:[%s2884_s1 + $0xa8] sm:$0xff]  }
  0x4e   : > { %527 = vmatmul.mubr.bf16.gmra.mrb[16].mxu0 %v2276_v24 }
  0x4f   : > { %1909 = vmatprep.mubr.msk.bf16.mxu0 %vm413_vm0, %v2277_v25 }
  0x56   : > { %535 = vmatmul.mubr.bf16.gmra.mrb[20].mxu0 %v2279_v26 }
  0x57   : > { %1910 = vmatprep.mubr.msk.bf16.mxu0 %vm413_vm0, %v2280_v27 }
  0x5e   : > { %543 = vmatmul.mubr.bf16.gmra.mrb[24].mxu0 %v2282_v28 }
  0x5f   : > { %1911 = vmatprep.mubr.msk.bf16.mxu0 %vm413_vm0, %v2283_v29 }
  0x66   : > { %551 = vmatmul.mubr.bf16.gmra.mrb[28].mxu0 %v2285_v30  ;;  %v2322_v30 = vld [vmem:[%s2884_s1 + $0xb0] sm:$0xff]  }
  0x67   : > { %1912 = vmatprep.mubr.msk.bf16.mxu0 %vm413_vm0, %v2286_v31 }
  0x6e   : > { %559 = vmatmul.mubr.bf16.gmra.mrb[32].mxu0 %v2288_v32 }
  0x6f   : > { %1913 = vmatprep.mubr.msk.bf16.mxu0 %vm413_vm0, %v2289_v33 }
  0x76   : > { %567 = vmatmul.mubr.bf16.gmra.mrb[36].mxu0 %v2291_v34  ;;  %v2323_v34 = vld [vmem:[%s2884_s1 + $0xb8] sm:$0xff]  }
  0x77   : > { %1914 = vmatprep.mubr.msk.bf16.mxu0 %vm413_vm0, %v2292_v35 }
  0x7e   : > { %575 = vmatmul.mubr.bf16.gmra.mrb[40].mxu0 %v2294_v36 }
  0x7f   : > { %1915 = vmatprep.mubr.msk.bf16.mxu0 %vm413_vm0, %v2295_v37 }
  0x86   : > { %583 = vmatmul.mubr.bf16.gmra.mrb[44].mxu0 %v2297_v39 }
  0x87   : > { %1916 = vmatprep.mubr.msk.bf16.mxu0 %vm413_vm0, %v2298_v40 }
  0x8e   : > { %591 = vmatmul.mubr.bf16.gmra.mrb[48].mxu0 %v2300_v43 }
  0x8f   : > { %1917 = vmatprep.mubr.msk.bf16.mxu0 %vm413_vm0, %v2301_v44 }
  0x96   : > { %599 = vmatmul.mubr.bf16.gmra.mrb[52].mxu0 %v2303_v46 }
  0x97   : > { %1918 = vmatprep.mubr.msk.bf16.mxu0 %vm413_vm0, %v2304_v47 }
  0x9e   : > { %607 = vmatmul.mubr.bf16.gmra.mrb[56].mxu0 %v2306_v48 }
  0x9f   : > { %1919 = vmatprep.mubr.msk.bf16.mxu0 %vm413_vm0, %v2307_v49 }
  0xa6   : > { %615 = vmatmul.mubr.bf16.gmra.mrb[60].mxu0 %v2309_v50 }
 0x101   : > { %v496_v57 = vpop.f32.mrb[0].mxu0 }
 0x102   : > { %v497_v58 = vadd.f32 %v496_v57, %v2559_v56  ;;  %v498_v59 = vpop.f32.mrb[1].mxu0 }
 0x103   : > { %v499_v61 = vpop.f32.mrb[2].mxu0 }
 0x104   : > { %v500_v62 = vadd.f32 %v499_v61, %v2559_v56  ;;  %v501_v63 = vpop.f32.mrb[3].mxu0  ;;  %v623_v0 = vmax.f32 %v497_v58, 0.0 }
 0x106   : > { %v624_v1 = vmax.f32 %v500_v62, 0.0 }
 0x108   : > { %v671_v2 = vpack.c.bf16 %v624_v1, %v623_v0 }
 0x109   : > { %v504_v3 = vpop.f32.mrb[4].mxu0 }
 0x10a   : > { %v505_v4 = vadd.f32 %v504_v3, %v2559_v56  ;;  %v506_v5 = vpop.f32.mrb[5].mxu0  ;;  %2067 = vmatprep.mubr.bf16.mxu1 %v671_v2 }
 0x10b   : > { %v507_v6 = vpop.f32.mrb[6].mxu0 }
 0x10c   : > { %v508_v7 = vadd.f32 %v507_v6, %v2559_v56  ;;  %v509_v8 = vpop.f32.mrb[7].mxu0  ;;  %v625_v9 = vmax.f32 %v505_v4, 0.0 }
 0x10e   : > { %v626_v10 = vmax.f32 %v508_v7, 0.0 }
 0x110   : > { %v672_v11 = vpack.c.bf16 %v626_v10, %v625_v9 }
 0x111   : > { %v512_v13 = vpop.f32.mrb[8].mxu0 }
 0x112   : > { %v513_v14 = vadd.f32 %v512_v13, %v2559_v56  ;;  %v514_v15 = vpop.f32.mrb[9].mxu0  ;;  %2068 = vmatmul.mubr.bf16.vlgmr.msra.gmra.mrb[0].mxu1 %v672_v11 }
 0x113   : > { %v515_v16 = vpop.f32.mrb[10].mxu0  ;;  %2100 = vmatpush3.bf16.msra.mxu1 %v2318_v60 }
 0x114   : > { %v516_v17 = vadd.f32 %v515_v16, %v2559_v56  ;;  %v517_v18 = vpop.f32.mrb[11].mxu0  ;;  %2101 = vmatprep.subr.bf16.mxu1 %v2319_v12  ;;  %v627_v20 = vmax.f32 %v513_v14, 0.0 }
 0x116   : > { %v628_v21 = vmax.f32 %v516_v17, 0.0 }
 0x117   : > { %2102 = vmatpush3.bf16.msra.mxu1 %v2319_v12 }
 0x118   : > { %v673_v22 = vpack.c.bf16 %v628_v21, %v627_v20  ;;  %2103 = vmatprep.subr.bf16.mxu1 %v2320_v19 }
 0x119   : > { %v520_v24 = vpop.f32.mrb[12].mxu0 }
 0x11a   : > { %v521_v25 = vadd.f32 %v520_v24, %v2559_v56  ;;  %v522_v26 = vpop.f32.mrb[13].mxu0  ;;  %2071 = vmatprep.mubr.bf16.mxu1 %v673_v22 }
 0x11b   : > { %v523_v27 = vpop.f32.mrb[14].mxu0  ;;  %2104 = vmatpush3.bf16.msra.mxu1 %v2320_v19 }
 0x11c   : > { %v524_v28 = vadd.f32 %v523_v27, %v2559_v56  ;;  %v525_v29 = vpop.f32.mrb[15].mxu0  ;;  %2105 = vmatprep.subr.bf16.mxu1 %v2321_v23  ;;  %v629_v31 = vmax.f32 %v521_v25, 0.0 }
 0x11e   : > { %v630_v32 = vmax.f32 %v524_v28, 0.0 }
 0x11f   : > { %2106 = vmatpush3.bf16.msra.mxu1 %v2321_v23 }
 0x120   : > { %v674_v33 = vpack.c.bf16 %v630_v32, %v629_v31  ;;  %2107 = vmatprep.subr.bf16.mxu1 %v2322_v30 }
 0x121   : > { %v528_v35 = vpop.f32.mrb[16].mxu0 }
 0x122   : > { %v529_v36 = vadd.f32 %v528_v35, %v2559_v56  ;;  %v530_v37 = vpop.f32.mrb[17].mxu0  ;;  %2072 = vmatmul.mubr.bf16.gmra.mrb[4].mxu1 %v674_v33 }
 0x123   : > { %v531_v38 = vpop.f32.mrb[18].mxu0  ;;  %2108 = vmatpush3.bf16.msra.mxu1 %v2322_v30 }
 0x124   : > { %v532_v39 = vadd.f32 %v531_v38, %v2559_v56  ;;  %v533_v40 = vpop.f32.mrb[19].mxu0  ;;  %2109 = vmatprep.subr.bf16.mxu1 %v2323_v34  ;;  %v631_v41 = vmax.f32 %v529_v36, 0.0 }
 0x126   : > { %v632_v42 = vmax.f32 %v532_v39, 0.0 }
 0x127   : > { %2110 = vmatpush3.bf16.msra.mxu1 %v2323_v34 }
 0x128   : > { %v675_v43 = vpack.c.bf16 %v632_v42, %v631_v41 }
 0x129   : > { %v536_v44 = vpop.f32.mrb[20].mxu0 }
 0x12a   : > { %v537_v45 = vadd.f32 %v536_v44, %v2559_v56  ;;  %v538_v46 = vpop.f32.mrb[21].mxu0  ;;  %2075 = vmatprep.mubr.bf16.mxu1 %v675_v43 }
 0x12b   : > { %v539_v47 = vpop.f32.mrb[22].mxu0 }
 0x12c   : > { %v540_v48 = vadd.f32 %v539_v47, %v2559_v56  ;;  %v541_v49 = vpop.f32.mrb[23].mxu0  ;;  %v633_v50 = vmax.f32 %v537_v45, 0.0 }
 0x12e   : > { %v634_v51 = vmax.f32 %v540_v48, 0.0 }
 0x130   : > { %v676_v53 = vpack.c.bf16 %v634_v51, %v633_v50 }
 0x131   : > { %v544_v55 = vpop.f32.mrb[24].mxu0 }
 0x132   : > { %v545_v57 = vadd.f32 %v544_v55, %v2559_v56  ;;  %v546_v58 = vpop.f32.mrb[25].mxu0  ;;  %2076 = vmatmul.mubr.bf16.gmra.mrb[8].mxu1 %v676_v53 }
 0x133   : > { %v547_v59 = vpop.f32.mrb[26].mxu0 }
 0x134   : > { %v548_v60 = vadd.f32 %v547_v59, %v2559_v56  ;;  %v549_v61 = vpop.f32.mrb[27].mxu0  ;;  %v635_v62 = vmax.f32 %v545_v57, 0.0  ;;  %v2324_v57 = vld [vmem:[%s2884_s1 + $0xc0] sm:$0xff]  }
 0x135   : > { %2111 = vmatprep.subr.bf16.mxu1 %v2324_v57 }
 0x136   : > { %v636_v63 = vmax.f32 %v548_v60, 0.0  ;;  %2112 = vmatpush3.bf16.msra.mxu1 %v2324_v57 }
 0x138   : > { %v677_v0 = vpack.c.bf16 %v636_v63, %v635_v62  ;;  %v2325_v62 = vld [vmem:[%s2884_s1 + $0xc8] sm:$0xff]  }
 0x139   : > { %v552_v1 = vpop.f32.mrb[28].mxu0  ;;  %2113 = vmatprep.subr.bf16.mxu1 %v2325_v62 }
 0x13a   : > { %v553_v2 = vadd.f32 %v552_v1, %v2559_v56  ;;  %v554_v3 = vpop.f32.mrb[29].mxu0  ;;  %2079 = vmatprep.mubr.bf16.mxu1 %v677_v0  ;;  %2114 = vmatpush3.bf16.msra.mxu1 %v2325_v62 }
 0x13b   : > { %v555_v4 = vpop.f32.mrb[30].mxu0 }
 0x13c   : > { %v556_v5 = vadd.f32 %v555_v4, %v2559_v56  ;;  %v557_v6 = vpop.f32.mrb[31].mxu0  ;;  %v637_v7 = vmax.f32 %v553_v2, 0.0 }
 0x13e   : > { %v638_v8 = vmax.f32 %v556_v5, 0.0 }
 0x140   : > { %v678_v9 = vpack.c.bf16 %v638_v8, %v637_v7 }
 0x141   : > { %v560_v10 = vpop.f32.mrb[32].mxu0 }
 0x142   : > { %v561_v11 = vadd.f32 %v560_v10, %v2559_v56  ;;  %v562_v12 = vpop.f32.mrb[33].mxu0  ;;  %2080 = vmatmul.mubr.bf16.gmra.mrb[12].mxu1 %v678_v9 }
 0x143   : > { %v563_v13 = vpop.f32.mrb[34].mxu0 }
 0x144   : > { %v564_v14 = vadd.f32 %v563_v13, %v2559_v56  ;;  %v565_v15 = vpop.f32.mrb[35].mxu0  ;;  %v639_v16 = vmax.f32 %v561_v11, 0.0 }
 0x146   : > { %v640_v17 = vmax.f32 %v564_v14, 0.0 }
 0x148   : > { %v679_v18 = vpack.c.bf16 %v640_v17, %v639_v16 }
 0x149   : > { %v568_v19 = vpop.f32.mrb[36].mxu0 }
 0x14a   : > { %v569_v20 = vadd.f32 %v568_v19, %v2559_v56  ;;  %v570_v21 = vpop.f32.mrb[37].mxu0  ;;  %2083 = vmatprep.mubr.bf16.mxu1 %v679_v18 }
 0x14b   : > { %v571_v22 = vpop.f32.mrb[38].mxu0 }
 0x14c   : > { %v572_v23 = vadd.f32 %v571_v22, %v2559_v56  ;;  %v573_v24 = vpop.f32.mrb[39].mxu0  ;;  %v641_v25 = vmax.f32 %v569_v20, 0.0 }
 0x14d   : > { %v2326_v24 = vld [vmem:[%s2884_s1 + $0xd0] sm:$0xff]  }
 0x14e   : > { %v642_v26 = vmax.f32 %v572_v23, 0.0  ;;  %v689_v23 = vsub.s32 1, %v2550_v52  ;;  %2147 = vmatprep.subr.bf16.mxu1 %v2326_v24 }
 0x150   : > { %v680_v27 = vpack.c.bf16 %v642_v26, %v641_v25  ;;  %v2622_v25 = vrot.slane %v2555_v54, %v689_v23 }
 0x151   : > { %v576_v28 = vpop.f32.mrb[40].mxu0 }
 0x152   : > { %v577_v29 = vadd.f32 %v576_v28, %v2559_v56  ;;  %v578_v30 = vpop.f32.mrb[41].mxu0  ;;  %2084 = vmatmul.mubr.bf16.gmra.mrb[16].mxu1 %v680_v27 }
 0x153   : > { %v579_v31 = vpop.f32.mrb[42].mxu0 }
 0x154   : > { %v580_v32 = vadd.f32 %v579_v31, %v2559_v56  ;;  %v581_v33 = vpop.f32.mrb[43].mxu0  ;;  %v643_v34 = vmax.f32 %v577_v29, 0.0 }
 0x156   : > { %v644_v35 = vmax.f32 %v580_v32, 0.0 }
 0x158   : > { %v681_v36 = vpack.c.bf16 %v644_v35, %v643_v34 }
 0x159   : > { %v584_v37 = vpop.f32.mrb[44].mxu0 }
 0x15a   : > { %v585_v38 = vadd.f32 %v584_v37, %v2559_v56  ;;  %v586_v39 = vpop.f32.mrb[45].mxu0  ;;  %2087 = vmatprep.mubr.bf16.mxu1 %v681_v36 }
 0x15b   : > { %v587_v40 = vpop.f32.mrb[46].mxu0  ;;  %v2327_v39 = vld [vmem:[%s2884_s1 + $0xd8] sm:$0xff]  }
 0x15c   : > { %v588_v41 = vadd.f32 %v587_v40, %v2559_v56  ;;  %v589_v42 = vpop.f32.mrb[47].mxu0  ;;  %v645_v43 = vmax.f32 %v585_v38, 0.0  ;;  %v2328_v40 = vld [vmem:[%s2884_s1 + $0xe0] sm:$0xff]  }
 0x15e   : > { %v646_v44 = vmax.f32 %v588_v41, 0.0 }
 0x160   : > { %v682_v45 = vpack.c.bf16 %v646_v44, %v645_v43  ;;  %v2329_v44 = vld [vmem:[%s2884_s1 + $0xe8] sm:$0xff]  }
 0x161   : > { %v592_v46 = vpop.f32.mrb[48].mxu0 }
 0x162   : > { %v593_v47 = vadd.f32 %v592_v46, %v2559_v56  ;;  %v594_v48 = vpop.f32.mrb[49].mxu0  ;;  %2088 = vmatmul.mubr.bf16.gmra.mrb[20].mxu1 %v682_v45 }
 0x163   : > { %v595_v49 = vpop.f32.mrb[50].mxu0 }
 0x164   : > { %v596_v50 = vadd.f32 %v595_v49, %v2559_v56  ;;  %v597_v51 = vpop.f32.mrb[51].mxu0  ;;  %v647_v53 = vmax.f32 %v593_v47, 0.0 }
 0x166   : > { %v648_v55 = vmax.f32 %v596_v50, 0.0 }
 0x168   : > { %v683_v58 = vpack.c.bf16 %v648_v55, %v647_v53  ;;  %v2330_v53 = vld [vmem:[%s2884_s1 + $0xf0] sm:$0xff]  }
 0x169   : > { %v600_v59 = vpop.f32.mrb[52].mxu0 }
 0x16a   : > { %v601_v60 = vadd.f32 %v600_v59, %v2559_v56  ;;  %v602_v61 = vpop.f32.mrb[53].mxu0  ;;  %2091 = vmatprep.mubr.bf16.mxu1 %v683_v58 }
 0x16b   : > { %v603_v63 = vpop.f32.mrb[54].mxu0 }
 0x16c   : > { %v604_v0 = vadd.f32 %v603_v63, %v2559_v56  ;;  %v605_v1 = vpop.f32.mrb[55].mxu0  ;;  %v649_v2 = vmax.f32 %v601_v60, 0.0  ;;  %v2331_v60 = vld [vmem:[%s2884_s1 + $0xf8] sm:$0xff]  }
 0x16e   : > { %v650_v3 = vmax.f32 %v604_v0, 0.0 }
 0x170   : > { %v684_v4 = vpack.c.bf16 %v650_v3, %v649_v2 }
 0x171   : > { %v608_v5 = vpop.f32.mrb[56].mxu0 }
 0x172   : > { %v609_v6 = vadd.f32 %v608_v5, %v2559_v56  ;;  %v610_v7 = vpop.f32.mrb[57].mxu0  ;;  %2092 = vmatmul.mubr.bf16.gmra.mrb[24].mxu1 %v684_v4 }
 0x173   : > { %v611_v8 = vpop.f32.mrb[58].mxu0 }
 0x174   : > { %v612_v9 = vadd.f32 %v611_v8, %v2559_v56  ;;  %v613_v10 = vpop.f32.mrb[59].mxu0  ;;  %v651_v11 = vmax.f32 %v609_v6, 0.0 }
 0x176   : > { %v652_v12 = vmax.f32 %v612_v9, 0.0 }
 0x178   : > { %v685_v13 = vpack.c.bf16 %v652_v12, %v651_v11 }
 0x179   : > { %v616_v14 = vpop.f32.mrb[60].mxu0 }
 0x17a   : > { %v617_v15 = vadd.f32 %v616_v14, %v2559_v56  ;;  %v618_v16 = vpop.f32.mrb[61].mxu0  ;;  %2095 = vmatprep.mubr.bf16.mxu1 %v685_v13 }
 0x17b   : > { %v619_v17 = vpop.f32.mrb[62].mxu0 }
 0x17c   : > { %v620_v18 = vadd.f32 %v619_v17, %v2559_v56  ;;  %v621_v19 = vpop.f32.mrb[63].mxu0  ;;  %v653_v20 = vmax.f32 %v617_v15, 0.0 }
 0x17e   : > { %v654_v21 = vmax.f32 %v620_v18, 0.0 }
 0x180   : > { %v686_v22 = vpack.c.bf16 %v654_v21, %v653_v20 }
 0x182   : > { %2096 = vmatmul.mubr.bf16.gmra.mrb[28].mxu1 %v686_v22 }
 0x1e5   : > { %v2069_v26 = vpop.f32.mrb[0].mxu1 }
 0x1e6   : > { %v782_v27 = vadd.f32 %v2069_v26, %v2622_v25  ;;  %v773_v28 = vpop.f32.mrb[1].mxu1 }
 0x1e7   : > { %v774_v56 = vadd.f32 %v773_v28, %v2622_v25  ;;  %v2070_v29 = vpop.f32.mrb[2].mxu1 }
 0x1e8   : > { %v785_v30 = vadd.f32 %v2070_v29, %v2622_v25  ;;  %v776_v31 = vpop.f32.mrb[3].mxu1  ;;  %v902_v33 = vmax.f32 %v782_v27, 0.0 }
 0x1e9   : > { %v777_v32 = vadd.f32 %v776_v31, %v2622_v25  ;;  %v900_v35 = vmax.f32 %v774_v56, 0.0 }
 0x1ea   : > { %v903_v34 = vmax.f32 %v785_v30, 0.0 }
 0x1eb   : > { %v901_v36 = vmax.f32 %v777_v32, 0.0 }
 0x1ec   : > { %v949_v37 = vpack.c.bf16 %v903_v34, %v902_v33 }
 0x1ed   : > { %v948_v38 = vpack.c.bf16 %v901_v36, %v900_v35 }
 0x1ef   : > { %2115 = vmatprep.mubr.bf16.mxu1 %v948_v38 }
 0x1f0   : > { %2116 = vmatmul.mubr.bf16.vlgmr.msra.gmra.mrb[32].mxu1 %v949_v37 }
 0x1f1   : > { %2148 = vmatpush3.bf16.msra.mxu1 %v2326_v24 }
 0x1f2   : > { %2149 = vmatprep.subr.bf16.mxu1 %v2327_v39 }
 0x1f5   : > { %v2073_v41 = vpop.f32.mrb[4].mxu1  ;;  %2150 = vmatpush3.bf16.msra.mxu1 %v2327_v39 }
 0x1f6   : > { %v798_v42 = vadd.f32 %v2073_v41, %v2622_v25  ;;  %v789_v43 = vpop.f32.mrb[5].mxu1  ;;  %2151 = vmatprep.subr.bf16.mxu1 %v2328_v40 }
 0x1f7   : > { %v790_v45 = vadd.f32 %v789_v43, %v2622_v25  ;;  %v2074_v46 = vpop.f32.mrb[6].mxu1 }
 0x1f8   : > { %v801_v47 = vadd.f32 %v2074_v46, %v2622_v25  ;;  %v792_v48 = vpop.f32.mrb[7].mxu1  ;;  %v906_v50 = vmax.f32 %v798_v42, 0.0 }
 0x1f9   : > { %v793_v49 = vadd.f32 %v792_v48, %v2622_v25  ;;  %2152 = vmatpush3.bf16.msra.mxu1 %v2328_v40  ;;  %v904_v55 = vmax.f32 %v790_v45, 0.0 }
 0x1fa   : > { %v907_v51 = vmax.f32 %v801_v47, 0.0  ;;  %2153 = vmatprep.subr.bf16.mxu1 %v2329_v44 }
 0x1fb   : > { %v905_v57 = vmax.f32 %v793_v49, 0.0 }
 0x1fc   : > { %v951_v58 = vpack.c.bf16 %v907_v51, %v906_v50 }
 0x1fd   : > { %v950_v59 = vpack.c.bf16 %v905_v57, %v904_v55  ;;  %2154 = vmatpush3.bf16.msra.mxu1 %v2329_v44  ;;  %v2332_v55 = vld [vmem:[%s2884_s1 + $0x100] sm:$0xff]  }
 0x1fe   : > { %2155 = vmatprep.subr.bf16.mxu1 %v2330_v53 }
 0x1ff   : > { %2119 = vmatprep.mubr.bf16.mxu1 %v950_v59 }
 0x200   : > { %2120 = vmatmul.mubr.bf16.gmra.mrb[36].mxu1 %v951_v58 }
 0x201   : > { %2156 = vmatpush3.bf16.msra.mxu1 %v2330_v53 }
 0x202   : > { %2157 = vmatprep.subr.bf16.mxu1 %v2331_v60 }
 0x205   : > { %v2077_v61 = vpop.f32.mrb[8].mxu1  ;;  %2158 = vmatpush3.bf16.msra.mxu1 %v2331_v60 }
 0x206   : > { %v814_v62 = vadd.f32 %v2077_v61, %v2622_v25  ;;  %v805_v63 = vpop.f32.mrb[9].mxu1  ;;  %2159 = vmatprep.subr.bf16.mxu1 %v2332_v55 }
 0x207   : > { %v806_v0 = vadd.f32 %v805_v63, %v2622_v25  ;;  %v2078_v1 = vpop.f32.mrb[10].mxu1 }
 0x208   : > { %v817_v2 = vadd.f32 %v2078_v1, %v2622_v25  ;;  %v808_v3 = vpop.f32.mrb[11].mxu1  ;;  %v910_v5 = vmax.f32 %v814_v62, 0.0 }
 0x209   : > { %v809_v4 = vadd.f32 %v808_v3, %v2622_v25  ;;  %v908_v7 = vmax.f32 %v806_v0, 0.0  ;;  %2160 = vmatpush3.bf16.msra.mxu1 %v2332_v55  ;;  %v2333_v0 = vld [vmem:[%s2884_s1 + $0x108] sm:$0xff]  }
 0x20a   : > { %v911_v6 = vmax.f32 %v817_v2, 0.0  ;;  %2161 = vmatprep.subr.bf16.mxu1 %v2333_v0 }
 0x20b   : > { %v909_v8 = vmax.f32 %v809_v4, 0.0 }
 0x20c   : > { %v953_v9 = vpack.c.bf16 %v911_v6, %v910_v5 }
 0x20d   : > { %v952_v10 = vpack.c.bf16 %v909_v8, %v908_v7  ;;  %2162 = vmatpush3.bf16.msra.mxu1 %v2333_v0 }
 0x20f   : > { %2123 = vmatprep.mubr.bf16.mxu1 %v952_v10 }
 0x210   : > { %2124 = vmatmul.mubr.bf16.gmra.mrb[40].mxu1 %v953_v9 }
 0x215   : > { %v2081_v11 = vpop.f32.mrb[12].mxu1 }
 0x216   : > { %v830_v12 = vadd.f32 %v2081_v11, %v2622_v25  ;;  %v821_v13 = vpop.f32.mrb[13].mxu1 }
 0x217   : > { %v822_v14 = vadd.f32 %v821_v13, %v2622_v25  ;;  %v2082_v15 = vpop.f32.mrb[14].mxu1 }
 0x218   : > { %v833_v16 = vadd.f32 %v2082_v15, %v2622_v25  ;;  %v824_v17 = vpop.f32.mrb[15].mxu1  ;;  %v914_v19 = vmax.f32 %v830_v12, 0.0 }
 0x219   : > { %v825_v18 = vadd.f32 %v824_v17, %v2622_v25  ;;  %v912_v21 = vmax.f32 %v822_v14, 0.0 }
 0x21a   : > { %v915_v20 = vmax.f32 %v833_v16, 0.0 }
 0x21b   : > { %v913_v22 = vmax.f32 %v825_v18, 0.0 }
 0x21c   : > { %v955_v23 = vpack.c.bf16 %v915_v20, %v914_v19 }
 0x21d   : > { %v954_v24 = vpack.c.bf16 %v913_v22, %v912_v21  ;;  %v966_v22 = vsub.s32 2, %v2550_v52 }
 0x21f   : > { %2127 = vmatprep.mubr.bf16.mxu1 %v954_v24  ;;  %v2335_v24 = vld [vmem:[%s2884_s1 + $0x118] sm:$0xff]  }
 0x220   : > { %2128 = vmatmul.mubr.bf16.gmra.mrb[44].mxu1 %v955_v23  ;;  %v2334_v23 = vld [vmem:[%s2884_s1 + $0x110] sm:$0xff]  }
 0x221   : > { %2195 = vmatprep.subr.bf16.mxu0 %v2334_v23 }
 0x222   : > { %2196 = vmatpush3.bf16.msra.mxu0 %v2334_v23 }
 0x223   : > { %2197 = vmatprep.subr.bf16.mxu0 %v2335_v24 }
 0x225   : > { %v2085_v26 = vpop.f32.mrb[16].mxu1 }
 0x226   : > { %v846_v27 = vadd.f32 %v2085_v26, %v2622_v25  ;;  %v837_v28 = vpop.f32.mrb[17].mxu1  ;;  %v2336_v26 = vld [vmem:[%s2884_s1 + $0x120] sm:$0xff]   ;;  %2198 = vmatpush3.bf16.msra.mxu0 %v2335_v24 }
 0x227   : > { %v838_v56 = vadd.f32 %v837_v28, %v2622_v25  ;;  %v2086_v29 = vpop.f32.mrb[18].mxu1  ;;  %2199 = vmatprep.subr.bf16.mxu0 %v2336_v26 }
 0x228   : > { %v849_v30 = vadd.f32 %v2086_v29, %v2622_v25  ;;  %v840_v31 = vpop.f32.mrb[19].mxu1  ;;  %v918_v33 = vmax.f32 %v846_v27, 0.0 }
 0x229   : > { %v841_v32 = vadd.f32 %v840_v31, %v2622_v25  ;;  %v916_v35 = vmax.f32 %v838_v56, 0.0 }
 0x22a   : > { %v919_v34 = vmax.f32 %v849_v30, 0.0  ;;  %2200 = vmatpush3.bf16.msra.mxu0 %v2336_v26 }
 0x22b   : > { %v917_v36 = vmax.f32 %v841_v32, 0.0 }
 0x22c   : > { %v957_v37 = vpack.c.bf16 %v919_v34, %v918_v33  ;;  %v2337_v33 = vld [vmem:[%s2884_s1 + $0x128] sm:$0xff]  }
 0x22d   : > { %v956_v38 = vpack.c.bf16 %v917_v36, %v916_v35  ;;  %2201 = vmatprep.subr.bf16.mxu0 %v2337_v33 }
 0x22e   : > { %2202 = vmatpush3.bf16.msra.mxu0 %v2337_v33 }
 0x22f   : > { %2131 = vmatprep.mubr.bf16.mxu1 %v956_v38 }
 0x230   : > { %2132 = vmatmul.mubr.bf16.gmra.mrb[48].mxu1 %v957_v37 }
 0x235   : > { %v2089_v39 = vpop.f32.mrb[20].mxu1 }
 0x236   : > { %v862_v40 = vadd.f32 %v2089_v39, %v2622_v25  ;;  %v853_v41 = vpop.f32.mrb[21].mxu1 }
 0x237   : > { %v854_v42 = vadd.f32 %v853_v41, %v2622_v25  ;;  %v2090_v43 = vpop.f32.mrb[22].mxu1 }
 0x238   : > { %v865_v44 = vadd.f32 %v2090_v43, %v2622_v25  ;;  %v856_v45 = vpop.f32.mrb[23].mxu1  ;;  %v922_v47 = vmax.f32 %v862_v40, 0.0  ;;  %v2338_v40 = vld [vmem:[%s2884_s1 + $0x130] sm:$0xff]  }
 0x239   : > { %v857_v46 = vadd.f32 %v856_v45, %v2622_v25  ;;  %v920_v49 = vmax.f32 %v854_v42, 0.0  ;;  %2203 = vmatprep.subr.bf16.mxu0 %v2338_v40  ;;  %v2339_v42 = vld [vmem:[%s2884_s1 + $0x138] sm:$0xff]  }
 0x23a   : > { %v923_v48 = vmax.f32 %v865_v44, 0.0  ;;  %2204 = vmatpush3.bf16.msra.mxu0 %v2338_v40 }
 0x23b   : > { %v921_v50 = vmax.f32 %v857_v46, 0.0  ;;  %2205 = vmatprep.subr.bf16.mxu0 %v2339_v42 }
 0x23c   : > { %v959_v51 = vpack.c.bf16 %v923_v48, %v922_v47 }
 0x23d   : > { %v958_v53 = vpack.c.bf16 %v921_v50, %v920_v49 }
 0x23e   : > { %2206 = vmatpush3.bf16.msra.mxu0 %v2339_v42 }
 0x23f   : > { %2135 = vmatprep.mubr.bf16.mxu1 %v958_v53 }
 0x240   : > { %2136 = vmatmul.mubr.bf16.gmra.mrb[52].mxu1 %v959_v51 }
 0x245   : > { %v2093_v57 = vpop.f32.mrb[24].mxu1 }
 0x246   : > { %v878_v58 = vadd.f32 %v2093_v57, %v2622_v25  ;;  %v869_v59 = vpop.f32.mrb[25].mxu1 }
 0x247   : > { %v870_v60 = vadd.f32 %v869_v59, %v2622_v25  ;;  %v2094_v61 = vpop.f32.mrb[26].mxu1 }
 0x248   : > { %v881_v62 = vadd.f32 %v2094_v61, %v2622_v25  ;;  %v872_v63 = vpop.f32.mrb[27].mxu1  ;;  %v926_v2 = vmax.f32 %v878_v58, 0.0 }
 0x249   : > { %v873_v1 = vadd.f32 %v872_v63, %v2622_v25  ;;  %v924_v4 = vmax.f32 %v870_v60, 0.0 }
 0x24a   : > { %v927_v3 = vmax.f32 %v881_v62, 0.0 }
 0x24b   : > { %v925_v5 = vmax.f32 %v873_v1, 0.0 }
 0x24c   : > { %v961_v6 = vpack.c.bf16 %v927_v3, %v926_v2 }
 0x24d   : > { %v960_v7 = vpack.c.bf16 %v925_v5, %v924_v4 }
 0x24f   : > { %2139 = vmatprep.mubr.bf16.mxu1 %v960_v7 }
 0x250   : > { %2140 = vmatmul.mubr.bf16.gmra.mrb[56].mxu1 %v961_v6 }
 0x255   : > { %v2097_v8 = vpop.f32.mrb[28].mxu1 }
 0x256   : > { %v894_v9 = vadd.f32 %v2097_v8, %v2622_v25  ;;  %v885_v10 = vpop.f32.mrb[29].mxu1 }
 0x257   : > { %v886_v11 = vadd.f32 %v885_v10, %v2622_v25  ;;  %v2098_v12 = vpop.f32.mrb[30].mxu1 }
 0x258   : > { %v897_v13 = vadd.f32 %v2098_v12, %v2622_v25  ;;  %v888_v14 = vpop.f32.mrb[31].mxu1  ;;  %v930_v16 = vmax.f32 %v894_v9, 0.0 }
 0x259   : > { %v889_v15 = vadd.f32 %v888_v14, %v2622_v25  ;;  %v928_v18 = vmax.f32 %v886_v11, 0.0  ;;  %v2685_v25 = vrot.slane %v2555_v54, %v966_v22 }
 0x25a   : > { %v931_v17 = vmax.f32 %v897_v13, 0.0 }
 0x25b   : > { %v929_v19 = vmax.f32 %v889_v15, 0.0 }
 0x25c   : > { %v963_v20 = vpack.c.bf16 %v931_v17, %v930_v16 }
 0x25d   : > { %v962_v21 = vpack.c.bf16 %v929_v19, %v928_v18 }
 0x25f   : > { %2143 = vmatprep.mubr.bf16.mxu1 %v962_v21 }
 0x260   : > { %2144 = vmatmul.mubr.bf16.gmra.mrb[60].mxu1 %v963_v20 }
 0x2c3   : > { %v2117_v27 = vpop.f32.mrb[32].mxu1 }
 0x2c4   : > { %v1059_v28 = vadd.f32 %v2117_v27, %v2685_v25  ;;  %v1050_v56 = vpop.f32.mrb[33].mxu1 }
 0x2c5   : > { %v1051_v29 = vadd.f32 %v1050_v56, %v2685_v25  ;;  %v2118_v30 = vpop.f32.mrb[34].mxu1 }
 0x2c6   : > { %v1062_v31 = vadd.f32 %v2118_v30, %v2685_v25  ;;  %v1053_v32 = vpop.f32.mrb[35].mxu1  ;;  %v1179_v35 = vmax.f32 %v1059_v28, 0.0 }
 0x2c7   : > { %v1054_v34 = vadd.f32 %v1053_v32, %v2685_v25  ;;  %v1177_v37 = vmax.f32 %v1051_v29, 0.0 }
 0x2c8   : > { %v1180_v36 = vmax.f32 %v1062_v31, 0.0 }
 0x2c9   : > { %v1178_v38 = vmax.f32 %v1054_v34, 0.0 }
 0x2ca   : > { %v1226_v39 = vpack.c.bf16 %v1180_v36, %v1179_v35 }
 0x2cb   : > { %v1225_v41 = vpack.c.bf16 %v1178_v38, %v1177_v37 }
 0x2cd   : > { %2163 = vmatprep.mubr.bf16.mxu1 %v1225_v41 }
 0x2ce   : > { %2164 = vmatmul.mubr.bf16.vlgmr.msra.gmra.mrb[64].mxu1 %v1226_v39 }
 0x2d3   : > { %v2121_v43 = vpop.f32.mrb[36].mxu1 }
 0x2d4   : > { %v1075_v44 = vadd.f32 %v2121_v43, %v2685_v25  ;;  %v1066_v45 = vpop.f32.mrb[37].mxu1 }
 0x2d5   : > { %v1067_v46 = vadd.f32 %v1066_v45, %v2685_v25  ;;  %v2122_v47 = vpop.f32.mrb[38].mxu1 }
 0x2d6   : > { %v1078_v48 = vadd.f32 %v2122_v47, %v2685_v25  ;;  %v1069_v49 = vpop.f32.mrb[39].mxu1  ;;  %v1183_v51 = vmax.f32 %v1075_v44, 0.0 }
 0x2d7   : > { %v1070_v50 = vadd.f32 %v1069_v49, %v2685_v25  ;;  %v1181_v55 = vmax.f32 %v1067_v46, 0.0 }
 0x2d8   : > { %v1184_v53 = vmax.f32 %v1078_v48, 0.0 }
 0x2d9   : > { %v1182_v57 = vmax.f32 %v1070_v50, 0.0 }
 0x2da   : > { %v1228_v58 = vpack.c.bf16 %v1184_v53, %v1183_v51  ;;  %v2340_v53 = vld [vmem:[%s2884_s1 + $0x140] sm:$0xff]  }
 0x2db   : > { %v1227_v59 = vpack.c.bf16 %v1182_v57, %v1181_v55  ;;  %2207 = vmatprep.subr.bf16.mxu0 %v2340_v53 }
 0x2dc   : > { %2208 = vmatpush3.bf16.msra.mxu0 %v2340_v53 }
 0x2dd   : > { %2167 = vmatprep.mubr.bf16.mxu1 %v1227_v59 }
 0x2de   : > { %2168 = vmatmul.mubr.bf16.gmra.mrb[68].mxu1 %v1228_v58 }
 0x2e3   : > { %v2125_v60 = vpop.f32.mrb[40].mxu1 }
 0x2e4   : > { %v1091_v61 = vadd.f32 %v2125_v60, %v2685_v25  ;;  %v1082_v62 = vpop.f32.mrb[41].mxu1 }
 0x2e5   : > { %v1083_v63 = vadd.f32 %v1082_v62, %v2685_v25  ;;  %v2126_v0 = vpop.f32.mrb[42].mxu1 }
 0x2e6   : > { %v1094_v1 = vadd.f32 %v2126_v0, %v2685_v25  ;;  %v1085_v2 = vpop.f32.mrb[43].mxu1  ;;  %v1187_v4 = vmax.f32 %v1091_v61, 0.0 }
 0x2e7   : > { %v1086_v3 = vadd.f32 %v1085_v2, %v2685_v25  ;;  %v1185_v6 = vmax.f32 %v1083_v63, 0.0  ;;  %v2341_v63 = vld [vmem:[%s2884_s1 + $0x148] sm:$0xff]  }
 0x2e8   : > { %v1188_v5 = vmax.f32 %v1094_v1, 0.0  ;;  %2209 = vmatprep.subr.bf16.mxu0 %v2341_v63 }
 0x2e9   : > { %v1186_v7 = vmax.f32 %v1086_v3, 0.0  ;;  %2210 = vmatpush3.bf16.msra.mxu0 %v2341_v63 }
 0x2ea   : > { %v1230_v8 = vpack.c.bf16 %v1188_v5, %v1187_v4 }
 0x2eb   : > { %v1229_v9 = vpack.c.bf16 %v1186_v7, %v1185_v6 }
 0x2ed   : > { %2171 = vmatprep.mubr.bf16.mxu1 %v1229_v9 }
 0x2ee   : > { %2172 = vmatmul.mubr.bf16.gmra.mrb[72].mxu1 %v1230_v8 }
 0x2f3   : > { %v2129_v10 = vpop.f32.mrb[44].mxu1 }
 0x2f4   : > { %v1107_v11 = vadd.f32 %v2129_v10, %v2685_v25  ;;  %v1098_v12 = vpop.f32.mrb[45].mxu1 }
 0x2f5   : > { %v1099_v13 = vadd.f32 %v1098_v12, %v2685_v25  ;;  %v2130_v14 = vpop.f32.mrb[46].mxu1 }
 0x2f6   : > { %v1110_v15 = vadd.f32 %v2130_v14, %v2685_v25  ;;  %v1101_v16 = vpop.f32.mrb[47].mxu1  ;;  %v1191_v18 = vmax.f32 %v1107_v11, 0.0 }
 0x2f7   : > { %v1102_v17 = vadd.f32 %v1101_v16, %v2685_v25  ;;  %v1189_v20 = vmax.f32 %v1099_v13, 0.0 }
 0x2f8   : > { %v1192_v19 = vmax.f32 %v1110_v15, 0.0 }
 0x2f9   : > { %v1190_v21 = vmax.f32 %v1102_v17, 0.0 }
 0x2fa   : > { %v1232_v22 = vpack.c.bf16 %v1192_v19, %v1191_v18 }
 0x2fb   : > { %v1231_v23 = vpack.c.bf16 %v1190_v21, %v1189_v20  ;;  %v1243_v21 = vsub.s32 3, %v2550_v52 }
 0x2fd   : > { %2175 = vmatprep.mubr.bf16.mxu1 %v1231_v23 }
 0x2fe   : > { %2176 = vmatmul.mubr.bf16.gmra.mrb[76].mxu1 %v1232_v22  ;;  %v2739_v22 = vrot.slane %v2555_v54, %v1243_v21 }
 0x303   : > { %v2133_v24 = vpop.f32.mrb[48].mxu1 }
 0x304   : > { %v1123_v26 = vadd.f32 %v2133_v24, %v2685_v25  ;;  %v1114_v27 = vpop.f32.mrb[49].mxu1 }
 0x305   : > { %v1115_v28 = vadd.f32 %v1114_v27, %v2685_v25  ;;  %v2134_v56 = vpop.f32.mrb[50].mxu1 }
 0x306   : > { %v1126_v29 = vadd.f32 %v2134_v56, %v2685_v25  ;;  %v1117_v30 = vpop.f32.mrb[51].mxu1  ;;  %v1195_v32 = vmax.f32 %v1123_v26, 0.0 }
 0x307   : > { %v1118_v31 = vadd.f32 %v1117_v30, %v2685_v25  ;;  %v1193_v34 = vmax.f32 %v1115_v28, 0.0 }
 0x308   : > { %v1196_v33 = vmax.f32 %v1126_v29, 0.0 }
 0x309   : > { %v1194_v35 = vmax.f32 %v1118_v31, 0.0 }
 0x30a   : > { %v1234_v36 = vpack.c.bf16 %v1196_v33, %v1195_v32 }
 0x30b   : > { %v1233_v37 = vpack.c.bf16 %v1194_v35, %v1193_v34 }
 0x30d   : > { %2179 = vmatprep.mubr.bf16.mxu1 %v1233_v37 }
 0x30e   : > { %2180 = vmatmul.mubr.bf16.gmra.mrb[80].mxu1 %v1234_v36 }
 0x313   : > { %v2137_v38 = vpop.f32.mrb[52].mxu1 }
 0x314   : > { %v1139_v39 = vadd.f32 %v2137_v38, %v2685_v25  ;;  %v1130_v40 = vpop.f32.mrb[53].mxu1 }
 0x315   : > { %v1131_v41 = vadd.f32 %v1130_v40, %v2685_v25  ;;  %v2138_v42 = vpop.f32.mrb[54].mxu1 }
 0x316   : > { %v1142_v43 = vadd.f32 %v2138_v42, %v2685_v25  ;;  %v1133_v44 = vpop.f32.mrb[55].mxu1  ;;  %v1199_v46 = vmax.f32 %v1139_v39, 0.0 }
 0x317   : > { %v1134_v45 = vadd.f32 %v1133_v44, %v2685_v25  ;;  %v1197_v48 = vmax.f32 %v1131_v41, 0.0 }
 0x318   : > { %v1200_v47 = vmax.f32 %v1142_v43, 0.0 }
 0x319   : > { %v1198_v49 = vmax.f32 %v1134_v45, 0.0 }
 0x31a   : > { %v1236_v50 = vpack.c.bf16 %v1200_v47, %v1199_v46 }
 0x31b   : > { %v1235_v51 = vpack.c.bf16 %v1198_v49, %v1197_v48 }
 0x31d   : > { %2183 = vmatprep.mubr.bf16.mxu1 %v1235_v51 }
 0x31e   : > { %2184 = vmatmul.mubr.bf16.gmra.mrb[84].mxu1 %v1236_v50 }
 0x323   : > { %v2141_v55 = vpop.f32.mrb[56].mxu1 }
 0x324   : > { %v1155_v57 = vadd.f32 %v2141_v55, %v2685_v25  ;;  %v1146_v58 = vpop.f32.mrb[57].mxu1 }
 0x325   : > { %v1147_v59 = vadd.f32 %v1146_v58, %v2685_v25  ;;  %v2142_v60 = vpop.f32.mrb[58].mxu1 }
 0x326   : > { %v1158_v61 = vadd.f32 %v2142_v60, %v2685_v25  ;;  %v1149_v62 = vpop.f32.mrb[59].mxu1  ;;  %v1203_v1 = vmax.f32 %v1155_v57, 0.0 }
 0x327   : > { %v1150_v0 = vadd.f32 %v1149_v62, %v2685_v25  ;;  %v1201_v3 = vmax.f32 %v1147_v59, 0.0 }
 0x328   : > { %v1204_v2 = vmax.f32 %v1158_v61, 0.0 }
 0x329   : > { %v1202_v4 = vmax.f32 %v1150_v0, 0.0 }
 0x32a   : > { %v1238_v5 = vpack.c.bf16 %v1204_v2, %v1203_v1 }
 0x32b   : > { %v1237_v6 = vpack.c.bf16 %v1202_v4, %v1201_v3 }
 0x32d   : > { %2187 = vmatprep.mubr.bf16.mxu1 %v1237_v6 }
 0x32e   : > { %2188 = vmatmul.mubr.bf16.gmra.mrb[88].mxu1 %v1238_v5 }
 0x333   : > { %v2145_v7 = vpop.f32.mrb[60].mxu1 }
 0x334   : > { %v1171_v8 = vadd.f32 %v2145_v7, %v2685_v25  ;;  %v1162_v9 = vpop.f32.mrb[61].mxu1 }
 0x335   : > { %v1163_v10 = vadd.f32 %v1162_v9, %v2685_v25  ;;  %v2146_v11 = vpop.f32.mrb[62].mxu1 }
 0x336   : > { %v1174_v12 = vadd.f32 %v2146_v11, %v2685_v25  ;;  %v1165_v13 = vpop.f32.mrb[63].mxu1  ;;  %v1207_v15 = vmax.f32 %v1171_v8, 0.0 }
 0x337   : > { %v1166_v14 = vadd.f32 %v1165_v13, %v2685_v25  ;;  %v1205_v17 = vmax.f32 %v1163_v10, 0.0 }
 0x338   : > { %v1208_v16 = vmax.f32 %v1174_v12, 0.0 }
 0x339   : > { %v1206_v18 = vmax.f32 %v1166_v14, 0.0 }
 0x33a   : > { %v1240_v19 = vpack.c.bf16 %v1208_v16, %v1207_v15 }
 0x33b   : > { %v1239_v20 = vpack.c.bf16 %v1206_v18, %v1205_v17 }
 0x33d   : > { %2191 = vmatprep.mubr.bf16.mxu1 %v1239_v20 }
 0x33e   : > { %2192 = vmatmul.mubr.bf16.gmra.mrb[92].mxu1 %v1240_v19 }
 0x3a1   : > { %v2165_v23 = vpop.f32.mrb[64].mxu1 }
 0x3a2   : > { %v1336_v24 = vadd.f32 %v2165_v23, %v2739_v22  ;;  %v1327_v26 = vpop.f32.mrb[65].mxu1 }
 0x3a3   : > { %v1328_v27 = vadd.f32 %v1327_v26, %v2739_v22  ;;  %v2166_v25 = vpop.f32.mrb[66].mxu1 }
 0x3a4   : > { %v1339_v28 = vadd.f32 %v2166_v25, %v2739_v22  ;;  %v1330_v56 = vpop.f32.mrb[67].mxu1  ;;  %v1456_v30 = vmax.f32 %v1336_v24, 0.0 }
 0x3a5   : > { %v1331_v29 = vadd.f32 %v1330_v56, %v2739_v22  ;;  %v1454_v32 = vmax.f32 %v1328_v27, 0.0 }
 0x3a6   : > { %v1457_v31 = vmax.f32 %v1339_v28, 0.0 }
 0x3a7   : > { %v1455_v33 = vmax.f32 %v1331_v29, 0.0 }
 0x3a8   : > { %v1503_v34 = vpack.c.bf16 %v1457_v31, %v1456_v30 }
 0x3a9   : > { %v1502_v35 = vpack.c.bf16 %v1455_v33, %v1454_v32 }
 0x3ab   : > { %2211 = vmatprep.mubr.bf16.mxu0 %v1502_v35 }
 0x3ac   : > { %2212 = vmatmul.mubr.bf16.vlgmr.msra.gmra.mrb[64].mxu0 %v1503_v34 }
 0x3b1   : > { %v2169_v36 = vpop.f32.mrb[68].mxu1 }
 0x3b2   : > { %v1352_v37 = vadd.f32 %v2169_v36, %v2739_v22  ;;  %v1343_v38 = vpop.f32.mrb[69].mxu1 }
 0x3b3   : > { %v1344_v39 = vadd.f32 %v1343_v38, %v2739_v22  ;;  %v2170_v40 = vpop.f32.mrb[70].mxu1 }
 0x3b4   : > { %v1355_v41 = vadd.f32 %v2170_v40, %v2739_v22  ;;  %v1346_v42 = vpop.f32.mrb[71].mxu1  ;;  %v1460_v44 = vmax.f32 %v1352_v37, 0.0 }
 0x3b5   : > { %v1347_v43 = vadd.f32 %v1346_v42, %v2739_v22  ;;  %v1458_v46 = vmax.f32 %v1344_v39, 0.0 }
 0x3b6   : > { %v1461_v45 = vmax.f32 %v1355_v41, 0.0 }
 0x3b7   : > { %v1459_v47 = vmax.f32 %v1347_v43, 0.0 }
 0x3b8   : > { %v1505_v48 = vpack.c.bf16 %v1461_v45, %v1460_v44 }
 0x3b9   : > { %v1504_v49 = vpack.c.bf16 %v1459_v47, %v1458_v46 }
 0x3bb   : > { %2215 = vmatprep.mubr.bf16.mxu0 %v1504_v49 }
 0x3bc   : > { %2216 = vmatmul.mubr.bf16.gmra.mrb[68].mxu0 %v1505_v48 }
 0x3c1   : > { %v2173_v50 = vpop.f32.mrb[72].mxu1 }
 0x3c2   : > { %v1368_v51 = vadd.f32 %v2173_v50, %v2739_v22  ;;  %v1359_v53 = vpop.f32.mrb[73].mxu1 }
 0x3c3   : > { %v1360_v55 = vadd.f32 %v1359_v53, %v2739_v22  ;;  %v2174_v57 = vpop.f32.mrb[74].mxu1 }
 0x3c4   : > { %v1371_v58 = vadd.f32 %v2174_v57, %v2739_v22  ;;  %v1362_v59 = vpop.f32.mrb[75].mxu1  ;;  %v1464_v61 = vmax.f32 %v1368_v51, 0.0 }
 0x3c5   : > { %v1363_v60 = vadd.f32 %v1362_v59, %v2739_v22  ;;  %v1462_v63 = vmax.f32 %v1360_v55, 0.0 }
 0x3c6   : > { %v1465_v62 = vmax.f32 %v1371_v58, 0.0 }
 0x3c7   : > { %v1463_v0 = vmax.f32 %v1363_v60, 0.0 }
 0x3c8   : > { %v1507_v1 = vpack.c.bf16 %v1465_v62, %v1464_v61 }
 0x3c9   : > { %v1506_v2 = vpack.c.bf16 %v1463_v0, %v1462_v63 }
 0x3cb   : > { %2219 = vmatprep.mubr.bf16.mxu0 %v1506_v2 }
 0x3cc   : > { %2220 = vmatmul.mubr.bf16.gmra.mrb[72].mxu0 %v1507_v1 }
 0x3d1   : > { %v2177_v3 = vpop.f32.mrb[76].mxu1 }
 0x3d2   : > { %v1384_v4 = vadd.f32 %v2177_v3, %v2739_v22  ;;  %v1375_v5 = vpop.f32.mrb[77].mxu1 }
 0x3d3   : > { %v1376_v6 = vadd.f32 %v1375_v5, %v2739_v22  ;;  %v2178_v7 = vpop.f32.mrb[78].mxu1 }
 0x3d4   : > { %v1387_v8 = vadd.f32 %v2178_v7, %v2739_v22  ;;  %v1378_v9 = vpop.f32.mrb[79].mxu1  ;;  %v1468_v11 = vmax.f32 %v1384_v4, 0.0 }
 0x3d5   : > { %v1379_v10 = vadd.f32 %v1378_v9, %v2739_v22  ;;  %v1466_v13 = vmax.f32 %v1376_v6, 0.0 }
 0x3d6   : > { %v1469_v12 = vmax.f32 %v1387_v8, 0.0 }
 0x3d7   : > { %v1467_v14 = vmax.f32 %v1379_v10, 0.0 }
 0x3d8   : > { %v1509_v15 = vpack.c.bf16 %v1469_v12, %v1468_v11  ;;  %v1520_v12 = vsub.s32 4, %v2550_v52 }
 0x3d9   : > { %v1508_v16 = vpack.c.bf16 %v1467_v14, %v1466_v13 }
 0x3da   : > { %v2775_v13 = vrot.slane %v2555_v54, %v1520_v12 }
 0x3db   : > { %2223 = vmatprep.mubr.bf16.mxu0 %v1508_v16 }
 0x3dc   : > { %2224 = vmatmul.mubr.bf16.gmra.mrb[76].mxu0 %v1509_v15 }
 0x3e1   : > { %v2181_v17 = vpop.f32.mrb[80].mxu1 }
 0x3e2   : > { %v1400_v18 = vadd.f32 %v2181_v17, %v2739_v22  ;;  %v1391_v19 = vpop.f32.mrb[81].mxu1 }
 0x3e3   : > { %v1392_v20 = vadd.f32 %v1391_v19, %v2739_v22  ;;  %v2182_v21 = vpop.f32.mrb[82].mxu1 }
 0x3e4   : > { %v1403_v23 = vadd.f32 %v2182_v21, %v2739_v22  ;;  %v1394_v24 = vpop.f32.mrb[83].mxu1  ;;  %v1472_v27 = vmax.f32 %v1400_v18, 0.0 }
 0x3e5   : > { %v1395_v26 = vadd.f32 %v1394_v24, %v2739_v22  ;;  %v1470_v28 = vmax.f32 %v1392_v20, 0.0 }
 0x3e6   : > { %v1473_v25 = vmax.f32 %v1403_v23, 0.0 }
 0x3e7   : > { %v1471_v56 = vmax.f32 %v1395_v26, 0.0 }
 0x3e8   : > { %v1511_v29 = vpack.c.bf16 %v1473_v25, %v1472_v27 }
 0x3e9   : > { %v1510_v30 = vpack.c.bf16 %v1471_v56, %v1470_v28 }
 0x3eb   : > { %2227 = vmatprep.mubr.bf16.mxu0 %v1510_v30 }
 0x3ec   : > { %2228 = vmatmul.mubr.bf16.gmra.mrb[80].mxu0 %v1511_v29 }
 0x3f1   : > { %v2185_v31 = vpop.f32.mrb[84].mxu1 }
 0x3f2   : > { %v1416_v32 = vadd.f32 %v2185_v31, %v2739_v22  ;;  %v1407_v33 = vpop.f32.mrb[85].mxu1 }
 0x3f3   : > { %v1408_v34 = vadd.f32 %v1407_v33, %v2739_v22  ;;  %v2186_v35 = vpop.f32.mrb[86].mxu1 }
 0x3f4   : > { %v1419_v36 = vadd.f32 %v2186_v35, %v2739_v22  ;;  %v1410_v37 = vpop.f32.mrb[87].mxu1  ;;  %v1476_v39 = vmax.f32 %v1416_v32, 0.0 }
 0x3f5   : > { %v1411_v38 = vadd.f32 %v1410_v37, %v2739_v22  ;;  %v1474_v41 = vmax.f32 %v1408_v34, 0.0 }
 0x3f6   : > { %v1477_v40 = vmax.f32 %v1419_v36, 0.0 }
 0x3f7   : > { %v1475_v42 = vmax.f32 %v1411_v38, 0.0 }
 0x3f8   : > { %v1513_v43 = vpack.c.bf16 %v1477_v40, %v1476_v39 }
 0x3f9   : > { %v1512_v44 = vpack.c.bf16 %v1475_v42, %v1474_v41 }
 0x3fb   : > { %2231 = vmatprep.mubr.bf16.mxu0 %v1512_v44 }
 0x3fc   : > { %2232 = vmatmul.mubr.bf16.gmra.mrb[84].mxu0 %v1513_v43 }
 0x401   : > { %v2189_v45 = vpop.f32.mrb[88].mxu1 }
 0x402   : > { %v1432_v46 = vadd.f32 %v2189_v45, %v2739_v22  ;;  %v1423_v47 = vpop.f32.mrb[89].mxu1 }
 0x403   : > { %v1424_v48 = vadd.f32 %v1423_v47, %v2739_v22  ;;  %v2190_v49 = vpop.f32.mrb[90].mxu1 }
 0x404   : > { %v1435_v50 = vadd.f32 %v2190_v49, %v2739_v22  ;;  %v1426_v51 = vpop.f32.mrb[91].mxu1  ;;  %v1480_v55 = vmax.f32 %v1432_v46, 0.0 }
 0x405   : > { %v1427_v53 = vadd.f32 %v1426_v51, %v2739_v22  ;;  %v1478_v58 = vmax.f32 %v1424_v48, 0.0 }
 0x406   : > { %v1481_v57 = vmax.f32 %v1435_v50, 0.0 }
 0x407   : > { %v1479_v59 = vmax.f32 %v1427_v53, 0.0 }
 0x408   : > { %v1515_v60 = vpack.c.bf16 %v1481_v57, %v1480_v55 }
 0x409   : > { %v1514_v61 = vpack.c.bf16 %v1479_v59, %v1478_v58 }
 0x40b   : > { %2235 = vmatprep.mubr.bf16.mxu0 %v1514_v61 }
 0x40c   : > { %2236 = vmatmul.mubr.bf16.gmra.mrb[88].mxu0 %v1515_v60 }
 0x411   : > { %v2193_v62 = vpop.f32.mrb[92].mxu1 }
 0x412   : > { %v1448_v63 = vadd.f32 %v2193_v62, %v2739_v22  ;;  %v1439_v0 = vpop.f32.mrb[93].mxu1 }
 0x413   : > { %v1440_v1 = vadd.f32 %v1439_v0, %v2739_v22  ;;  %v2194_v2 = vpop.f32.mrb[94].mxu1 }
 0x414   : > { %v1451_v3 = vadd.f32 %v2194_v2, %v2739_v22  ;;  %v1442_v4 = vpop.f32.mrb[95].mxu1  ;;  %v1484_v6 = vmax.f32 %v1448_v63, 0.0 }
 0x415   : > { %v1443_v5 = vadd.f32 %v1442_v4, %v2739_v22  ;;  %v1482_v8 = vmax.f32 %v1440_v1, 0.0 }
 0x416   : > { %v1485_v7 = vmax.f32 %v1451_v3, 0.0 }
 0x417   : > { %v1483_v9 = vmax.f32 %v1443_v5, 0.0 }
 0x418   : > { %v1517_v10 = vpack.c.bf16 %v1485_v7, %v1484_v6 }
 0x419   : > { %v1516_v11 = vpack.c.bf16 %v1483_v9, %v1482_v8 }
 0x41b   : > { %2239 = vmatprep.mubr.bf16.mxu0 %v1516_v11 }
 0x41c   : > { %2240 = vmatmul.mubr.bf16.gmra.mrb[92].mxu0 %v1517_v10 }
 0x47f   : > { %v2213_v14 = vpop.f32.mrb[64].mxu0 }
 0x480   : > { %v1613_v15 = vadd.f32 %v2213_v14, %v2775_v13  ;;  %v1604_v16 = vpop.f32.mrb[65].mxu0 }
 0x481   : > { %v1605_v22 = vadd.f32 %v1604_v16, %v2775_v13  ;;  %v2214_v17 = vpop.f32.mrb[66].mxu0 }
 0x482   : > { %2342 = vtanh.f32 %v1613_v15  ;;  %v1616_v18 = vadd.f32 %v2214_v17, %v2775_v13  ;;  %v1607_v19 = vpop.f32.mrb[67].mxu0 }
 0x483   : > { %2344 = vtanh.f32 %v1605_v22  ;;  %v1608_v20 = vadd.f32 %v1607_v19, %v2775_v13 }
 0x484   : > { %2346 = vtanh.f32 %v1616_v18 }
 0x485   : > { %2348 = vtanh.f32 %v1608_v20 }
 0x48c   : > { %v2343_v52 = vpop.eup %2342 }
 0x48d   : > { %v2345_v54 = vpop.eup %2344  ;;  %1766 = vst.msk [vmem:[%s2786_s21 + $0x10] sm:$0xff] %vm1763_vm1, %v2343_v52 }
 0x48e   : > { %v2347_v21 = vpop.eup %2346  ;;  %1764 = vst.msk [vmem:[%s2786_s21] sm:$0xff] %vm1763_vm1, %v2345_v54 }
 0x48f   : > { %v2349_v23 = vpop.eup %2348  ;;  %1767 = vst.msk [vmem:[%s2786_s21 + $0x18] sm:$0xff] %vm1763_vm1, %v2347_v21  ;;  %v2217_v24 = vpop.f32.mrb[68].mxu0 }
 0x490   : > { %1765 = vst.msk [vmem:[%s2786_s21 + $0x8] sm:$0xff] %vm1763_vm1, %v2349_v23  ;;  %v1629_v26 = vadd.f32 %v2217_v24, %v2775_v13  ;;  %v1620_v27 = vpop.f32.mrb[69].mxu0 }
 0x491   : > { %v1621_v25 = vadd.f32 %v1620_v27, %v2775_v13  ;;  %v2218_v28 = vpop.f32.mrb[70].mxu0 }
 0x492   : > { %2350 = vtanh.f32 %v1629_v26  ;;  %v1632_v56 = vadd.f32 %v2218_v28, %v2775_v13  ;;  %v1623_v29 = vpop.f32.mrb[71].mxu0 }
 0x493   : > { %2352 = vtanh.f32 %v1621_v25  ;;  %v1624_v30 = vadd.f32 %v1623_v29, %v2775_v13 }
 0x494   : > { %2354 = vtanh.f32 %v1632_v56 }
 0x495   : > { %2356 = vtanh.f32 %v1624_v30 }
 0x49c   : > { %v2351_v31 = vpop.eup %2350 }
 0x49d   : > { %v2353_v32 = vpop.eup %2352  ;;  %1770 = vst.msk [vmem:[%s2786_s21 + $0x30] sm:$0xff] %vm1763_vm1, %v2351_v31 }
 0x49e   : > { %v2355_v33 = vpop.eup %2354  ;;  %1768 = vst.msk [vmem:[%s2786_s21 + $0x20] sm:$0xff] %vm1763_vm1, %v2353_v32 }
 0x49f   : > { %v2357_v34 = vpop.eup %2356  ;;  %1771 = vst.msk [vmem:[%s2786_s21 + $0x38] sm:$0xff] %vm1763_vm1, %v2355_v33  ;;  %v2221_v35 = vpop.f32.mrb[72].mxu0 }
 0x4a0   : > { %1769 = vst.msk [vmem:[%s2786_s21 + $0x28] sm:$0xff] %vm1763_vm1, %v2357_v34  ;;  %v1645_v36 = vadd.f32 %v2221_v35, %v2775_v13  ;;  %v1636_v37 = vpop.f32.mrb[73].mxu0 }
 0x4a1   : > { %v1637_v38 = vadd.f32 %v1636_v37, %v2775_v13  ;;  %v2222_v39 = vpop.f32.mrb[74].mxu0 }
 0x4a2   : > { %2358 = vtanh.f32 %v1645_v36  ;;  %v1648_v40 = vadd.f32 %v2222_v39, %v2775_v13  ;;  %v1639_v41 = vpop.f32.mrb[75].mxu0 }
 0x4a3   : > { %2360 = vtanh.f32 %v1637_v38  ;;  %v1640_v42 = vadd.f32 %v1639_v41, %v2775_v13 }
 0x4a4   : > { %2362 = vtanh.f32 %v1648_v40 }
 0x4a5   : > { %2364 = vtanh.f32 %v1640_v42 }
 0x4ac   : > { %v2359_v43 = vpop.eup %2358 }
 0x4ad   : > { %v2361_v44 = vpop.eup %2360  ;;  %1774 = vst.msk [vmem:[%s2786_s21 + $0x50] sm:$0xff] %vm1763_vm1, %v2359_v43 }
 0x4ae   : > { %v2363_v45 = vpop.eup %2362  ;;  %1772 = vst.msk [vmem:[%s2786_s21 + $0x40] sm:$0xff] %vm1763_vm1, %v2361_v44 }
 0x4af   : > { %v2365_v46 = vpop.eup %2364  ;;  %1775 = vst.msk [vmem:[%s2786_s21 + $0x58] sm:$0xff] %vm1763_vm1, %v2363_v45  ;;  %v2225_v47 = vpop.f32.mrb[76].mxu0 }
 0x4b0   : > { %1773 = vst.msk [vmem:[%s2786_s21 + $0x48] sm:$0xff] %vm1763_vm1, %v2365_v46  ;;  %v1661_v48 = vadd.f32 %v2225_v47, %v2775_v13  ;;  %v1652_v49 = vpop.f32.mrb[77].mxu0 }
 0x4b1   : > { %v1653_v50 = vadd.f32 %v1652_v49, %v2775_v13  ;;  %v2226_v51 = vpop.f32.mrb[78].mxu0 }
 0x4b2   : > { %2366 = vtanh.f32 %v1661_v48  ;;  %v1664_v53 = vadd.f32 %v2226_v51, %v2775_v13  ;;  %v1655_v55 = vpop.f32.mrb[79].mxu0 }
 0x4b3   : > { %2368 = vtanh.f32 %v1653_v50  ;;  %v1656_v57 = vadd.f32 %v1655_v55, %v2775_v13 }
 0x4b4   : > { %2370 = vtanh.f32 %v1664_v53 }
 0x4b5   : > { %2372 = vtanh.f32 %v1656_v57 }
 0x4bc   : > { %v2367_v58 = vpop.eup %2366 }
 0x4bd   : > { %v2369_v59 = vpop.eup %2368  ;;  %1778 = vst.msk [vmem:[%s2786_s21 + $0x70] sm:$0xff] %vm1763_vm1, %v2367_v58 }
 0x4be   : > { %v2371_v60 = vpop.eup %2370  ;;  %1776 = vst.msk [vmem:[%s2786_s21 + $0x60] sm:$0xff] %vm1763_vm1, %v2369_v59 }
 0x4bf   : > { %v2373_v61 = vpop.eup %2372  ;;  %1779 = vst.msk [vmem:[%s2786_s21 + $0x78] sm:$0xff] %vm1763_vm1, %v2371_v60  ;;  %v2229_v62 = vpop.f32.mrb[80].mxu0 }
 0x4c0   : > { %1777 = vst.msk [vmem:[%s2786_s21 + $0x68] sm:$0xff] %vm1763_vm1, %v2373_v61  ;;  %v1677_v63 = vadd.f32 %v2229_v62, %v2775_v13  ;;  %v1668_v0 = vpop.f32.mrb[81].mxu0 }
 0x4c1   : > { %v1669_v1 = vadd.f32 %v1668_v0, %v2775_v13  ;;  %v2230_v2 = vpop.f32.mrb[82].mxu0 }
 0x4c2   : > { %2374 = vtanh.f32 %v1677_v63  ;;  %v1680_v3 = vadd.f32 %v2230_v2, %v2775_v13  ;;  %v1671_v4 = vpop.f32.mrb[83].mxu0 }
 0x4c3   : > { %2376 = vtanh.f32 %v1669_v1  ;;  %v1672_v5 = vadd.f32 %v1671_v4, %v2775_v13 }
 0x4c4   : > { %2378 = vtanh.f32 %v1680_v3 }
 0x4c5   : > { %2380 = vtanh.f32 %v1672_v5 }
 0x4cc   : > { %v2375_v6 = vpop.eup %2374 }
 0x4cd   : > { %v2377_v7 = vpop.eup %2376  ;;  %1782 = vst.msk [vmem:[%s2786_s21 + $0x90] sm:$0xff] %vm1763_vm1, %v2375_v6 }
 0x4ce   : > { %v2379_v8 = vpop.eup %2378  ;;  %1780 = vst.msk [vmem:[%s2786_s21 + $0x80] sm:$0xff] %vm1763_vm1, %v2377_v7 }
 0x4cf   : > { %v2381_v9 = vpop.eup %2380  ;;  %1783 = vst.msk [vmem:[%s2786_s21 + $0x98] sm:$0xff] %vm1763_vm1, %v2379_v8  ;;  %v2233_v10 = vpop.f32.mrb[84].mxu0 }
 0x4d0   : > { %1781 = vst.msk [vmem:[%s2786_s21 + $0x88] sm:$0xff] %vm1763_vm1, %v2381_v9  ;;  %v1693_v11 = vadd.f32 %v2233_v10, %v2775_v13  ;;  %v1684_v12 = vpop.f32.mrb[85].mxu0 }
 0x4d1   : > { %v1685_v14 = vadd.f32 %v1684_v12, %v2775_v13  ;;  %v2234_v15 = vpop.f32.mrb[86].mxu0 }
 0x4d2   : > { %2382 = vtanh.f32 %v1693_v11  ;;  %v1696_v16 = vadd.f32 %v2234_v15, %v2775_v13  ;;  %v1687_v22 = vpop.f32.mrb[87].mxu0 }
 0x4d3   : > { %2384 = vtanh.f32 %v1685_v14  ;;  %v1688_v17 = vadd.f32 %v1687_v22, %v2775_v13 }
 0x4d4   : > { %2386 = vtanh.f32 %v1696_v16 }
 0x4d5   : > { %2388 = vtanh.f32 %v1688_v17 }
 0x4dc   : > { %v2383_v18 = vpop.eup %2382 }
 0x4dd   : > { %v2385_v19 = vpop.eup %2384  ;;  %1786 = vst.msk [vmem:[%s2786_s21 + $0xb0] sm:$0xff] %vm1763_vm1, %v2383_v18 }
 0x4de   : > { %v2387_v20 = vpop.eup %2386  ;;  %1784 = vst.msk [vmem:[%s2786_s21 + $0xa0] sm:$0xff] %vm1763_vm1, %v2385_v19 }
 0x4df   : > { %v2389_v52 = vpop.eup %2388  ;;  %1787 = vst.msk [vmem:[%s2786_s21 + $0xb8] sm:$0xff] %vm1763_vm1, %v2387_v20  ;;  %v2237_v54 = vpop.f32.mrb[88].mxu0 }
 0x4e0   : > { %1785 = vst.msk [vmem:[%s2786_s21 + $0xa8] sm:$0xff] %vm1763_vm1, %v2389_v52  ;;  %v1709_v21 = vadd.f32 %v2237_v54, %v2775_v13  ;;  %v1700_v23 = vpop.f32.mrb[89].mxu0 }
 0x4e1   : > { %v1701_v24 = vadd.f32 %v1700_v23, %v2775_v13  ;;  %v2238_v26 = vpop.f32.mrb[90].mxu0 }
 0x4e2   : > { %2390 = vtanh.f32 %v1709_v21  ;;  %v1712_v27 = vadd.f32 %v2238_v26, %v2775_v13  ;;  %v1703_v25 = vpop.f32.mrb[91].mxu0 }
 0x4e3   : > { %2392 = vtanh.f32 %v1701_v24  ;;  %v1704_v28 = vadd.f32 %v1703_v25, %v2775_v13 }
 0x4e4   : > { %2394 = vtanh.f32 %v1712_v27 }
 0x4e5   : > { %2396 = vtanh.f32 %v1704_v28 }
 0x4ec   : > { %v2391_v56 = vpop.eup %2390 }
 0x4ed   : > { %v2393_v29 = vpop.eup %2392  ;;  %1790 = vst.msk [vmem:[%s2786_s21 + $0xd0] sm:$0xff] %vm1763_vm1, %v2391_v56 }
 0x4ee   : > { %v2395_v30 = vpop.eup %2394  ;;  %1788 = vst.msk [vmem:[%s2786_s21 + $0xc0] sm:$0xff] %vm1763_vm1, %v2393_v29 }
 0x4ef   : > { %v2397_v31 = vpop.eup %2396  ;;  %1791 = vst.msk [vmem:[%s2786_s21 + $0xd8] sm:$0xff] %vm1763_vm1, %v2395_v30  ;;  %v2241_v32 = vpop.f32.mrb[92].mxu0 }
 0x4f0   : > { %1789 = vst.msk [vmem:[%s2786_s21 + $0xc8] sm:$0xff] %vm1763_vm1, %v2397_v31  ;;  %v1725_v33 = vadd.f32 %v2241_v32, %v2775_v13  ;;  %v1716_v34 = vpop.f32.mrb[93].mxu0 }
 0x4f1   : > { %v1717_v35 = vadd.f32 %v1716_v34, %v2775_v13  ;;  %v2242_v36 = vpop.f32.mrb[94].mxu0 }
 0x4f2   : > { %2398 = vtanh.f32 %v1725_v33  ;;  %v1728_v37 = vadd.f32 %v2242_v36, %v2775_v13  ;;  %v1719_v38 = vpop.f32.mrb[95].mxu0 }
 0x4f3   : > { %2400 = vtanh.f32 %v1717_v35  ;;  %v1720_v39 = vadd.f32 %v1719_v38, %v2775_v13 }
 0x4f4   : > { %2402 = vtanh.f32 %v1728_v37 }
 0x4f5   : > { %2404 = vtanh.f32 %v1720_v39 }
 0x4fc   : > { %v2399_v40 = vpop.eup %2398 }
 0x4fd   : > { %v2401_v41 = vpop.eup %2400  ;;  %1794 = vst.msk [vmem:[%s2786_s21 + $0xf0] sm:$0xff] %vm1763_vm1, %v2399_v40 }
 0x4fe   : > { %v2403_v42 = vpop.eup %2402  ;;  %1792 = vst.msk [vmem:[%s2786_s21 + $0xe0] sm:$0xff] %vm1763_vm1, %v2401_v41 }
 0x4ff   : > { %v2405_v43 = vpop.eup %2404  ;;  %1795 = vst.msk [vmem:[%s2786_s21 + $0xf8] sm:$0xff] %vm1763_vm1, %v2403_v42 }
 0x500   : > { %1793 = vst.msk [vmem:[%s2786_s21 + $0xe8] sm:$0xff] %vm1763_vm1, %v2405_v43 }
 0x501 PF: > { %s12_s9 = sadd.s32 1, %s2412_s9  }
 0x502   : > { %p9_p4 = scmp.ge.s32.totalorder %s12_s9, 5  }
 0x504   :  { %11 = sbr.rel (!%p9_p4) target bundleno = 1 (0x1), region = 58 }

// kernel: tpu_custom_call.1
= control target key start
LH: loop header
LB: loop body
LE: loop exit
PB: predicated region body
PF: predicated region fallthrough
CT: control target
= control target key end

     0   :  { %s2430_s9 = smov 0   ;;  %s2883_s0 = inlined_call_operand.vmem [shape: bf16[768,160], index: 0, kind: input, shape index: {}]   ;;  %s2884_s1 = inlined_call_operand.vmem [shape: bf16[688,128], index: 1, kind: input, shape index: {}]   ;;  %s2885_s2 = inlined_call_operand.vmem [shape: f32[768,8], index: 2, kind: output, shape index: {}]  }
   0x1 LB: > { %s1852_s10 = sadd.s32 4294967295, %s2412_s9   ;;  %p1856_p0 = scmp.ge.s32.totalorder %s2412_s9, 1  ;;  %s2412_s9 = sphi %s2430_s9, %s12_s9  }
   0x2   : > { %p114_p1 = scmp.lt.s32.totalorder %s2412_s9, 4 }
   0x4   : > { %p115_p2 = pnand %p1856_p0, %p114_p1 }
   0x5   : > { %v2252_v0 = vld [vmem:[%s2884_s1] sm:$0xff] (!%p115_p2)   ;;  %v2414_v1 = vmov (!%p115_p2), 0   ;;  %s1857_s13 = sshll.u32 (!%p115_p2), %s1852_s10, 5  ;;  %v2253_v2 = vld [vmem:[%s2884_s1 + $0x8] sm:$0xff] (!%p115_p2)   ;;  %v2254_v3 = vld [vmem:[%s2884_s1 + $0x10] sm:$0xff] (!%p115_p2)   ;;  %vm413_vm0 = vcmask (!%p115_p2), 261120   ;;  %v205_v51 = vlaneseq (!%p115_p2) }
   0x6   : > { %118 = sbr.rel (%p115_p2) target bundleno = 1281 (0x501), region = 28  ;;  %462 = vmatprep.subr.bf16.mxu0 (!%p115_p2), %v2414_v1  ;;  %p138_p3 = scmp.lt.s32.totalorder (!%p115_p2), %s1857_s13, 95  ;;  %v2255_v4 = vld [vmem:[%s2884_s1 + $0x18] sm:$0xff] (!%p115_p2)   ;;  %v2256_v6 = vld [vmem:[%s2884_s1 + $0x20] sm:$0xff] (!%p115_p2)   ;;  %v2257_v7 = vld [vmem:[%s2884_s1 + $0x28] sm:$0xff] (!%p115_p2)   ;;  %vm1763_vm1 = vcmask (!%p115_p2), 64512  }
   0x7   : > { %463 = vmatpush1.bf16.msra.mxu0 (!%p115_p2), %v2252_v0  ;;  %v2258_v8 = vld [vmem:[%s2884_s1 + $0x30] sm:$0xff] (!%p115_p2)   ;;  %v2259_v9 = vld [vmem:[%s2884_s1 + $0x38] sm:$0xff] (!%p115_p2)   ;;  %v2260_v10 = vld [vmem:[%s2884_s1 + $0x40] sm:$0xff] (!%p115_p2)   ;;  %v2550_v52 = vshrl.u32 (!%p115_p2), %v205_v51, 7 }
   0x8   : > { %464 = vmatprep.subr.bf16.mxu0 (!%p115_p2), %v2414_v1  ;;  %v2310_v11 = vld [vmem:[%s2884_s1 + $0x50] sm:$0xff] (!%p115_p2)   ;;  %v2311_v12 = vld [vmem:[%s2884_s1 + $0x58] sm:$0xff] (!%p115_p2)   ;;  %v2261_v13 = vld [vmem:[%s2884_s1 + $0x48] sm:$0xff] (!%p115_p2)  }
   0x9   : > { %2051 = vmatprep.subr.bf16.mxu1 (!%p115_p2), %v2310_v11  ;;  %v2312_v16 = vld [vmem:[%s2884_s1 + $0x60] sm:$0xff] (!%p115_p2)   ;;  %v2313_v17 = vld [vmem:[%s2884_s1 + $0x68] sm:$0xff] (!%p115_p2)   ;;  %v2314_v38 = vld [vmem:[%s2884_s1 + $0x70] sm:$0xff] (!%p115_p2)   ;;  %v207_v55 = vsub.s32 (!%p115_p2), 0, %v2550_v52 }
   0xa   : > { %2052 = vmatpush3.bf16.msra.mxu1 (!%p115_p2), %v2310_v11  ;;  %v2315_v41 = vld [vmem:[%s2884_s1 + $0x78] sm:$0xff] (!%p115_p2)   ;;  %v2316_v42 = vld [vmem:[%s2884_s1 + $0x80] sm:$0xff] (!%p115_p2)   ;;  %v2317_v45 = vld [vmem:[%s2884_s1 + $0x88] sm:$0xff] (!%p115_p2)  }
   0xb   : > { %465 = vmatpush1.bf16.msra.mxu0 (!%p115_p2), %v2253_v2  ;;  %2053 = vmatprep.subr.bf16.mxu1 (!%p115_p2), %v2311_v12  ;;  %v151_v53 = vld [vmem:[%s2884_s1 + $0x150] sm:$0xf] (!%p115_p2) }
   0xc   : > { %466 = vmatprep.subr.bf16.mxu0 (!%p115_p2), %v2414_v1  ;;  %v2555_v54 = vunpack.c.l.bf16 (!%p115_p2), %v151_v53  ;;  %v2318_v60 = vld [vmem:[%s2884_s1 + $0x90] sm:$0xff] (!%p115_p2)  }
   0xd   : > { %s2887_s13 = smov (!%p138_p3, %s1857_s13), 95 }
   0xe   : > { %s1954_s18 = sshll.u32 %s2887_s13, 3  ;;  %2054 = vmatpush3.bf16.msra.mxu1 %v2311_v12  ;;  %v2559_v56 = vrot.slane %v2555_v54, %v207_v55  ;;  %v2319_v12 = vld [vmem:[%s2884_s1 + $0x98] sm:$0xff]  }
   0xf   : > { %s2455_s21 = scalar_lea.vmem %s2883_s0, %s1954_s18  ;;  %467 = vmatpush1.bf16.msra.mxu0 %v2254_v3  ;;  %2055 = vmatprep.subr.bf16.mxu1 %v2312_v16 }
  0x10   : > { %468 = vmatprep.subr.bf16.mxu0 %v2414_v1  ;;  %v2264_v5 = vld [vmem:[%s2455_s21 + $0x4] ss:$8 sps:$4 sm:$0xff]   ;;  %v2262_v14 = vld [vmem:[%s2455_s21] ss:$8 sps:$4 sm:$0xff]   ;;  %v2265_v15 = vld [vmem:[%s2455_s21 + $0x14] ss:$8 sps:$4 sm:$0xff]  }
  0x11   : > { %1904 = vmatprep.mubr.msk.bf16.mxu0 %vm413_vm0, %v2264_v5  ;;  %v2267_v18 = vld [vmem:[%s2455_s21 + $0x10] ss:$8 sps:$4 sm:$0xff]   ;;  %v2268_v19 = vld [vmem:[%s2455_s21 + $0x24] ss:$8 sps:$4 sm:$0xff]   ;;  %v2270_v20 = vld [vmem:[%s2455_s21 + $0x20] ss:$8 sps:$4 sm:$0xff]  }
  0x12   : > { %2056 = vmatpush3.bf16.msra.mxu1 %v2312_v16  ;;  %v2271_v21 = vld [vmem:[%s2455_s21 + $0x34] ss:$8 sps:$4 sm:$0xff]   ;;  %v2273_v22 = vld [vmem:[%s2455_s21 + $0x30] ss:$8 sps:$4 sm:$0xff]   ;;  %v2274_v23 = vld [vmem:[%s2455_s21 + $0x44] ss:$8 sps:$4 sm:$0xff]  }
  0x13   : > { %469 = vmatpush1.bf16.msra.mxu0 %v2255_v4  ;;  %2057 = vmatprep.subr.bf16.mxu1 %v2313_v17  ;;  %v2276_v24 = vld [vmem:[%s2455_s21 + $0x40] ss:$8 sps:$4 sm:$0xff]   ;;  %v2277_v25 = vld [vmem:[%s2455_s21 + $0x54] ss:$8 sps:$4 sm:$0xff]   ;;  %v2279_v26 = vld [vmem:[%s2455_s21 + $0x50] ss:$8 sps:$4 sm:$0xff]  }
  0x14   : > { %470 = vmatprep.subr.bf16.mxu0 %v2414_v1  ;;  %v2280_v27 = vld [vmem:[%s2455_s21 + $0x64] ss:$8 sps:$4 sm:$0xff]   ;;  %v2282_v28 = vld [vmem:[%s2455_s21 + $0x60] ss:$8 sps:$4 sm:$0xff]   ;;  %v2283_v29 = vld [vmem:[%s2455_s21 + $0x74] ss:$8 sps:$4 sm:$0xff]  }
  0x15   : > { %v2285_v30 = vld [vmem:[%s2455_s21 + $0x70] ss:$8 sps:$4 sm:$0xff]   ;;  %v2286_v31 = vld [vmem:[%s2455_s21 + $0x84] ss:$8 sps:$4 sm:$0xff]   ;;  %v2288_v32 = vld [vmem:[%s2455_s21 + $0x80] ss:$8 sps:$4 sm:$0xff]  }
  0x16   : > { %2058 = vmatpush3.bf16.msra.mxu1 %v2313_v17  ;;  %v2289_v33 = vld [vmem:[%s2455_s21 + $0x94] ss:$8 sps:$4 sm:$0xff]   ;;  %v2291_v34 = vld [vmem:[%s2455_s21 + $0x90] ss:$8 sps:$4 sm:$0xff]   ;;  %v2292_v35 = vld [vmem:[%s2455_s21 + $0xa4] ss:$8 sps:$4 sm:$0xff]  }
  0x17   : > { %471 = vmatpush1.bf16.msra.mxu0 %v2256_v6  ;;  %v2294_v36 = vld [vmem:[%s2455_s21 + $0xa0] ss:$8 sps:$4 sm:$0xff]   ;;  %v2295_v37 = vld [vmem:[%s2455_s21 + $0xb4] ss:$8 sps:$4 sm:$0xff]   ;;  %v2297_v39 = vld [vmem:[%s2455_s21 + $0xb0] ss:$8 sps:$4 sm:$0xff]   ;;  %2059 = vmatprep.subr.bf16.mxu1 %v2314_v38 }
  0x18   : > { %472 = vmatprep.subr.bf16.mxu0 %v2414_v1  ;;  %v2298_v40 = vld [vmem:[%s2455_s21 + $0xc4] ss:$8 sps:$4 sm:$0xff]   ;;  %v2300_v43 = vld [vmem:[%s2455_s21 + $0xc0] ss:$8 sps:$4 sm:$0xff]   ;;  %v2301_v44 = vld [vmem:[%s2455_s21 + $0xd4] ss:$8 sps:$4 sm:$0xff]  }
  0x19   : > { %v2303_v46 = vld [vmem:[%s2455_s21 + $0xd0] ss:$8 sps:$4 sm:$0xff]   ;;  %v2304_v47 = vld [vmem:[%s2455_s21 + $0xe4] ss:$8 sps:$4 sm:$0xff]   ;;  %v2306_v48 = vld [vmem:[%s2455_s21 + $0xe0] ss:$8 sps:$4 sm:$0xff]  }
  0x1a   : > { %2060 = vmatpush3.bf16.msra.mxu1 %v2314_v38  ;;  %v2307_v49 = vld [vmem:[%s2455_s21 + $0xf4] ss:$8 sps:$4 sm:$0xff]   ;;  %v2309_v50 = vld [vmem:[%s2455_s21 + $0xf0] ss:$8 sps:$4 sm:$0xff]   ;;  %s2786_s21 = scalar_lea.vmem %s2885_s2, %s1954_s18 }
  0x1b   : > { %473 = vmatpush1.bf16.msra.mxu0 %v2257_v7  ;;  %2061 = vmatprep.subr.bf16.mxu1 %v2315_v41 }
  0x1c   : > { %474 = vmatprep.subr.bf16.mxu0 %v2414_v1 }
  0x1e   : > { %2062 = vmatpush3.bf16.msra.mxu1 %v2315_v41 }
  0x1f   : > { %475 = vmatpush1.bf16.msra.mxu0 %v2258_v8  ;;  %2063 = vmatprep.subr.bf16.mxu1 %v2316_v42 }
  0x20   : > { %476 = vmatprep.subr.bf16.mxu0 %v2414_v1 }
  0x22   : > { %2064 = vmatpush3.bf16.msra.mxu1 %v2316_v42 }
  0x23   : > { %477 = vmatpush1.bf16.msra.mxu0 %v2259_v9  ;;  %2065 = vmatprep.subr.bf16.mxu1 %v2317_v45 }
  0x24   : > { %478 = vmatprep.subr.bf16.mxu0 %v2414_v1 }
  0x26   : > { %2066 = vmatpush3.bf16.msra.mxu1 %v2317_v45 }
  0x27   : > { %479 = vmatpush1.bf16.msra.mxu0 %v2260_v10  ;;  %2099 = vmatprep.subr.bf16.mxu1 %v2318_v60 }
  0x28   : > { %480 = vmatprep.subr.bf16.mxu0 %v2414_v1 }
  0x2b   : > { %481 = vmatpush1.bf16.msra.mxu0 %v2261_v13 }
  0x2e   : > { %495 = vmatmul.mubr.bf16.vlgmr.msra.gmra.mrb[0].mxu0 %v2262_v14 }
  0x2f   : > { %1905 = vmatprep.mubr.msk.bf16.mxu0 %vm413_vm0, %v2265_v15 }
  0x36   : > { %503 = vmatmul.mubr.bf16.gmra.mrb[4].mxu0 %v2267_v18 }
  0x37   : > { %1906 = vmatprep.mubr.msk.bf16.mxu0 %vm413_vm0, %v2268_v19  ;;  %v2320_v19 = vld [vmem:[%s2884_s1 + $0xa0] sm:$0xff]  }
  0x3e   : > { %511 = vmatmul.mubr.bf16.gmra.mrb[8].mxu0 %v2270_v20 }
  0x3f   : > { %1907 = vmatprep.mubr.msk.bf16.mxu0 %vm413_vm0, %v2271_v21 }
  0x46   : > { %519 = vmatmul.mubr.bf16.gmra.mrb[12].mxu0 %v2273_v22 }
  0x47   : > { %1908 = vmatprep.mubr.msk.bf16.mxu0 %vm413_vm0, %v2274_v23  ;;  %v2321_v23 = vld [vmem:[%s2884_s1 + $0xa8] sm:$0xff]  }
  0x4e   : > { %527 = vmatmul.mubr.bf16.gmra.mrb[16].mxu0 %v2276_v24 }
  0x4f   : > { %1909 = vmatprep.mubr.msk.bf16.mxu0 %vm413_vm0, %v2277_v25 }
  0x56   : > { %535 = vmatmul.mubr.bf16.gmra.mrb[20].mxu0 %v2279_v26 }
  0x57   : > { %1910 = vmatprep.mubr.msk.bf16.mxu0 %vm413_vm0, %v2280_v27 }
  0x5e   : > { %543 = vmatmul.mubr.bf16.gmra.mrb[24].mxu0 %v2282_v28 }
  0x5f   : > { %1911 = vmatprep.mubr.msk.bf16.mxu0 %vm413_vm0, %v2283_v29 }
  0x66   : > { %551 = vmatmul.mubr.bf16.gmra.mrb[28].mxu0 %v2285_v30  ;;  %v2322_v30 = vld [vmem:[%s2884_s1 + $0xb0] sm:$0xff]  }
  0x67   : > { %1912 = vmatprep.mubr.msk.bf16.mxu0 %vm413_vm0, %v2286_v31 }
  0x6e   : > { %559 = vmatmul.mubr.bf16.gmra.mrb[32].mxu0 %v2288_v32 }
  0x6f   : > { %1913 = vmatprep.mubr.msk.bf16.mxu0 %vm413_vm0, %v2289_v33 }
  0x76   : > { %567 = vmatmul.mubr.bf16.gmra.mrb[36].mxu0 %v2291_v34  ;;  %v2323_v34 = vld [vmem:[%s2884_s1 + $0xb8] sm:$0xff]  }
  0x77   : > { %1914 = vmatprep.mubr.msk.bf16.mxu0 %vm413_vm0, %v2292_v35 }
  0x7e   : > { %575 = vmatmul.mubr.bf16.gmra.mrb[40].mxu0 %v2294_v36 }
  0x7f   : > { %1915 = vmatprep.mubr.msk.bf16.mxu0 %vm413_vm0, %v2295_v37 }
  0x86   : > { %583 = vmatmul.mubr.bf16.gmra.mrb[44].mxu0 %v2297_v39 }
  0x87   : > { %1916 = vmatprep.mubr.msk.bf16.mxu0 %vm413_vm0, %v2298_v40 }
  0x8e   : > { %591 = vmatmul.mubr.bf16.gmra.mrb[48].mxu0 %v2300_v43 }
  0x8f   : > { %1917 = vmatprep.mubr.msk.bf16.mxu0 %vm413_vm0, %v2301_v44 }
  0x96   : > { %599 = vmatmul.mubr.bf16.gmra.mrb[52].mxu0 %v2303_v46 }
  0x97   : > { %1918 = vmatprep.mubr.msk.bf16.mxu0 %vm413_vm0, %v2304_v47 }
  0x9e   : > { %607 = vmatmul.mubr.bf16.gmra.mrb[56].mxu0 %v2306_v48 }
  0x9f   : > { %1919 = vmatprep.mubr.msk.bf16.mxu0 %vm413_vm0, %v2307_v49 }
  0xa6   : > { %615 = vmatmul.mubr.bf16.gmra.mrb[60].mxu0 %v2309_v50 }
 0x101   : > { %v496_v57 = vpop.f32.mrb[0].mxu0 }
 0x102   : > { %v497_v58 = vadd.f32 %v496_v57, %v2559_v56  ;;  %v498_v59 = vpop.f32.mrb[1].mxu0 }
 0x103   : > { %v499_v61 = vpop.f32.mrb[2].mxu0 }
 0x104   : > { %v500_v62 = vadd.f32 %v499_v61, %v2559_v56  ;;  %v501_v63 = vpop.f32.mrb[3].mxu0  ;;  %v623_v0 = vmax.f32 %v497_v58, 0.0 }
 0x106   : > { %v624_v1 = vmax.f32 %v500_v62, 0.0 }
 0x108   : > { %v671_v2 = vpack.c.bf16 %v624_v1, %v623_v0 }
 0x109   : > { %v504_v3 = vpop.f32.mrb[4].mxu0 }
 0x10a   : > { %v505_v4 = vadd.f32 %v504_v3, %v2559_v56  ;;  %v506_v5 = vpop.f32.mrb[5].mxu0  ;;  %2067 = vmatprep.mubr.bf16.mxu1 %v671_v2 }
 0x10b   : > { %v507_v6 = vpop.f32.mrb[6].mxu0 }
 0x10c   : > { %v508_v7 = vadd.f32 %v507_v6, %v2559_v56  ;;  %v509_v8 = vpop.f32.mrb[7].mxu0  ;;  %v625_v9 = vmax.f32 %v505_v4, 0.0 }
 0x10e   : > { %v626_v10 = vmax.f32 %v508_v7, 0.0 }
 0x110   : > { %v672_v11 = vpack.c.bf16 %v626_v10, %v625_v9 }
 0x111   : > { %v512_v13 = vpop.f32.mrb[8].mxu0 }
 0x112   : > { %v513_v14 = vadd.f32 %v512_v13, %v2559_v56  ;;  %v514_v15 = vpop.f32.mrb[9].mxu0  ;;  %2068 = vmatmul.mubr.bf16.vlgmr.msra.gmra.mrb[0].mxu1 %v672_v11 }
 0x113   : > { %v515_v16 = vpop.f32.mrb[10].mxu0  ;;  %2100 = vmatpush3.bf16.msra.mxu1 %v2318_v60 }
 0x114   : > { %v516_v17 = vadd.f32 %v515_v16, %v2559_v56  ;;  %v517_v18 = vpop.f32.mrb[11].mxu0  ;;  %2101 = vmatprep.subr.bf16.mxu1 %v2319_v12  ;;  %v627_v20 = vmax.f32 %v513_v14, 0.0 }
 0x116   : > { %v628_v21 = vmax.f32 %v516_v17, 0.0 }
 0x117   : > { %2102 = vmatpush3.bf16.msra.mxu1 %v2319_v12 }
 0x118   : > { %v673_v22 = vpack.c.bf16 %v628_v21, %v627_v20  ;;  %2103 = vmatprep.subr.bf16.mxu1 %v2320_v19 }
 0x119   : > { %v520_v24 = vpop.f32.mrb[12].mxu0 }
 0x11a   : > { %v521_v25 = vadd.f32 %v520_v24, %v2559_v56  ;;  %v522_v26 = vpop.f32.mrb[13].mxu0  ;;  %2071 = vmatprep.mubr.bf16.mxu1 %v673_v22 }
 0x11b   : > { %v523_v27 = vpop.f32.mrb[14].mxu0  ;;  %2104 = vmatpush3.bf16.msra.mxu1 %v2320_v19 }
 0x11c   : > { %v524_v28 = vadd.f32 %v523_v27, %v2559_v56  ;;  %v525_v29 = vpop.f32.mrb[15].mxu0  ;;  %2105 = vmatprep.subr.bf16.mxu1 %v2321_v23  ;;  %v629_v31 = vmax.f32 %v521_v25, 0.0 }
 0x11e   : > { %v630_v32 = vmax.f32 %v524_v28, 0.0 }
 0x11f   : > { %2106 = vmatpush3.bf16.msra.mxu1 %v2321_v23 }
 0x120   : > { %v674_v33 = vpack.c.bf16 %v630_v32, %v629_v31  ;;  %2107 = vmatprep.subr.bf16.mxu1 %v2322_v30 }
 0x121   : > { %v528_v35 = vpop.f32.mrb[16].mxu0 }
 0x122   : > { %v529_v36 = vadd.f32 %v528_v35, %v2559_v56  ;;  %v530_v37 = vpop.f32.mrb[17].mxu0  ;;  %2072 = vmatmul.mubr.bf16.gmra.mrb[4].mxu1 %v674_v33 }
 0x123   : > { %v531_v38 = vpop.f32.mrb[18].mxu0  ;;  %2108 = vmatpush3.bf16.msra.mxu1 %v2322_v30 }
 0x124   : > { %v532_v39 = vadd.f32 %v531_v38, %v2559_v56  ;;  %v533_v40 = vpop.f32.mrb[19].mxu0  ;;  %2109 = vmatprep.subr.bf16.mxu1 %v2323_v34  ;;  %v631_v41 = vmax.f32 %v529_v36, 0.0 }
 0x126   : > { %v632_v42 = vmax.f32 %v532_v39, 0.0 }
 0x127   : > { %2110 = vmatpush3.bf16.msra.mxu1 %v2323_v34 }
 0x128   : > { %v675_v43 = vpack.c.bf16 %v632_v42, %v631_v41 }
 0x129   : > { %v536_v44 = vpop.f32.mrb[20].mxu0 }
 0x12a   : > { %v537_v45 = vadd.f32 %v536_v44, %v2559_v56  ;;  %v538_v46 = vpop.f32.mrb[21].mxu0  ;;  %2075 = vmatprep.mubr.bf16.mxu1 %v675_v43 }
 0x12b   : > { %v539_v47 = vpop.f32.mrb[22].mxu0 }
 0x12c   : > { %v540_v48 = vadd.f32 %v539_v47, %v2559_v56  ;;  %v541_v49 = vpop.f32.mrb[23].mxu0  ;;  %v633_v50 = vmax.f32 %v537_v45, 0.0 }
 0x12e   : > { %v634_v51 = vmax.f32 %v540_v48, 0.0 }
 0x130   : > { %v676_v53 = vpack.c.bf16 %v634_v51, %v633_v50 }
 0x131   : > { %v544_v55 = vpop.f32.mrb[24].mxu0 }
 0x132   : > { %v545_v57 = vadd.f32 %v544_v55, %v2559_v56  ;;  %v546_v58 = vpop.f32.mrb[25].mxu0  ;;  %2076 = vmatmul.mubr.bf16.gmra.mrb[8].mxu1 %v676_v53 }
 0x133   : > { %v547_v59 = vpop.f32.mrb[26].mxu0 }
 0x134   : > { %v548_v60 = vadd.f32 %v547_v59, %v2559_v56  ;;  %v549_v61 = vpop.f32.mrb[27].mxu0  ;;  %v635_v62 = vmax.f32 %v545_v57, 0.0  ;;  %v2324_v57 = vld [vmem:[%s2884_s1 + $0xc0] sm:$0xff]  }
 0x135   : > { %2111 = vmatprep.subr.bf16.mxu1 %v2324_v57 }
 0x136   : > { %v636_v63 = vmax.f32 %v548_v60, 0.0  ;;  %2112 = vmatpush3.bf16.msra.mxu1 %v2324_v57 }
 0x138   : > { %v677_v0 = vpack.c.bf16 %v636_v63, %v635_v62  ;;  %v2325_v62 = vld [vmem:[%s2884_s1 + $0xc8] sm:$0xff]  }
 0x139   : > { %v552_v1 = vpop.f32.mrb[28].mxu0  ;;  %2113 = vmatprep.subr.bf16.mxu1 %v2325_v62 }
 0x13a   : > { %v553_v2 = vadd.f32 %v552_v1, %v2559_v56  ;;  %v554_v3 = vpop.f32.mrb[29].mxu0  ;;  %2079 = vmatprep.mubr.bf16.mxu1 %v677_v0  ;;  %2114 = vmatpush3.bf16.msra.mxu1 %v2325_v62 }
 0x13b   : > { %v555_v4 = vpop.f32.mrb[30].mxu0 }
 0x13c   : > { %v556_v5 = vadd.f32 %v555_v4, %v2559_v56  ;;  %v557_v6 = vpop.f32.mrb[31].mxu0  ;;  %v637_v7 = vmax.f32 %v553_v2, 0.0 }
 0x13e   : > { %v638_v8 = vmax.f32 %v556_v5, 0.0 }
 0x140   : > { %v678_v9 = vpack.c.bf16 %v638_v8, %v637_v7 }
 0x141   : > { %v560_v10 = vpop.f32.mrb[32].mxu0 }
 0x142   : > { %v561_v11 = vadd.f32 %v560_v10, %v2559_v56  ;;  %v562_v12 = vpop.f32.mrb[33].mxu0  ;;  %2080 = vmatmul.mubr.bf16.gmra.mrb[12].mxu1 %v678_v9 }
 0x143   : > { %v563_v13 = vpop.f32.mrb[34].mxu0 }
 0x144   : > { %v564_v14 = vadd.f32 %v563_v13, %v2559_v56  ;;  %v565_v15 = vpop.f32.mrb[35].mxu0  ;;  %v639_v16 = vmax.f32 %v561_v11, 0.0 }
 0x146   : > { %v640_v17 = vmax.f32 %v564_v14, 0.0 }
 0x148   : > { %v679_v18 = vpack.c.bf16 %v640_v17, %v639_v16 }
 0x149   : > { %v568_v19 = vpop.f32.mrb[36].mxu0 }
 0x14a   : > { %v569_v20 = vadd.f32 %v568_v19, %v2559_v56  ;;  %v570_v21 = vpop.f32.mrb[37].mxu0  ;;  %2083 = vmatprep.mubr.bf16.mxu1 %v679_v18 }
 0x14b   : > { %v571_v22 = vpop.f32.mrb[38].mxu0 }
 0x14c   : > { %v572_v23 = vadd.f32 %v571_v22, %v2559_v56  ;;  %v573_v24 = vpop.f32.mrb[39].mxu0  ;;  %v641_v25 = vmax.f32 %v569_v20, 0.0 }
 0x14d   : > { %v2326_v24 = vld [vmem:[%s2884_s1 + $0xd0] sm:$0xff]  }
 0x14e   : > { %v642_v26 = vmax.f32 %v572_v23, 0.0  ;;  %v689_v23 = vsub.s32 1, %v2550_v52  ;;  %2147 = vmatprep.subr.bf16.mxu1 %v2326_v24 }
 0x150   : > { %v680_v27 = vpack.c.bf16 %v642_v26, %v641_v25  ;;  %v2622_v25 = vrot.slane %v2555_v54, %v689_v23 }
 0x151   : > { %v576_v28 = vpop.f32.mrb[40].mxu0 }
 0x152   : > { %v577_v29 = vadd.f32 %v576_v28, %v2559_v56  ;;  %v578_v30 = vpop.f32.mrb[41].mxu0  ;;  %2084 = vmatmul.mubr.bf16.gmra.mrb[16].mxu1 %v680_v27 }
 0x153   : > { %v579_v31 = vpop.f32.mrb[42].mxu0 }
 0x154   : > { %v580_v32 = vadd.f32 %v579_v31, %v2559_v56  ;;  %v581_v33 = vpop.f32.mrb[43].mxu0  ;;  %v643_v34 = vmax.f32 %v577_v29, 0.0 }
 0x156   : > { %v644_v35 = vmax.f32 %v580_v32, 0.0 }
 0x158   : > { %v681_v36 = vpack.c.bf16 %v644_v35, %v643_v34 }
 0x159   : > { %v584_v37 = vpop.f32.mrb[44].mxu0 }
 0x15a   : > { %v585_v38 = vadd.f32 %v584_v37, %v2559_v56  ;;  %v586_v39 = vpop.f32.mrb[45].mxu0  ;;  %2087 = vmatprep.mubr.bf16.mxu1 %v681_v36 }
 0x15b   : > { %v587_v40 = vpop.f32.mrb[46].mxu0  ;;  %v2327_v39 = vld [vmem:[%s2884_s1 + $0xd8] sm:$0xff]  }
 0x15c   : > { %v588_v41 = vadd.f32 %v587_v40, %v2559_v56  ;;  %v589_v42 = vpop.f32.mrb[47].mxu0  ;;  %v645_v43 = vmax.f32 %v585_v38, 0.0  ;;  %v2328_v40 = vld [vmem:[%s2884_s1 + $0xe0] sm:$0xff]  }
 0x15e   : > { %v646_v44 = vmax.f32 %v588_v41, 0.0 }
 0x160   : > { %v682_v45 = vpack.c.bf16 %v646_v44, %v645_v43  ;;  %v2329_v44 = vld [vmem:[%s2884_s1 + $0xe8] sm:$0xff]  }
 0x161   : > { %v592_v46 = vpop.f32.mrb[48].mxu0 }
 0x162   : > { %v593_v47 = vadd.f32 %v592_v46, %v2559_v56  ;;  %v594_v48 = vpop.f32.mrb[49].mxu0  ;;  %2088 = vmatmul.mubr.bf16.gmra.mrb[20].mxu1 %v682_v45 }
 0x163   : > { %v595_v49 = vpop.f32.mrb[50].mxu0 }
 0x164   : > { %v596_v50 = vadd.f32 %v595_v49, %v2559_v56  ;;  %v597_v51 = vpop.f32.mrb[51].mxu0  ;;  %v647_v53 = vmax.f32 %v593_v47, 0.0 }
 0x166   : > { %v648_v55 = vmax.f32 %v596_v50, 0.0 }
 0x168   : > { %v683_v58 = vpack.c.bf16 %v648_v55, %v647_v53  ;;  %v2330_v53 = vld [vmem:[%s2884_s1 + $0xf0] sm:$0xff]  }
 0x169   : > { %v600_v59 = vpop.f32.mrb[52].mxu0 }
 0x16a   : > { %v601_v60 = vadd.f32 %v600_v59, %v2559_v56  ;;  %v602_v61 = vpop.f32.mrb[53].mxu0  ;;  %2091 = vmatprep.mubr.bf16.mxu1 %v683_v58 }
 0x16b   : > { %v603_v63 = vpop.f32.mrb[54].mxu0 }
 0x16c   : > { %v604_v0 = vadd.f32 %v603_v63, %v2559_v56  ;;  %v605_v1 = vpop.f32.mrb[55].mxu0  ;;  %v649_v2 = vmax.f32 %v601_v60, 0.0  ;;  %v2331_v60 = vld [vmem:[%s2884_s1 + $0xf8] sm:$0xff]  }
 0x16e   : > { %v650_v3 = vmax.f32 %v604_v0, 0.0 }
 0x170   : > { %v684_v4 = vpack.c.bf16 %v650_v3, %v649_v2 }
 0x171   : > { %v608_v5 = vpop.f32.mrb[56].mxu0 }
 0x172   : > { %v609_v6 = vadd.f32 %v608_v5, %v2559_v56  ;;  %v610_v7 = vpop.f32.mrb[57].mxu0  ;;  %2092 = vmatmul.mubr.bf16.gmra.mrb[24].mxu1 %v684_v4 }
 0x173   : > { %v611_v8 = vpop.f32.mrb[58].mxu0 }
 0x174   : > { %v612_v9 = vadd.f32 %v611_v8, %v2559_v56  ;;  %v613_v10 = vpop.f32.mrb[59].mxu0  ;;  %v651_v11 = vmax.f32 %v609_v6, 0.0 }
 0x176   : > { %v652_v12 = vmax.f32 %v612_v9, 0.0 }
 0x178   : > { %v685_v13 = vpack.c.bf16 %v652_v12, %v651_v11 }
 0x179   : > { %v616_v14 = vpop.f32.mrb[60].mxu0 }
 0x17a   : > { %v617_v15 = vadd.f32 %v616_v14, %v2559_v56  ;;  %v618_v16 = vpop.f32.mrb[61].mxu0  ;;  %2095 = vmatprep.mubr.bf16.mxu1 %v685_v13 }
 0x17b   : > { %v619_v17 = vpop.f32.mrb[62].mxu0 }
 0x17c   : > { %v620_v18 = vadd.f32 %v619_v17, %v2559_v56  ;;  %v621_v19 = vpop.f32.mrb[63].mxu0  ;;  %v653_v20 = vmax.f32 %v617_v15, 0.0 }
 0x17e   : > { %v654_v21 = vmax.f32 %v620_v18, 0.0 }
 0x180   : > { %v686_v22 = vpack.c.bf16 %v654_v21, %v653_v20 }
 0x182   : > { %2096 = vmatmul.mubr.bf16.gmra.mrb[28].mxu1 %v686_v22 }
 0x1e5   : > { %v2069_v26 = vpop.f32.mrb[0].mxu1 }
 0x1e6   : > { %v782_v27 = vadd.f32 %v2069_v26, %v2622_v25  ;;  %v773_v28 = vpop.f32.mrb[1].mxu1 }
 0x1e7   : > { %v774_v56 = vadd.f32 %v773_v28, %v2622_v25  ;;  %v2070_v29 = vpop.f32.mrb[2].mxu1 }
 0x1e8   : > { %v785_v30 = vadd.f32 %v2070_v29, %v2622_v25  ;;  %v776_v31 = vpop.f32.mrb[3].mxu1  ;;  %v902_v33 = vmax.f32 %v782_v27, 0.0 }
 0x1e9   : > { %v777_v32 = vadd.f32 %v776_v31, %v2622_v25  ;;  %v900_v35 = vmax.f32 %v774_v56, 0.0 }
 0x1ea   : > { %v903_v34 = vmax.f32 %v785_v30, 0.0 }
 0x1eb   : > { %v901_v36 = vmax.f32 %v777_v32, 0.0 }
 0x1ec   : > { %v949_v37 = vpack.c.bf16 %v903_v34, %v902_v33 }
 0x1ed   : > { %v948_v38 = vpack.c.bf16 %v901_v36, %v900_v35 }
 0x1ef   : > { %2115 = vmatprep.mubr.bf16.mxu1 %v948_v38 }
 0x1f0   : > { %2116 = vmatmul.mubr.bf16.vlgmr.msra.gmra.mrb[32].mxu1 %v949_v37 }
 0x1f1   : > { %2148 = vmatpush3.bf16.msra.mxu1 %v2326_v24 }
 0x1f2   : > { %2149 = vmatprep.subr.bf16.mxu1 %v2327_v39 }
 0x1f5   : > { %v2073_v41 = vpop.f32.mrb[4].mxu1  ;;  %2150 = vmatpush3.bf16.msra.mxu1 %v2327_v39 }
 0x1f6   : > { %v798_v42 = vadd.f32 %v2073_v41, %v2622_v25  ;;  %v789_v43 = vpop.f32.mrb[5].mxu1  ;;  %2151 = vmatprep.subr.bf16.mxu1 %v2328_v40 }
 0x1f7   : > { %v790_v45 = vadd.f32 %v789_v43, %v2622_v25  ;;  %v2074_v46 = vpop.f32.mrb[6].mxu1 }
 0x1f8   : > { %v801_v47 = vadd.f32 %v2074_v46, %v2622_v25  ;;  %v792_v48 = vpop.f32.mrb[7].mxu1  ;;  %v906_v50 = vmax.f32 %v798_v42, 0.0 }
 0x1f9   : > { %v793_v49 = vadd.f32 %v792_v48, %v2622_v25  ;;  %2152 = vmatpush3.bf16.msra.mxu1 %v2328_v40  ;;  %v904_v55 = vmax.f32 %v790_v45, 0.0 }
 0x1fa   : > { %v907_v51 = vmax.f32 %v801_v47, 0.0  ;;  %2153 = vmatprep.subr.bf16.mxu1 %v2329_v44 }
 0x1fb   : > { %v905_v57 = vmax.f32 %v793_v49, 0.0 }
 0x1fc   : > { %v951_v58 = vpack.c.bf16 %v907_v51, %v906_v50 }
 0x1fd   : > { %v950_v59 = vpack.c.bf16 %v905_v57, %v904_v55  ;;  %2154 = vmatpush3.bf16.msra.mxu1 %v2329_v44  ;;  %v2332_v55 = vld [vmem:[%s2884_s1 + $0x100] sm:$0xff]  }
 0x1fe   : > { %2155 = vmatprep.subr.bf16.mxu1 %v2330_v53 }
 0x1ff   : > { %2119 = vmatprep.mubr.bf16.mxu1 %v950_v59 }
 0x200   : > { %2120 = vmatmul.mubr.bf16.gmra.mrb[36].mxu1 %v951_v58 }
 0x201   : > { %2156 = vmatpush3.bf16.msra.mxu1 %v2330_v53 }
 0x202   : > { %2157 = vmatprep.subr.bf16.mxu1 %v2331_v60 }
 0x205   : > { %v2077_v61 = vpop.f32.mrb[8].mxu1  ;;  %2158 = vmatpush3.bf16.msra.mxu1 %v2331_v60 }
 0x206   : > { %v814_v62 = vadd.f32 %v2077_v61, %v2622_v25  ;;  %v805_v63 = vpop.f32.mrb[9].mxu1  ;;  %2159 = vmatprep.subr.bf16.mxu1 %v2332_v55 }
 0x207   : > { %v806_v0 = vadd.f32 %v805_v63, %v2622_v25  ;;  %v2078_v1 = vpop.f32.mrb[10].mxu1 }
 0x208   : > { %v817_v2 = vadd.f32 %v2078_v1, %v2622_v25  ;;  %v808_v3 = vpop.f32.mrb[11].mxu1  ;;  %v910_v5 = vmax.f32 %v814_v62, 0.0 }
 0x209   : > { %v809_v4 = vadd.f32 %v808_v3, %v2622_v25  ;;  %v908_v7 = vmax.f32 %v806_v0, 0.0  ;;  %2160 = vmatpush3.bf16.msra.mxu1 %v2332_v55  ;;  %v2333_v0 = vld [vmem:[%s2884_s1 + $0x108] sm:$0xff]  }
 0x20a   : > { %v911_v6 = vmax.f32 %v817_v2, 0.0  ;;  %2161 = vmatprep.subr.bf16.mxu1 %v2333_v0 }
 0x20b   : > { %v909_v8 = vmax.f32 %v809_v4, 0.0 }
 0x20c   : > { %v953_v9 = vpack.c.bf16 %v911_v6, %v910_v5 }
 0x20d   : > { %v952_v10 = vpack.c.bf16 %v909_v8, %v908_v7  ;;  %2162 = vmatpush3.bf16.msra.mxu1 %v2333_v0 }
 0x20f   : > { %2123 = vmatprep.mubr.bf16.mxu1 %v952_v10 }
 0x210   : > { %2124 = vmatmul.mubr.bf16.gmra.mrb[40].mxu1 %v953_v9 }
 0x215   : > { %v2081_v11 = vpop.f32.mrb[12].mxu1 }
 0x216   : > { %v830_v12 = vadd.f32 %v2081_v11, %v2622_v25  ;;  %v821_v13 = vpop.f32.mrb[13].mxu1 }
 0x217   : > { %v822_v14 = vadd.f32 %v821_v13, %v2622_v25  ;;  %v2082_v15 = vpop.f32.mrb[14].mxu1 }
 0x218   : > { %v833_v16 = vadd.f32 %v2082_v15, %v2622_v25  ;;  %v824_v17 = vpop.f32.mrb[15].mxu1  ;;  %v914_v19 = vmax.f32 %v830_v12, 0.0 }
 0x219   : > { %v825_v18 = vadd.f32 %v824_v17, %v2622_v25  ;;  %v912_v21 = vmax.f32 %v822_v14, 0.0 }
 0x21a   : > { %v915_v20 = vmax.f32 %v833_v16, 0.0 }
 0x21b   : > { %v913_v22 = vmax.f32 %v825_v18, 0.0 }
 0x21c   : > { %v955_v23 = vpack.c.bf16 %v915_v20, %v914_v19 }
 0x21d   : > { %v954_v24 = vpack.c.bf16 %v913_v22, %v912_v21  ;;  %v966_v22 = vsub.s32 2, %v2550_v52 }
 0x21f   : > { %2127 = vmatprep.mubr.bf16.mxu1 %v954_v24  ;;  %v2335_v24 = vld [vmem:[%s2884_s1 + $0x118] sm:$0xff]  }
 0x220   : > { %2128 = vmatmul.mubr.bf16.gmra.mrb[44].mxu1 %v955_v23  ;;  %v2334_v23 = vld [vmem:[%s2884_s1 + $0x110] sm:$0xff]  }
 0x221   : > { %2195 = vmatprep.subr.bf16.mxu0 %v2334_v23 }
 0x222   : > { %2196 = vmatpush3.bf16.msra.mxu0 %v2334_v23 }
 0x223   : > { %2197 = vmatprep.subr.bf16.mxu0 %v2335_v24 }
 0x225   : > { %v2085_v26 = vpop.f32.mrb[16].mxu1 }
 0x226   : > { %v846_v27 = vadd.f32 %v2085_v26, %v2622_v25  ;;  %v837_v28 = vpop.f32.mrb[17].mxu1  ;;  %v2336_v26 = vld [vmem:[%s2884_s1 + $0x120] sm:$0xff]   ;;  %2198 = vmatpush3.bf16.msra.mxu0 %v2335_v24 }
 0x227   : > { %v838_v56 = vadd.f32 %v837_v28, %v2622_v25  ;;  %v2086_v29 = vpop.f32.mrb[18].mxu1  ;;  %2199 = vmatprep.subr.bf16.mxu0 %v2336_v26 }
 0x228   : > { %v849_v30 = vadd.f32 %v2086_v29, %v2622_v25  ;;  %v840_v31 = vpop.f32.mrb[19].mxu1  ;;  %v918_v33 = vmax.f32 %v846_v27, 0.0 }
 0x229   : > { %v841_v32 = vadd.f32 %v840_v31, %v2622_v25  ;;  %v916_v35 = vmax.f32 %v838_v56, 0.0 }
 0x22a   : > { %v919_v34 = vmax.f32 %v849_v30, 0.0  ;;  %2200 = vmatpush3.bf16.msra.mxu0 %v2336_v26 }
 0x22b   : > { %v917_v36 = vmax.f32 %v841_v32, 0.0 }
 0x22c   : > { %v957_v37 = vpack.c.bf16 %v919_v34, %v918_v33  ;;  %v2337_v33 = vld [vmem:[%s2884_s1 + $0x128] sm:$0xff]  }
 0x22d   : > { %v956_v38 = vpack.c.bf16 %v917_v36, %v916_v35  ;;  %2201 = vmatprep.subr.bf16.mxu0 %v2337_v33 }
 0x22e   : > { %2202 = vmatpush3.bf16.msra.mxu0 %v2337_v33 }
 0x22f   : > { %2131 = vmatprep.mubr.bf16.mxu1 %v956_v38 }
 0x230   : > { %2132 = vmatmul.mubr.bf16.gmra.mrb[48].mxu1 %v957_v37 }
 0x235   : > { %v2089_v39 = vpop.f32.mrb[20].mxu1 }
 0x236   : > { %v862_v40 = vadd.f32 %v2089_v39, %v2622_v25  ;;  %v853_v41 = vpop.f32.mrb[21].mxu1 }
 0x237   : > { %v854_v42 = vadd.f32 %v853_v41, %v2622_v25  ;;  %v2090_v43 = vpop.f32.mrb[22].mxu1 }
 0x238   : > { %v865_v44 = vadd.f32 %v2090_v43, %v2622_v25  ;;  %v856_v45 = vpop.f32.mrb[23].mxu1  ;;  %v922_v47 = vmax.f32 %v862_v40, 0.0  ;;  %v2338_v40 = vld [vmem:[%s2884_s1 + $0x130] sm:$0xff]  }
 0x239   : > { %v857_v46 = vadd.f32 %v856_v45, %v2622_v25  ;;  %v920_v49 = vmax.f32 %v854_v42, 0.0  ;;  %2203 = vmatprep.subr.bf16.mxu0 %v2338_v40  ;;  %v2339_v42 = vld [vmem:[%s2884_s1 + $0x138] sm:$0xff]  }
 0x23a   : > { %v923_v48 = vmax.f32 %v865_v44, 0.0  ;;  %2204 = vmatpush3.bf16.msra.mxu0 %v2338_v40 }
 0x23b   : > { %v921_v50 = vmax.f32 %v857_v46, 0.0  ;;  %2205 = vmatprep.subr.bf16.mxu0 %v2339_v42 }
 0x23c   : > { %v959_v51 = vpack.c.bf16 %v923_v48, %v922_v47 }
 0x23d   : > { %v958_v53 = vpack.c.bf16 %v921_v50, %v920_v49 }
 0x23e   : > { %2206 = vmatpush3.bf16.msra.mxu0 %v2339_v42 }
 0x23f   : > { %2135 = vmatprep.mubr.bf16.mxu1 %v958_v53 }
 0x240   : > { %2136 = vmatmul.mubr.bf16.gmra.mrb[52].mxu1 %v959_v51 }
 0x245   : > { %v2093_v57 = vpop.f32.mrb[24].mxu1 }
 0x246   : > { %v878_v58 = vadd.f32 %v2093_v57, %v2622_v25  ;;  %v869_v59 = vpop.f32.mrb[25].mxu1 }
 0x247   : > { %v870_v60 = vadd.f32 %v869_v59, %v2622_v25  ;;  %v2094_v61 = vpop.f32.mrb[26].mxu1 }
 0x248   : > { %v881_v62 = vadd.f32 %v2094_v61, %v2622_v25  ;;  %v872_v63 = vpop.f32.mrb[27].mxu1  ;;  %v926_v2 = vmax.f32 %v878_v58, 0.0 }
 0x249   : > { %v873_v1 = vadd.f32 %v872_v63, %v2622_v25  ;;  %v924_v4 = vmax.f32 %v870_v60, 0.0 }
 0x24a   : > { %v927_v3 = vmax.f32 %v881_v62, 0.0 }
 0x24b   : > { %v925_v5 = vmax.f32 %v873_v1, 0.0 }
 0x24c   : > { %v961_v6 = vpack.c.bf16 %v927_v3, %v926_v2 }
 0x24d   : > { %v960_v7 = vpack.c.bf16 %v925_v5, %v924_v4 }
 0x24f   : > { %2139 = vmatprep.mubr.bf16.mxu1 %v960_v7 }
 0x250   : > { %2140 = vmatmul.mubr.bf16.gmra.mrb[56].mxu1 %v961_v6 }
 0x255   : > { %v2097_v8 = vpop.f32.mrb[28].mxu1 }
 0x256   : > { %v894_v9 = vadd.f32 %v2097_v8, %v2622_v25  ;;  %v885_v10 = vpop.f32.mrb[29].mxu1 }
 0x257   : > { %v886_v11 = vadd.f32 %v885_v10, %v2622_v25  ;;  %v2098_v12 = vpop.f32.mrb[30].mxu1 }
 0x258   : > { %v897_v13 = vadd.f32 %v2098_v12, %v2622_v25  ;;  %v888_v14 = vpop.f32.mrb[31].mxu1  ;;  %v930_v16 = vmax.f32 %v894_v9, 0.0 }
 0x259   : > { %v889_v15 = vadd.f32 %v888_v14, %v2622_v25  ;;  %v928_v18 = vmax.f32 %v886_v11, 0.0  ;;  %v2685_v25 = vrot.slane %v2555_v54, %v966_v22 }
 0x25a   : > { %v931_v17 = vmax.f32 %v897_v13, 0.0 }
 0x25b   : > { %v929_v19 = vmax.f32 %v889_v15, 0.0 }
 0x25c   : > { %v963_v20 = vpack.c.bf16 %v931_v17, %v930_v16 }
 0x25d   : > { %v962_v21 = vpack.c.bf16 %v929_v19, %v928_v18 }
 0x25f   : > { %2143 = vmatprep.mubr.bf16.mxu1 %v962_v21 }
 0x260   : > { %2144 = vmatmul.mubr.bf16.gmra.mrb[60].mxu1 %v963_v20 }
 0x2c3   : > { %v2117_v27 = vpop.f32.mrb[32].mxu1 }
 0x2c4   : > { %v1059_v28 = vadd.f32 %v2117_v27, %v2685_v25  ;;  %v1050_v56 = vpop.f32.mrb[33].mxu1 }
 0x2c5   : > { %v1051_v29 = vadd.f32 %v1050_v56, %v2685_v25  ;;  %v2118_v30 = vpop.f32.mrb[34].mxu1 }
 0x2c6   : > { %v1062_v31 = vadd.f32 %v2118_v30, %v2685_v25  ;;  %v1053_v32 = vpop.f32.mrb[35].mxu1  ;;  %v1179_v35 = vmax.f32 %v1059_v28, 0.0 }
 0x2c7   : > { %v1054_v34 = vadd.f32 %v1053_v32, %v2685_v25  ;;  %v1177_v37 = vmax.f32 %v1051_v29, 0.0 }
 0x2c8   : > { %v1180_v36 = vmax.f32 %v1062_v31, 0.0 }
 0x2c9   : > { %v1178_v38 = vmax.f32 %v1054_v34, 0.0 }
 0x2ca   : > { %v1226_v39 = vpack.c.bf16 %v1180_v36, %v1179_v35 }
 0x2cb   : > { %v1225_v41 = vpack.c.bf16 %v1178_v38, %v1177_v37 }
 0x2cd   : > { %2163 = vmatprep.mubr.bf16.mxu1 %v1225_v41 }
 0x2ce   : > { %2164 = vmatmul.mubr.bf16.vlgmr.msra.gmra.mrb[64].mxu1 %v1226_v39 }
 0x2d3   : > { %v2121_v43 = vpop.f32.mrb[36].mxu1 }
 0x2d4   : > { %v1075_v44 = vadd.f32 %v2121_v43, %v2685_v25  ;;  %v1066_v45 = vpop.f32.mrb[37].mxu1 }
 0x2d5   : > { %v1067_v46 = vadd.f32 %v1066_v45, %v2685_v25  ;;  %v2122_v47 = vpop.f32.mrb[38].mxu1 }
 0x2d6   : > { %v1078_v48 = vadd.f32 %v2122_v47, %v2685_v25  ;;  %v1069_v49 = vpop.f32.mrb[39].mxu1  ;;  %v1183_v51 = vmax.f32 %v1075_v44, 0.0 }
 0x2d7   : > { %v1070_v50 = vadd.f32 %v1069_v49, %v2685_v25  ;;  %v1181_v55 = vmax.f32 %v1067_v46, 0.0 }
 0x2d8   : > { %v1184_v53 = vmax.f32 %v1078_v48, 0.0 }
 0x2d9   : > { %v1182_v57 = vmax.f32 %v1070_v50, 0.0 }
 0x2da   : > { %v1228_v58 = vpack.c.bf16 %v1184_v53, %v1183_v51  ;;  %v2340_v53 = vld [vmem:[%s2884_s1 + $0x140] sm:$0xff]  }
 0x2db   : > { %v1227_v59 = vpack.c.bf16 %v1182_v57, %v1181_v55  ;;  %2207 = vmatprep.subr.bf16.mxu0 %v2340_v53 }
 0x2dc   : > { %2208 = vmatpush3.bf16.msra.mxu0 %v2340_v53 }
 0x2dd   : > { %2167 = vmatprep.mubr.bf16.mxu1 %v1227_v59 }
 0x2de   : > { %2168 = vmatmul.mubr.bf16.gmra.mrb[68].mxu1 %v1228_v58 }
 0x2e3   : > { %v2125_v60 = vpop.f32.mrb[40].mxu1 }
 0x2e4   : > { %v1091_v61 = vadd.f32 %v2125_v60, %v2685_v25  ;;  %v1082_v62 = vpop.f32.mrb[41].mxu1 }
 0x2e5   : > { %v1083_v63 = vadd.f32 %v1082_v62, %v2685_v25  ;;  %v2126_v0 = vpop.f32.mrb[42].mxu1 }
 0x2e6   : > { %v1094_v1 = vadd.f32 %v2126_v0, %v2685_v25  ;;  %v1085_v2 = vpop.f32.mrb[43].mxu1  ;;  %v1187_v4 = vmax.f32 %v1091_v61, 0.0 }
 0x2e7   : > { %v1086_v3 = vadd.f32 %v1085_v2, %v2685_v25  ;;  %v1185_v6 = vmax.f32 %v1083_v63, 0.0  ;;  %v2341_v63 = vld [vmem:[%s2884_s1 + $0x148] sm:$0xff]  }
 0x2e8   : > { %v1188_v5 = vmax.f32 %v1094_v1, 0.0  ;;  %2209 = vmatprep.subr.bf16.mxu0 %v2341_v63 }
 0x2e9   : > { %v1186_v7 = vmax.f32 %v1086_v3, 0.0  ;;  %2210 = vmatpush3.bf16.msra.mxu0 %v2341_v63 }
 0x2ea   : > { %v1230_v8 = vpack.c.bf16 %v1188_v5, %v1187_v4 }
 0x2eb   : > { %v1229_v9 = vpack.c.bf16 %v1186_v7, %v1185_v6 }
 0x2ed   : > { %2171 = vmatprep.mubr.bf16.mxu1 %v1229_v9 }
 0x2ee   : > { %2172 = vmatmul.mubr.bf16.gmra.mrb[72].mxu1 %v1230_v8 }
 0x2f3   : > { %v2129_v10 = vpop.f32.mrb[44].mxu1 }
 0x2f4   : > { %v1107_v11 = vadd.f32 %v2129_v10, %v2685_v25  ;;  %v1098_v12 = vpop.f32.mrb[45].mxu1 }
 0x2f5   : > { %v1099_v13 = vadd.f32 %v1098_v12, %v2685_v25  ;;  %v2130_v14 = vpop.f32.mrb[46].mxu1 }
 0x2f6   : > { %v1110_v15 = vadd.f32 %v2130_v14, %v2685_v25  ;;  %v1101_v16 = vpop.f32.mrb[47].mxu1  ;;  %v1191_v18 = vmax.f32 %v1107_v11, 0.0 }
 0x2f7   : > { %v1102_v17 = vadd.f32 %v1101_v16, %v2685_v25  ;;  %v1189_v20 = vmax.f32 %v1099_v13, 0.0 }
 0x2f8   : > { %v1192_v19 = vmax.f32 %v1110_v15, 0.0 }
 0x2f9   : > { %v1190_v21 = vmax.f32 %v1102_v17, 0.0 }
 0x2fa   : > { %v1232_v22 = vpack.c.bf16 %v1192_v19, %v1191_v18 }
 0x2fb   : > { %v1231_v23 = vpack.c.bf16 %v1190_v21, %v1189_v20  ;;  %v1243_v21 = vsub.s32 3, %v2550_v52 }
 0x2fd   : > { %2175 = vmatprep.mubr.bf16.mxu1 %v1231_v23 }
 0x2fe   : > { %2176 = vmatmul.mubr.bf16.gmra.mrb[76].mxu1 %v1232_v22  ;;  %v2739_v22 = vrot.slane %v2555_v54, %v1243_v21 }
 0x303   : > { %v2133_v24 = vpop.f32.mrb[48].mxu1 }
 0x304   : > { %v1123_v26 = vadd.f32 %v2133_v24, %v2685_v25  ;;  %v1114_v27 = vpop.f32.mrb[49].mxu1 }
 0x305   : > { %v1115_v28 = vadd.f32 %v1114_v27, %v2685_v25  ;;  %v2134_v56 = vpop.f32.mrb[50].mxu1 }
 0x306   : > { %v1126_v29 = vadd.f32 %v2134_v56, %v2685_v25  ;;  %v1117_v30 = vpop.f32.mrb[51].mxu1  ;;  %v1195_v32 = vmax.f32 %v1123_v26, 0.0 }
 0x307   : > { %v1118_v31 = vadd.f32 %v1117_v30, %v2685_v25  ;;  %v1193_v34 = vmax.f32 %v1115_v28, 0.0 }
 0x308   : > { %v1196_v33 = vmax.f32 %v1126_v29, 0.0 }
 0x309   : > { %v1194_v35 = vmax.f32 %v1118_v31, 0.0 }
 0x30a   : > { %v1234_v36 = vpack.c.bf16 %v1196_v33, %v1195_v32 }
 0x30b   : > { %v1233_v37 = vpack.c.bf16 %v1194_v35, %v1193_v34 }
 0x30d   : > { %2179 = vmatprep.mubr.bf16.mxu1 %v1233_v37 }
 0x30e   : > { %2180 = vmatmul.mubr.bf16.gmra.mrb[80].mxu1 %v1234_v36 }
 0x313   : > { %v2137_v38 = vpop.f32.mrb[52].mxu1 }
 0x314   : > { %v1139_v39 = vadd.f32 %v2137_v38, %v2685_v25  ;;  %v1130_v40 = vpop.f32.mrb[53].mxu1 }
 0x315   : > { %v1131_v41 = vadd.f32 %v1130_v40, %v2685_v25  ;;  %v2138_v42 = vpop.f32.mrb[54].mxu1 }
 0x316   : > { %v1142_v43 = vadd.f32 %v2138_v42, %v2685_v25  ;;  %v1133_v44 = vpop.f32.mrb[55].mxu1  ;;  %v1199_v46 = vmax.f32 %v1139_v39, 0.0 }
 0x317   : > { %v1134_v45 = vadd.f32 %v1133_v44, %v2685_v25  ;;  %v1197_v48 = vmax.f32 %v1131_v41, 0.0 }
 0x318   : > { %v1200_v47 = vmax.f32 %v1142_v43, 0.0 }
 0x319   : > { %v1198_v49 = vmax.f32 %v1134_v45, 0.0 }
 0x31a   : > { %v1236_v50 = vpack.c.bf16 %v1200_v47, %v1199_v46 }
 0x31b   : > { %v1235_v51 = vpack.c.bf16 %v1198_v49, %v1197_v48 }
 0x31d   : > { %2183 = vmatprep.mubr.bf16.mxu1 %v1235_v51 }
 0x31e   : > { %2184 = vmatmul.mubr.bf16.gmra.mrb[84].mxu1 %v1236_v50 }
 0x323   : > { %v2141_v55 = vpop.f32.mrb[56].mxu1 }
 0x324   : > { %v1155_v57 = vadd.f32 %v2141_v55, %v2685_v25  ;;  %v1146_v58 = vpop.f32.mrb[57].mxu1 }
 0x325   : > { %v1147_v59 = vadd.f32 %v1146_v58, %v2685_v25  ;;  %v2142_v60 = vpop.f32.mrb[58].mxu1 }
 0x326   : > { %v1158_v61 = vadd.f32 %v2142_v60, %v2685_v25  ;;  %v1149_v62 = vpop.f32.mrb[59].mxu1  ;;  %v1203_v1 = vmax.f32 %v1155_v57, 0.0 }
 0x327   : > { %v1150_v0 = vadd.f32 %v1149_v62, %v2685_v25  ;;  %v1201_v3 = vmax.f32 %v1147_v59, 0.0 }
 0x328   : > { %v1204_v2 = vmax.f32 %v1158_v61, 0.0 }
 0x329   : > { %v1202_v4 = vmax.f32 %v1150_v0, 0.0 }
 0x32a   : > { %v1238_v5 = vpack.c.bf16 %v1204_v2, %v1203_v1 }
 0x32b   : > { %v1237_v6 = vpack.c.bf16 %v1202_v4, %v1201_v3 }
 0x32d   : > { %2187 = vmatprep.mubr.bf16.mxu1 %v1237_v6 }
 0x32e   : > { %2188 = vmatmul.mubr.bf16.gmra.mrb[88].mxu1 %v1238_v5 }
 0x333   : > { %v2145_v7 = vpop.f32.mrb[60].mxu1 }
 0x334   : > { %v1171_v8 = vadd.f32 %v2145_v7, %v2685_v25  ;;  %v1162_v9 = vpop.f32.mrb[61].mxu1 }
 0x335   : > { %v1163_v10 = vadd.f32 %v1162_v9, %v2685_v25  ;;  %v2146_v11 = vpop.f32.mrb[62].mxu1 }
 0x336   : > { %v1174_v12 = vadd.f32 %v2146_v11, %v2685_v25  ;;  %v1165_v13 = vpop.f32.mrb[63].mxu1  ;;  %v1207_v15 = vmax.f32 %v1171_v8, 0.0 }
 0x337   : > { %v1166_v14 = vadd.f32 %v1165_v13, %v2685_v25  ;;  %v1205_v17 = vmax.f32 %v1163_v10, 0.0 }
 0x338   : > { %v1208_v16 = vmax.f32 %v1174_v12, 0.0 }
 0x339   : > { %v1206_v18 = vmax.f32 %v1166_v14, 0.0 }
 0x33a   : > { %v1240_v19 = vpack.c.bf16 %v1208_v16, %v1207_v15 }
 0x33b   : > { %v1239_v20 = vpack.c.bf16 %v1206_v18, %v1205_v17 }
 0x33d   : > { %2191 = vmatprep.mubr.bf16.mxu1 %v1239_v20 }
 0x33e   : > { %2192 = vmatmul.mubr.bf16.gmra.mrb[92].mxu1 %v1240_v19 }
 0x3a1   : > { %v2165_v23 = vpop.f32.mrb[64].mxu1 }
 0x3a2   : > { %v1336_v24 = vadd.f32 %v2165_v23, %v2739_v22  ;;  %v1327_v26 = vpop.f32.mrb[65].mxu1 }
 0x3a3   : > { %v1328_v27 = vadd.f32 %v1327_v26, %v2739_v22  ;;  %v2166_v25 = vpop.f32.mrb[66].mxu1 }
 0x3a4   : > { %v1339_v28 = vadd.f32 %v2166_v25, %v2739_v22  ;;  %v1330_v56 = vpop.f32.mrb[67].mxu1  ;;  %v1456_v30 = vmax.f32 %v1336_v24, 0.0 }
 0x3a5   : > { %v1331_v29 = vadd.f32 %v1330_v56, %v2739_v22  ;;  %v1454_v32 = vmax.f32 %v1328_v27, 0.0 }
 0x3a6   : > { %v1457_v31 = vmax.f32 %v1339_v28, 0.0 }
 0x3a7   : > { %v1455_v33 = vmax.f32 %v1331_v29, 0.0 }
 0x3a8   : > { %v1503_v34 = vpack.c.bf16 %v1457_v31, %v1456_v30 }
 0x3a9   : > { %v1502_v35 = vpack.c.bf16 %v1455_v33, %v1454_v32 }
 0x3ab   : > { %2211 = vmatprep.mubr.bf16.mxu0 %v1502_v35 }
 0x3ac   : > { %2212 = vmatmul.mubr.bf16.vlgmr.msra.gmra.mrb[64].mxu0 %v1503_v34 }
 0x3b1   : > { %v2169_v36 = vpop.f32.mrb[68].mxu1 }
 0x3b2   : > { %v1352_v37 = vadd.f32 %v2169_v36, %v2739_v22  ;;  %v1343_v38 = vpop.f32.mrb[69].mxu1 }
 0x3b3   : > { %v1344_v39 = vadd.f32 %v1343_v38, %v2739_v22  ;;  %v2170_v40 = vpop.f32.mrb[70].mxu1 }
 0x3b4   : > { %v1355_v41 = vadd.f32 %v2170_v40, %v2739_v22  ;;  %v1346_v42 = vpop.f32.mrb[71].mxu1  ;;  %v1460_v44 = vmax.f32 %v1352_v37, 0.0 }
 0x3b5   : > { %v1347_v43 = vadd.f32 %v1346_v42, %v2739_v22  ;;  %v1458_v46 = vmax.f32 %v1344_v39, 0.0 }
 0x3b6   : > { %v1461_v45 = vmax.f32 %v1355_v41, 0.0 }
 0x3b7   : > { %v1459_v47 = vmax.f32 %v1347_v43, 0.0 }
 0x3b8   : > { %v1505_v48 = vpack.c.bf16 %v1461_v45, %v1460_v44 }
 0x3b9   : > { %v1504_v49 = vpack.c.bf16 %v1459_v47, %v1458_v46 }
 0x3bb   : > { %2215 = vmatprep.mubr.bf16.mxu0 %v1504_v49 }
 0x3bc   : > { %2216 = vmatmul.mubr.bf16.gmra.mrb[68].mxu0 %v1505_v48 }
 0x3c1   : > { %v2173_v50 = vpop.f32.mrb[72].mxu1 }
 0x3c2   : > { %v1368_v51 = vadd.f32 %v2173_v50, %v2739_v22  ;;  %v1359_v53 = vpop.f32.mrb[73].mxu1 }
 0x3c3   : > { %v1360_v55 = vadd.f32 %v1359_v53, %v2739_v22  ;;  %v2174_v57 = vpop.f32.mrb[74].mxu1 }
 0x3c4   : > { %v1371_v58 = vadd.f32 %v2174_v57, %v2739_v22  ;;  %v1362_v59 = vpop.f32.mrb[75].mxu1  ;;  %v1464_v61 = vmax.f32 %v1368_v51, 0.0 }
 0x3c5   : > { %v1363_v60 = vadd.f32 %v1362_v59, %v2739_v22  ;;  %v1462_v63 = vmax.f32 %v1360_v55, 0.0 }
 0x3c6   : > { %v1465_v62 = vmax.f32 %v1371_v58, 0.0 }
 0x3c7   : > { %v1463_v0 = vmax.f32 %v1363_v60, 0.0 }
 0x3c8   : > { %v1507_v1 = vpack.c.bf16 %v1465_v62, %v1464_v61 }
 0x3c9   : > { %v1506_v2 = vpack.c.bf16 %v1463_v0, %v1462_v63 }
 0x3cb   : > { %2219 = vmatprep.mubr.bf16.mxu0 %v1506_v2 }
 0x3cc   : > { %2220 = vmatmul.mubr.bf16.gmra.mrb[72].mxu0 %v1507_v1 }
 0x3d1   : > { %v2177_v3 = vpop.f32.mrb[76].mxu1 }
 0x3d2   : > { %v1384_v4 = vadd.f32 %v2177_v3, %v2739_v22  ;;  %v1375_v5 = vpop.f32.mrb[77].mxu1 }
 0x3d3   : > { %v1376_v6 = vadd.f32 %v1375_v5, %v2739_v22  ;;  %v2178_v7 = vpop.f32.mrb[78].mxu1 }
 0x3d4   : > { %v1387_v8 = vadd.f32 %v2178_v7, %v2739_v22  ;;  %v1378_v9 = vpop.f32.mrb[79].mxu1  ;;  %v1468_v11 = vmax.f32 %v1384_v4, 0.0 }
 0x3d5   : > { %v1379_v10 = vadd.f32 %v1378_v9, %v2739_v22  ;;  %v1466_v13 = vmax.f32 %v1376_v6, 0.0 }
 0x3d6   : > { %v1469_v12 = vmax.f32 %v1387_v8, 0.0 }
 0x3d7   : > { %v1467_v14 = vmax.f32 %v1379_v10, 0.0 }
 0x3d8   : > { %v1509_v15 = vpack.c.bf16 %v1469_v12, %v1468_v11  ;;  %v1520_v12 = vsub.s32 4, %v2550_v52 }
 0x3d9   : > { %v1508_v16 = vpack.c.bf16 %v1467_v14, %v1466_v13 }
 0x3da   : > { %v2775_v13 = vrot.slane %v2555_v54, %v1520_v12 }
 0x3db   : > { %2223 = vmatprep.mubr.bf16.mxu0 %v1508_v16 }
 0x3dc   : > { %2224 = vmatmul.mubr.bf16.gmra.mrb[76].mxu0 %v1509_v15 }
 0x3e1   : > { %v2181_v17 = vpop.f32.mrb[80].mxu1 }
 0x3e2   : > { %v1400_v18 = vadd.f32 %v2181_v17, %v2739_v22  ;;  %v1391_v19 = vpop.f32.mrb[81].mxu1 }
 0x3e3   : > { %v1392_v20 = vadd.f32 %v1391_v19, %v2739_v22  ;;  %v2182_v21 = vpop.f32.mrb[82].mxu1 }
 0x3e4   : > { %v1403_v23 = vadd.f32 %v2182_v21, %v2739_v22  ;;  %v1394_v24 = vpop.f32.mrb[83].mxu1  ;;  %v1472_v27 = vmax.f32 %v1400_v18, 0.0 }
 0x3e5   : > { %v1395_v26 = vadd.f32 %v1394_v24, %v2739_v22  ;;  %v1470_v28 = vmax.f32 %v1392_v20, 0.0 }
 0x3e6   : > { %v1473_v25 = vmax.f32 %v1403_v23, 0.0 }
 0x3e7   : > { %v1471_v56 = vmax.f32 %v1395_v26, 0.0 }
 0x3e8   : > { %v1511_v29 = vpack.c.bf16 %v1473_v25, %v1472_v27 }
 0x3e9   : > { %v1510_v30 = vpack.c.bf16 %v1471_v56, %v1470_v28 }
 0x3eb   : > { %2227 = vmatprep.mubr.bf16.mxu0 %v1510_v30 }
 0x3ec   : > { %2228 = vmatmul.mubr.bf16.gmra.mrb[80].mxu0 %v1511_v29 }
 0x3f1   : > { %v2185_v31 = vpop.f32.mrb[84].mxu1 }
 0x3f2   : > { %v1416_v32 = vadd.f32 %v2185_v31, %v2739_v22  ;;  %v1407_v33 = vpop.f32.mrb[85].mxu1 }
 0x3f3   : > { %v1408_v34 = vadd.f32 %v1407_v33, %v2739_v22  ;;  %v2186_v35 = vpop.f32.mrb[86].mxu1 }
 0x3f4   : > { %v1419_v36 = vadd.f32 %v2186_v35, %v2739_v22  ;;  %v1410_v37 = vpop.f32.mrb[87].mxu1  ;;  %v1476_v39 = vmax.f32 %v1416_v32, 0.0 }
 0x3f5   : > { %v1411_v38 = vadd.f32 %v1410_v37, %v2739_v22  ;;  %v1474_v41 = vmax.f32 %v1408_v34, 0.0 }
 0x3f6   : > { %v1477_v40 = vmax.f32 %v1419_v36, 0.0 }
 0x3f7   : > { %v1475_v42 = vmax.f32 %v1411_v38, 0.0 }
 0x3f8   : > { %v1513_v43 = vpack.c.bf16 %v1477_v40, %v1476_v39 }
 0x3f9   : > { %v1512_v44 = vpack.c.bf16 %v1475_v42, %v1474_v41 }
 0x3fb   : > { %2231 = vmatprep.mubr.bf16.mxu0 %v1512_v44 }
 0x3fc   : > { %2232 = vmatmul.mubr.bf16.gmra.mrb[84].mxu0 %v1513_v43 }
 0x401   : > { %v2189_v45 = vpop.f32.mrb[88].mxu1 }
 0x402   : > { %v1432_v46 = vadd.f32 %v2189_v45, %v2739_v22  ;;  %v1423_v47 = vpop.f32.mrb[89].mxu1 }
 0x403   : > { %v1424_v48 = vadd.f32 %v1423_v47, %v2739_v22  ;;  %v2190_v49 = vpop.f32.mrb[90].mxu1 }
 0x404   : > { %v1435_v50 = vadd.f32 %v2190_v49, %v2739_v22  ;;  %v1426_v51 = vpop.f32.mrb[91].mxu1  ;;  %v1480_v55 = vmax.f32 %v1432_v46, 0.0 }
 0x405   : > { %v1427_v53 = vadd.f32 %v1426_v51, %v2739_v22  ;;  %v1478_v58 = vmax.f32 %v1424_v48, 0.0 }
 0x406   : > { %v1481_v57 = vmax.f32 %v1435_v50, 0.0 }
 0x407   : > { %v1479_v59 = vmax.f32 %v1427_v53, 0.0 }
 0x408   : > { %v1515_v60 = vpack.c.bf16 %v1481_v57, %v1480_v55 }
 0x409   : > { %v1514_v61 = vpack.c.bf16 %v1479_v59, %v1478_v58 }
 0x40b   : > { %2235 = vmatprep.mubr.bf16.mxu0 %v1514_v61 }
 0x40c   : > { %2236 = vmatmul.mubr.bf16.gmra.mrb[88].mxu0 %v1515_v60 }
 0x411   : > { %v2193_v62 = vpop.f32.mrb[92].mxu1 }
 0x412   : > { %v1448_v63 = vadd.f32 %v2193_v62, %v2739_v22  ;;  %v1439_v0 = vpop.f32.mrb[93].mxu1 }
 0x413   : > { %v1440_v1 = vadd.f32 %v1439_v0, %v2739_v22  ;;  %v2194_v2 = vpop.f32.mrb[94].mxu1 }
 0x414   : > { %v1451_v3 = vadd.f32 %v2194_v2, %v2739_v22  ;;  %v1442_v4 = vpop.f32.mrb[95].mxu1  ;;  %v1484_v6 = vmax.f32 %v1448_v63, 0.0 }
 0x415   : > { %v1443_v5 = vadd.f32 %v1442_v4, %v2739_v22  ;;  %v1482_v8 = vmax.f32 %v1440_v1, 0.0 }
 0x416   : > { %v1485_v7 = vmax.f32 %v1451_v3, 0.0 }
 0x417   : > { %v1483_v9 = vmax.f32 %v1443_v5, 0.0 }
 0x418   : > { %v1517_v10 = vpack.c.bf16 %v1485_v7, %v1484_v6 }
 0x419   : > { %v1516_v11 = vpack.c.bf16 %v1483_v9, %v1482_v8 }
 0x41b   : > { %2239 = vmatprep.mubr.bf16.mxu0 %v1516_v11 }
 0x41c   : > { %2240 = vmatmul.mubr.bf16.gmra.mrb[92].mxu0 %v1517_v10 }
 0x47f   : > { %v2213_v14 = vpop.f32.mrb[64].mxu0 }
 0x480   : > { %v1613_v15 = vadd.f32 %v2213_v14, %v2775_v13  ;;  %v1604_v16 = vpop.f32.mrb[65].mxu0 }
 0x481   : > { %v1605_v22 = vadd.f32 %v1604_v16, %v2775_v13  ;;  %v2214_v17 = vpop.f32.mrb[66].mxu0 }
 0x482   : > { %2342 = vtanh.f32 %v1613_v15  ;;  %v1616_v18 = vadd.f32 %v2214_v17, %v2775_v13  ;;  %v1607_v19 = vpop.f32.mrb[67].mxu0 }
 0x483   : > { %2344 = vtanh.f32 %v1605_v22  ;;  %v1608_v20 = vadd.f32 %v1607_v19, %v2775_v13 }
 0x484   : > { %2346 = vtanh.f32 %v1616_v18 }
 0x485   : > { %2348 = vtanh.f32 %v1608_v20 }
 0x48c   : > { %v2343_v52 = vpop.eup %2342 }
 0x48d   : > { %v2345_v54 = vpop.eup %2344  ;;  %1766 = vst.msk [vmem:[%s2786_s21 + $0x10] sm:$0xff] %vm1763_vm1, %v2343_v52 }
 0x48e   : > { %v2347_v21 = vpop.eup %2346  ;;  %1764 = vst.msk [vmem:[%s2786_s21] sm:$0xff] %vm1763_vm1, %v2345_v54 }
 0x48f   : > { %v2349_v23 = vpop.eup %2348  ;;  %1767 = vst.msk [vmem:[%s2786_s21 + $0x18] sm:$0xff] %vm1763_vm1, %v2347_v21  ;;  %v2217_v24 = vpop.f32.mrb[68].mxu0 }
 0x490   : > { %1765 = vst.msk [vmem:[%s2786_s21 + $0x8] sm:$0xff] %vm1763_vm1, %v2349_v23  ;;  %v1629_v26 = vadd.f32 %v2217_v24, %v2775_v13  ;;  %v1620_v27 = vpop.f32.mrb[69].mxu0 }
 0x491   : > { %v1621_v25 = vadd.f32 %v1620_v27, %v2775_v13  ;;  %v2218_v28 = vpop.f32.mrb[70].mxu0 }
 0x492   : > { %2350 = vtanh.f32 %v1629_v26  ;;  %v1632_v56 = vadd.f32 %v2218_v28, %v2775_v13  ;;  %v1623_v29 = vpop.f32.mrb[71].mxu0 }
 0x493   : > { %2352 = vtanh.f32 %v1621_v25  ;;  %v1624_v30 = vadd.f32 %v1623_v29, %v2775_v13 }
 0x494   : > { %2354 = vtanh.f32 %v1632_v56 }
 0x495   : > { %2356 = vtanh.f32 %v1624_v30 }
 0x49c   : > { %v2351_v31 = vpop.eup %2350 }
 0x49d   : > { %v2353_v32 = vpop.eup %2352  ;;  %1770 = vst.msk [vmem:[%s2786_s21 + $0x30] sm:$0xff] %vm1763_vm1, %v2351_v31 }
 0x49e   : > { %v2355_v33 = vpop.eup %2354  ;;  %1768 = vst.msk [vmem:[%s2786_s21 + $0x20] sm:$0xff] %vm1763_vm1, %v2353_v32 }
 0x49f   : > { %v2357_v34 = vpop.eup %2356  ;;  %1771 = vst.msk [vmem:[%s2786_s21 + $0x38] sm:$0xff] %vm1763_vm1, %v2355_v33  ;;  %v2221_v35 = vpop.f32.mrb[72].mxu0 }
 0x4a0   : > { %1769 = vst.msk [vmem:[%s2786_s21 + $0x28] sm:$0xff] %vm1763_vm1, %v2357_v34  ;;  %v1645_v36 = vadd.f32 %v2221_v35, %v2775_v13  ;;  %v1636_v37 = vpop.f32.mrb[73].mxu0 }
 0x4a1   : > { %v1637_v38 = vadd.f32 %v1636_v37, %v2775_v13  ;;  %v2222_v39 = vpop.f32.mrb[74].mxu0 }
 0x4a2   : > { %2358 = vtanh.f32 %v1645_v36  ;;  %v1648_v40 = vadd.f32 %v2222_v39, %v2775_v13  ;;  %v1639_v41 = vpop.f32.mrb[75].mxu0 }
 0x4a3   : > { %2360 = vtanh.f32 %v1637_v38  ;;  %v1640_v42 = vadd.f32 %v1639_v41, %v2775_v13 }
 0x4a4   : > { %2362 = vtanh.f32 %v1648_v40 }
 0x4a5   : > { %2364 = vtanh.f32 %v1640_v42 }
 0x4ac   : > { %v2359_v43 = vpop.eup %2358 }
 0x4ad   : > { %v2361_v44 = vpop.eup %2360  ;;  %1774 = vst.msk [vmem:[%s2786_s21 + $0x50] sm:$0xff] %vm1763_vm1, %v2359_v43 }
 0x4ae   : > { %v2363_v45 = vpop.eup %2362  ;;  %1772 = vst.msk [vmem:[%s2786_s21 + $0x40] sm:$0xff] %vm1763_vm1, %v2361_v44 }
 0x4af   : > { %v2365_v46 = vpop.eup %2364  ;;  %1775 = vst.msk [vmem:[%s2786_s21 + $0x58] sm:$0xff] %vm1763_vm1, %v2363_v45  ;;  %v2225_v47 = vpop.f32.mrb[76].mxu0 }
 0x4b0   : > { %1773 = vst.msk [vmem:[%s2786_s21 + $0x48] sm:$0xff] %vm1763_vm1, %v2365_v46  ;;  %v1661_v48 = vadd.f32 %v2225_v47, %v2775_v13  ;;  %v1652_v49 = vpop.f32.mrb[77].mxu0 }
 0x4b1   : > { %v1653_v50 = vadd.f32 %v1652_v49, %v2775_v13  ;;  %v2226_v51 = vpop.f32.mrb[78].mxu0 }
 0x4b2   : > { %2366 = vtanh.f32 %v1661_v48  ;;  %v1664_v53 = vadd.f32 %v2226_v51, %v2775_v13  ;;  %v1655_v55 = vpop.f32.mrb[79].mxu0 }
 0x4b3   : > { %2368 = vtanh.f32 %v1653_v50  ;;  %v1656_v57 = vadd.f32 %v1655_v55, %v2775_v13 }
 0x4b4   : > { %2370 = vtanh.f32 %v1664_v53 }
 0x4b5   : > { %2372 = vtanh.f32 %v1656_v57 }
 0x4bc   : > { %v2367_v58 = vpop.eup %2366 }
 0x4bd   : > { %v2369_v59 = vpop.eup %2368  ;;  %1778 = vst.msk [vmem:[%s2786_s21 + $0x70] sm:$0xff] %vm1763_vm1, %v2367_v58 }
 0x4be   : > { %v2371_v60 = vpop.eup %2370  ;;  %1776 = vst.msk [vmem:[%s2786_s21 + $0x60] sm:$0xff] %vm1763_vm1, %v2369_v59 }
 0x4bf   : > { %v2373_v61 = vpop.eup %2372  ;;  %1779 = vst.msk [vmem:[%s2786_s21 + $0x78] sm:$0xff] %vm1763_vm1, %v2371_v60  ;;  %v2229_v62 = vpop.f32.mrb[80].mxu0 }
 0x4c0   : > { %1777 = vst.msk [vmem:[%s2786_s21 + $0x68] sm:$0xff] %vm1763_vm1, %v2373_v61  ;;  %v1677_v63 = vadd.f32 %v2229_v62, %v2775_v13  ;;  %v1668_v0 = vpop.f32.mrb[81].mxu0 }
 0x4c1   : > { %v1669_v1 = vadd.f32 %v1668_v0, %v2775_v13  ;;  %v2230_v2 = vpop.f32.mrb[82].mxu0 }
 0x4c2   : > { %2374 = vtanh.f32 %v1677_v63  ;;  %v1680_v3 = vadd.f32 %v2230_v2, %v2775_v13  ;;  %v1671_v4 = vpop.f32.mrb[83].mxu0 }
 0x4c3   : > { %2376 = vtanh.f32 %v1669_v1  ;;  %v1672_v5 = vadd.f32 %v1671_v4, %v2775_v13 }
 0x4c4   : > { %2378 = vtanh.f32 %v1680_v3 }
 0x4c5   : > { %2380 = vtanh.f32 %v1672_v5 }
 0x4cc   : > { %v2375_v6 = vpop.eup %2374 }
 0x4cd   : > { %v2377_v7 = vpop.eup %2376  ;;  %1782 = vst.msk [vmem:[%s2786_s21 + $0x90] sm:$0xff] %vm1763_vm1, %v2375_v6 }
 0x4ce   : > { %v2379_v8 = vpop.eup %2378  ;;  %1780 = vst.msk [vmem:[%s2786_s21 + $0x80] sm:$0xff] %vm1763_vm1, %v2377_v7 }
 0x4cf   : > { %v2381_v9 = vpop.eup %2380  ;;  %1783 = vst.msk [vmem:[%s2786_s21 + $0x98] sm:$0xff] %vm1763_vm1, %v2379_v8  ;;  %v2233_v10 = vpop.f32.mrb[84].mxu0 }
 0x4d0   : > { %1781 = vst.msk [vmem:[%s2786_s21 + $0x88] sm:$0xff] %vm1763_vm1, %v2381_v9  ;;  %v1693_v11 = vadd.f32 %v2233_v10, %v2775_v13  ;;  %v1684_v12 = vpop.f32.mrb[85].mxu0 }
 0x4d1   : > { %v1685_v14 = vadd.f32 %v1684_v12, %v2775_v13  ;;  %v2234_v15 = vpop.f32.mrb[86].mxu0 }
 0x4d2   : > { %2382 = vtanh.f32 %v1693_v11  ;;  %v1696_v16 = vadd.f32 %v2234_v15, %v2775_v13  ;;  %v1687_v22 = vpop.f32.mrb[87].mxu0 }
 0x4d3   : > { %2384 = vtanh.f32 %v1685_v14  ;;  %v1688_v17 = vadd.f32 %v1687_v22, %v2775_v13 }
 0x4d4   : > { %2386 = vtanh.f32 %v1696_v16 }
 0x4d5   : > { %2388 = vtanh.f32 %v1688_v17 }
 0x4dc   : > { %v2383_v18 = vpop.eup %2382 }
 0x4dd   : > { %v2385_v19 = vpop.eup %2384  ;;  %1786 = vst.msk [vmem:[%s2786_s21 + $0xb0] sm:$0xff] %vm1763_vm1, %v2383_v18 }
 0x4de   : > { %v2387_v20 = vpop.eup %2386  ;;  %1784 = vst.msk [vmem:[%s2786_s21 + $0xa0] sm:$0xff] %vm1763_vm1, %v2385_v19 }
 0x4df   : > { %v2389_v52 = vpop.eup %2388  ;;  %1787 = vst.msk [vmem:[%s2786_s21 + $0xb8] sm:$0xff] %vm1763_vm1, %v2387_v20  ;;  %v2237_v54 = vpop.f32.mrb[88].mxu0 }
 0x4e0   : > { %1785 = vst.msk [vmem:[%s2786_s21 + $0xa8] sm:$0xff] %vm1763_vm1, %v2389_v52  ;;  %v1709_v21 = vadd.f32 %v2237_v54, %v2775_v13  ;;  %v1700_v23 = vpop.f32.mrb[89].mxu0 }
 0x4e1   : > { %v1701_v24 = vadd.f32 %v1700_v23, %v2775_v13  ;;  %v2238_v26 = vpop.f32.mrb[90].mxu0 }
 0x4e2   : > { %2390 = vtanh.f32 %v1709_v21  ;;  %v1712_v27 = vadd.f32 %v2238_v26, %v2775_v13  ;;  %v1703_v25 = vpop.f32.mrb[91].mxu0 }
 0x4e3   : > { %2392 = vtanh.f32 %v1701_v24  ;;  %v1704_v28 = vadd.f32 %v1703_v25, %v2775_v13 }
 0x4e4   : > { %2394 = vtanh.f32 %v1712_v27 }
 0x4e5   : > { %2396 = vtanh.f32 %v1704_v28 }
 0x4ec   : > { %v2391_v56 = vpop.eup %2390 }
 0x4ed   : > { %v2393_v29 = vpop.eup %2392  ;;  %1790 = vst.msk [vmem:[%s2786_s21 + $0xd0] sm:$0xff] %vm1763_vm1, %v2391_v56 }
 0x4ee   : > { %v2395_v30 = vpop.eup %2394  ;;  %1788 = vst.msk [vmem:[%s2786_s21 + $0xc0] sm:$0xff] %vm1763_vm1, %v2393_v29 }
 0x4ef   : > { %v2397_v31 = vpop.eup %2396  ;;  %1791 = vst.msk [vmem:[%s2786_s21 + $0xd8] sm:$0xff] %vm1763_vm1, %v2395_v30  ;;  %v2241_v32 = vpop.f32.mrb[92].mxu0 }
 0x4f0   : > { %1789 = vst.msk [vmem:[%s2786_s21 + $0xc8] sm:$0xff] %vm1763_vm1, %v2397_v31  ;;  %v1725_v33 = vadd.f32 %v2241_v32, %v2775_v13  ;;  %v1716_v34 = vpop.f32.mrb[93].mxu0 }
 0x4f1   : > { %v1717_v35 = vadd.f32 %v1716_v34, %v2775_v13  ;;  %v2242_v36 = vpop.f32.mrb[94].mxu0 }
 0x4f2   : > { %2398 = vtanh.f32 %v1725_v33  ;;  %v1728_v37 = vadd.f32 %v2242_v36, %v2775_v13  ;;  %v1719_v38 = vpop.f32.mrb[95].mxu0 }
 0x4f3   : > { %2400 = vtanh.f32 %v1717_v35  ;;  %v1720_v39 = vadd.f32 %v1719_v38, %v2775_v13 }
 0x4f4   : > { %2402 = vtanh.f32 %v1728_v37 }
 0x4f5   : > { %2404 = vtanh.f32 %v1720_v39 }
 0x4fc   : > { %v2399_v40 = vpop.eup %2398 }
 0x4fd   : > { %v2401_v41 = vpop.eup %2400  ;;  %1794 = vst.msk [vmem:[%s2786_s21 + $0xf0] sm:$0xff] %vm1763_vm1, %v2399_v40 }
 0x4fe   : > { %v2403_v42 = vpop.eup %2402  ;;  %1792 = vst.msk [vmem:[%s2786_s21 + $0xe0] sm:$0xff] %vm1763_vm1, %v2401_v41 }
 0x4ff   : > { %v2405_v43 = vpop.eup %2404  ;;  %1795 = vst.msk [vmem:[%s2786_s21 + $0xf8] sm:$0xff] %vm1763_vm1, %v2403_v42 }
 0x500   : > { %1793 = vst.msk [vmem:[%s2786_s21 + $0xe8] sm:$0xff] %vm1763_vm1, %v2405_v43 }
 0x501 PF: > { %s12_s9 = sadd.s32 1, %s2412_s9  }
 0x502   : > { %p9_p4 = scmp.ge.s32.totalorder %s12_s9, 5  }
 0x504   :  { %11 = sbr.rel (!%p9_p4) target bundleno = 1 (0x1), region = 58 }

</bundles_post_ra>
